<compile_context>
chip_gen: v7x
topology: tpu7x:2x2x1
jax: 0.10.0
libtpu: 0.0.40
codegen_flags: <defaults>
</compile_context>

<pallas_src>
import functools

import jax
import jax.numpy as jnp
from jax import lax
from jax.experimental import pallas as pl
from jax.experimental.pallas import tpu as pltpu

GROUPS = 32          # nn.GroupNorm(32, C)
EPS = 1e-5           # PyTorch GroupNorm default eps
LANE = 128           # TPU vreg lane width
DATA_OFF = 8         # column offset of the real data inside the W-padded conv scratch


def _round_up(v, m):
    return (v + m - 1) // m * m


# ---------------------------------------------------------------------------
# Fused IBC kernel: one grid step = `b_tile` batch images, full spatial extent.
# ---------------------------------------------------------------------------
def _ibc_kernel(*refs, identity_skip, gsz_in, gsz_out, mm_dtype):
    it = iter(refs)
    x_ref = next(it)
    g1_ref, b1_ref = next(it), next(it)
    p1_ref = next(it) if gsz_in > 1 else None
    w1_ref, c1_ref = next(it), next(it)
    g2_ref, b2_ref = next(it), next(it)
    p2_ref = next(it) if gsz_out > 1 else None
    w2_ref, c2_ref = next(it), next(it)
    g3_ref, b3_ref = next(it), next(it)
    w3_ref, c3_ref = next(it), next(it)
    ws_ref, bs_ref = ((None, None) if identity_skip else (next(it), next(it)))
    out_ref = next(it)
    pad_ref = next(it)                       # (B, H+2, WS, CP) f32 conv scratch

    B, H, W, CP = x_ref.shape
    HW = H * W
    M = B * HW
    WS = pad_ref.shape[2]
    C0 = DATA_OFF
    inv_hw = 1.0 / float(HW)

    # Zero only the halo of the scratch (aligned, unmasked stores).  The data interior is
    # fully overwritten by every stage, so it never needs re-zeroing.  Done every grid step
    # so the "parallel" batch axis stays correct when sharded across TensorCores.
    pad_ref[:, :, 0:C0, :] = jnp.zeros((B, H + 2, C0, CP), jnp.float32)
    pad_ref[:, :, C0 + W:WS, :] = jnp.zeros((B, H + 2, WS - C0 - W, CP), jnp.float32)
    zrow = jnp.zeros((B, 1, W, CP), jnp.float32)
    pad_ref[:, 0:1, C0:C0 + W, :] = zrow
    pad_ref[:, H + 1:H + 2, C0:C0 + W, :] = zrow

    def gn_silu(v, gamma_ref, beta_ref, p_ref, gsz):
        """Per-sample GroupNorm(32) + SiLU on (B, HW, CP); all statistics in f32."""
        s = jnp.sum(v, axis=1)                               # (B, CP)
        sq = jnp.sum(v * v, axis=1)                          # (B, CP)
        if gsz == 1:                                         # one channel per group
            mean = s * inv_hw
            m2 = sq * inv_hw
        else:                                                # group aggregation as one matmul
            pm = p_ref[...]                                  # (CP, CP): 1/(HW*gsz) same-group
            mean = jnp.dot(s, pm, preferred_element_type=jnp.float32)
            m2 = jnp.dot(sq, pm, preferred_element_type=jnp.float32)
        var = jnp.maximum(m2 - mean * mean, 0.0)             # guard E[x^2]-E[x]^2 cancellation
        inv = lax.rsqrt(var + EPS)
        scale = inv * gamma_ref[...]                         # (B, CP)
        shift = beta_ref[...] - mean * scale
        y = v * scale[:, None, :] + shift[:, None, :]
        return y * jax.nn.sigmoid(y)                         # SiLU

    def conv3x3(a, w_ref, bias_ref):
        """3x3 SAME conv: one aligned store into the zero-bordered scratch, then 9
        shifted-view (M, CP)@(CP, CP) MXU matmuls with f32 accumulation."""
        pad_ref[:, 1:H + 1, C0:C0 + W, :] = a.reshape(B, H, W, CP)
        acc = jnp.broadcast_to(bias_ref[...], (M, CP))       # start from the bias
        for ky in range(3):
            for kx in range(3):
                c0 = C0 + kx - 1
                tap = pad_ref[:, ky:ky + H, c0:c0 + W, :].reshape(M, CP)
                acc = acc + jnp.dot(tap.astype(mm_dtype), w_ref[ky * 3 + kx],
                                    preferred_element_type=jnp.float32)
        return acc.reshape(B, HW, CP)

    x = x_ref[...].reshape(B, HW, CP)

    # in_layers : GN(Cin)  -> SiLU -> Conv3x3(Cin -> Cout)
    h1 = conv3x3(gn_silu(x, g1_ref, b1_ref, p1_ref, gsz_in), w1_ref, c1_ref)
    # mid_layers: GN(Cout) -> SiLU -> Conv3x3
    h2 = conv3x3(gn_silu(h1, g2_ref, b2_ref, p2_ref, gsz_out), w2_ref, c2_ref)
    # out_layers: GN(Cout) of (h2 + h1) -> SiLU -> Conv3x3
    h3 = conv3x3(gn_silu(h2 + h1, g3_ref, b3_ref, p2_ref, gsz_out), w3_ref, c3_ref)

    # Skip connection.
    if identity_skip:
        res = h3 + x
    else:
        skip = (jnp.dot(x.reshape(M, CP).astype(mm_dtype), ws_ref[...],
                        preferred_element_type=jnp.float32) + bs_ref[...])
        res = h3 + skip.reshape(B, HW, CP)

    out_ref[...] = res.astype(out_ref.dtype)                 # lane-dense (B, HW, 128) store


# ---------------------------------------------------------------------------
# Wrapper: NCHW in / NCHW out, parameter padding to 128 lanes, one pallas_call.
# ---------------------------------------------------------------------------
def _group_mat(C, CP, hw):
    """(CP, CP) matrix: 1/(hw*group_size) on same-group entries of the real C channels."""
    gsz = C // GROUPS
    idx = jnp.arange(CP)
    gid = idx // gsz
    valid = idx < C
    same = (gid[:, None] == gid[None, :]) & valid[:, None] & valid[None, :]
    return same.astype(jnp.float32) / float(hw * gsz)


def _pick_b_tile(n, hw, h, ws, cp, mm_bytes):
    """Batch images per grid step: target ~256 matmul rows (fills a v6e MXU pass) while
    keeping >= 2 grid steps so both v7x TensorCores get work, under a crude VMEM cap."""
    bt = max(1, min(max(1, 256 // hw), n))
    while bt > 1 and (n % bt != 0 or n // bt < 2):
        bt -= 1

    def vmem_bytes(b):
        m = b * hw
        return (b * (h + 2) * ws * cp * 4          # conv scratch
                + 6 * m * cp * 4                   # live f32 activations (x, h1..h3, temps)
                + 4 * b * hw * cp * 4              # double-buffered input / output blocks
                + 28 * cp * cp * mm_bytes)         # resident conv / skip weights

    while bt > 1 and vmem_bytes(bt) > 20 * 1024 * 1024:   # v7x: 64 MiB VMEM, 32 MiB scoped
        bt = max(1, bt // 2)
    while n % bt:
        bt -= 1
    return bt


def ibc_forward(x_nchw, p, *, mm_dtype=jnp.bfloat16, b_tile=None):
    """Fused IBC forward: (N, Cin, H, W) -> (N, Cout, H, W)."""
    x = jnp.transpose(x_nchw, (0, 2, 3, 1)).astype(jnp.float32)      # NCHW -> NHWC
    N, H, W, Cin = x.shape
    Cout = p["w1"].shape[-1]
    assert Cin % GROUPS == 0 and Cout % GROUPS == 0
    identity_skip = (Cin == Cout)
    HW = H * W
    CP = _round_up(max(Cin, Cout), LANE)                    # lane-dense channel padding
    WS = DATA_OFF + _round_up(W + 1, 8)                     # scratch width: aligned data+halo
    mm_bytes = 2 if mm_dtype == jnp.bfloat16 else 4
    if b_tile is None:
        b_tile = _pick_b_tile(N, HW, H, WS, CP, mm_bytes)
    assert N % b_tile == 0

    xp = jnp.pad(x, ((0, 0), (0, 0), (0, 0), (0, CP - Cin)))

    def pvec(v):                                            # (C,) -> f32 (1, CP)
        v = jnp.asarray(v, jnp.float32).reshape(-1)
        return jnp.pad(v, (0, CP - v.shape[0])).reshape(1, CP)

    def pconv(w):                                           # (3,3,ci,co) -> mm_dtype (9,CP,CP)
        kh, kw, ci, co = w.shape
        w9 = jnp.asarray(w, jnp.float32).reshape(kh * kw, ci, co)
        return jnp.pad(w9, ((0, 0), (0, CP - ci), (0, CP - co))).astype(mm_dtype)

    gsz_in, gsz_out = Cin // GROUPS, Cout // GROUPS

    operands = [xp]
    in_specs = [pl.BlockSpec((b_tile, H, W, CP), lambda n: (n, 0, 0, 0))]

    def add_const(arr):
        operands.append(arr)
        in_specs.append(pl.BlockSpec(arr.shape, lambda n, _nd=arr.ndim: (0,) * _nd))

    add_const(pvec(p["gn1_g"])); add_const(pvec(p["gn1_b"]))
    if gsz_in > 1:
        add_const(_group_mat(Cin, CP, HW))
    add_const(pconv(p["w1"])); add_const(pvec(p["b1"]))
    add_const(pvec(p["gn2_g"])); add_const(pvec(p["gn2_b"]))
    if gsz_out > 1:
        add_const(_group_mat(Cout, CP, HW))
    add_const(pconv(p["w2"])); add_const(pvec(p["b2"]))
    add_const(pvec(p["gn3_g"])); add_const(pvec(p["gn3_b"]))
    add_const(pconv(p["w3"])); add_const(pvec(p["b3"]))
    if not identity_skip:
        ws = jnp.pad(jnp.asarray(p["ws"], jnp.float32),
                     ((0, CP - Cin), (0, CP - Cout))).astype(mm_dtype)
        add_const(ws); add_const(pvec(p["bs"]))

    kernel = functools.partial(
        _ibc_kernel, identity_skip=identity_skip,
        gsz_in=gsz_in, gsz_out=gsz_out, mm_dtype=mm_dtype)

    out = pl.pallas_call(
        kernel,
        out_shape=jax.ShapeDtypeStruct((N, HW, CP), jnp.float32),
        grid=(N // b_tile,),
        in_specs=in_specs,
        out_specs=pl.BlockSpec((b_tile, HW, CP), lambda n: (n, 0, 0)),
        scratch_shapes=[pltpu.VMEM((b_tile, H + 2, WS, CP), jnp.float32)],
        compiler_params=pltpu.CompilerParams(
            dimension_semantics=("parallel",)),             # batch tiles -> both v7x TCs
    )(*operands)

    out = out[:, :, :Cout].reshape(N, H, W, Cout)
    return jnp.transpose(out, (0, 3, 1, 2))                 # NHWC -> NCHW


# ---------------------------------------------------------------------------
# Parameters (deterministic synthetic init)
# ---------------------------------------------------------------------------
def init_ibc_params(key, cin, cout):
    ks = jax.random.split(key, 16)

    def conv_w(k, kh, kw, ci, co):
        return (jax.random.normal(k, (kh, kw, ci, co), jnp.float32)
                / jnp.sqrt(float(kh * kw * ci)))

    p = {}
    p["gn1_g"] = 1.0 + 0.1 * jax.random.normal(ks[0], (cin,), jnp.float32)
    p["gn1_b"] = 0.1 * jax.random.normal(ks[1], (cin,), jnp.float32)
    p["w1"] = conv_w(ks[2], 3, 3, cin, cout)
    p["b1"] = 0.1 * jax.random.normal(ks[3], (cout,), jnp.float32)

    p["gn2_g"] = 1.0 + 0.1 * jax.random.normal(ks[4], (cout,), jnp.float32)
    p["gn2_b"] = 0.1 * jax.random.normal(ks[5], (cout,), jnp.float32)
    p["w2"] = conv_w(ks[6], 3, 3, cout, cout)
    p["b2"] = 0.1 * jax.random.normal(ks[7], (cout,), jnp.float32)

    p["gn3_g"] = 1.0 + 0.1 * jax.random.normal(ks[8], (cout,), jnp.float32)
    p["gn3_b"] = 0.1 * jax.random.normal(ks[9], (cout,), jnp.float32)
    p["w3"] = conv_w(ks[10], 3, 3, cout, cout)
    p["b3"] = 0.1 * jax.random.normal(ks[11], (cout,), jnp.float32)

    if cin != cout:  # skip = Conv2d(cin, cout, 1); nn.Identity otherwise (no params)
        p["ws"] = conv_w(ks[12], 1, 1, cin, cout).reshape(cin, cout)
        p["bs"] = 0.1 * jax.random.normal(ks[13], (cout,), jnp.float32)
    return p


# ---------------------------------------------------------------------------
# Pure-JAX reference (same math, XLA ops) for the correctness check
# ---------------------------------------------------------------------------
def _gn_ref(x, gamma, beta):
    N, H, W, C = x.shape
    g = C // GROUPS
    xr = x.reshape(N, H, W, GROUPS, g)
    mean = xr.mean(axis=(1, 2, 4), keepdims=True)
    var = ((xr - mean) ** 2).mean(axis=(1, 2, 4), keepdims=True)
    xn = ((xr - mean) * lax.rsqrt(var + EPS)).reshape(N, H, W, C)
    return xn * gamma + beta


def _conv3x3_ref(x, w, b):
    return lax.conv_general_dilated(
        x, w, (1, 1), "SAME", dimension_numbers=("NHWC", "HWIO", "NHWC"),
        precision=lax.Precision.HIGHEST) + b


def ibc_ref(x_nchw, p):
    x = jnp.transpose(x_nchw, (0, 2, 3, 1)).astype(jnp.float32)
    h1 = _conv3x3_ref(jax.nn.silu(_gn_ref(x, p["gn1_g"], p["gn1_b"])), p["w1"], p["b1"])
    h2 = _conv3x3_ref(jax.nn.silu(_gn_ref(h1, p["gn2_g"], p["gn2_b"])), p["w2"], p["b2"])
    h3 = _conv3x3_ref(jax.nn.silu(_gn_ref(h2 + h1, p["gn3_g"], p["gn3_b"])), p["w3"], p["b3"])
    if "ws" in p:
        skip = jnp.einsum("nhwc,cd->nhwd", x, p["ws"],
                          precision=lax.Precision.HIGHEST) + p["bs"]
    else:
        skip = x
    return jnp.transpose(h3 + skip, (0, 3, 1, 2))


if __name__ == "__main__":
    key = jax.random.PRNGKey(0)
    k_x, k_p = jax.random.split(key)

    # GroupNorm(32, C) requires C % 32 == 0.
    N, Cin, Cout, H, W = 2, 32, 64, 8, 8
    x = jax.random.normal(k_x, (N, Cin, H, W), jnp.float32)         # PyTorch NCHW input
    params = init_ibc_params(k_p, Cin, Cout)

    ref = jax.block_until_ready(ibc_ref(x, params))

    # Exactness gate: f32 MXU operands, tight tolerance.
    out_f32 = jax.block_until_ready(ibc_forward(x, params, mm_dtype=jnp.float32))
    assert out_f32.shape == (N, Cout, H, W), out_f32.shape
    err_f32 = float(jnp.max(jnp.abs(out_f32 - ref)))
    assert err_f32 < 2e-2, f"f32 path max abs err {err_f32}"

    # Default perf path: bf16 MXU operands with f32 accumulation; compared against the f32
    # reference so the tolerance is loosened to cover bf16 operand rounding only.
    out_bf16 = jax.block_until_ready(ibc_forward(x, params))
    assert out_bf16.shape == (N, Cout, H, W), out_bf16.shape
    err_bf16 = float(jnp.max(jnp.abs(out_bf16 - ref)))
    assert err_bf16 < 1.5e-1, f"bf16 path max abs err {err_bf16}"

    print("KERNEL_OK")
</pallas_src>

<mosaic_0001>
module attributes {stable_mosaic.version = 11 : i64} {
  func.func @_ibc_kernel(%arg0: i32, %arg1: memref<1x8x8x128xf32, #tpu.memory_space<vmem>>, %arg2: memref<1x128xf32, #tpu.memory_space<vmem>>, %arg3: memref<1x128xf32, #tpu.memory_space<vmem>>, %arg4: memref<9x128x128xf32, #tpu.memory_space<vmem>>, %arg5: memref<1x128xf32, #tpu.memory_space<vmem>>, %arg6: memref<1x128xf32, #tpu.memory_space<vmem>>, %arg7: memref<1x128xf32, #tpu.memory_space<vmem>>, %arg8: memref<128x128xf32, #tpu.memory_space<vmem>>, %arg9: memref<9x128x128xf32, #tpu.memory_space<vmem>>, %arg10: memref<1x128xf32, #tpu.memory_space<vmem>>, %arg11: memref<1x128xf32, #tpu.memory_space<vmem>>, %arg12: memref<1x128xf32, #tpu.memory_space<vmem>>, %arg13: memref<9x128x128xf32, #tpu.memory_space<vmem>>, %arg14: memref<1x128xf32, #tpu.memory_space<vmem>>, %arg15: memref<128x128xf32, #tpu.memory_space<vmem>>, %arg16: memref<1x128xf32, #tpu.memory_space<vmem>>, %arg17: memref<1x64x128xf32, #tpu.memory_space<vmem>>, %arg18: memref<1x10x24x128xf32, #tpu.memory_space<vmem>>) attributes {dimension_semantics = [#tpu.dimension_semantics<parallel>], iteration_bounds = array<i64: 2>, scalar_prefetch = 0 : i64, scratch_operands = 1 : i64, tpu.core_type = #tpu.core_type<tc>, window_params = [{transform_indices = @transform_0, window_bounds = array<i64: 1, 8, 8, 128>}, {pipeline_mode = #tpu.pipeline_mode<synchronous>, transform_indices = @transform_1, window_bounds = array<i64: 1, 128>}, {pipeline_mode = #tpu.pipeline_mode<synchronous>, transform_indices = @transform_2, window_bounds = array<i64: 1, 128>}, {pipeline_mode = #tpu.pipeline_mode<synchronous>, transform_indices = @transform_3, window_bounds = array<i64: 9, 128, 128>}, {pipeline_mode = #tpu.pipeline_mode<synchronous>, transform_indices = @transform_4, window_bounds = array<i64: 1, 128>}, {pipeline_mode = #tpu.pipeline_mode<synchronous>, transform_indices = @transform_5, window_bounds = array<i64: 1, 128>}, {pipeline_mode = #tpu.pipeline_mode<synchronous>, transform_indices = @transform_6, window_bounds = array<i64: 1, 128>}, {pipeline_mode = #tpu.pipeline_mode<synchronous>, transform_indices = @transform_7, window_bounds = array<i64: 128, 128>}, {pipeline_mode = #tpu.pipeline_mode<synchronous>, transform_indices = @transform_8, window_bounds = array<i64: 9, 128, 128>}, {pipeline_mode = #tpu.pipeline_mode<synchronous>, transform_indices = @transform_9, window_bounds = array<i64: 1, 128>}, {pipeline_mode = #tpu.pipeline_mode<synchronous>, transform_indices = @transform_10, window_bounds = array<i64: 1, 128>}, {pipeline_mode = #tpu.pipeline_mode<synchronous>, transform_indices = @transform_11, window_bounds = array<i64: 1, 128>}, {pipeline_mode = #tpu.pipeline_mode<synchronous>, transform_indices = @transform_12, window_bounds = array<i64: 9, 128, 128>}, {pipeline_mode = #tpu.pipeline_mode<synchronous>, transform_indices = @transform_13, window_bounds = array<i64: 1, 128>}, {pipeline_mode = #tpu.pipeline_mode<synchronous>, transform_indices = @transform_14, window_bounds = array<i64: 128, 128>}, {pipeline_mode = #tpu.pipeline_mode<synchronous>, transform_indices = @transform_15, window_bounds = array<i64: 1, 128>}, {transform_indices = @transform_16, window_bounds = array<i64: 1, 64, 128>}]} {
    %cst = arith.constant 0.000000e+00 : f32
    %0 = vector.broadcast %cst : f32 to vector<1x10x8x128xf32>
    %c0 = arith.constant 0 : index
    %c0_0 = arith.constant 0 : index
    %c0_1 = arith.constant 0 : index
    %c0_2 = arith.constant 0 : index
    %1 = vector.load %arg18[%c0, %c0_0, %c0_1, %c0_2] : memref<1x10x24x128xf32, #tpu.memory_space<vmem>>, vector<1x10x8x128xf32>
    tpu.vector_store %arg18[%c0, %c0_0, %c0_1, %c0_2], %0 {strides = array<i32>} : memref<1x10x24x128xf32, #tpu.memory_space<vmem>>, vector<1x10x8x128xf32>,
    %cst_3 = arith.constant 0.000000e+00 : f32
    %2 = vector.broadcast %cst_3 : f32 to vector<1x10x8x128xf32>
    %c0_4 = arith.constant 0 : index
    %c0_5 = arith.constant 0 : index
    %c16 = arith.constant 16 : index
    %c0_6 = arith.constant 0 : index
    %3 = vector.load %arg18[%c0_4, %c0_5, %c16, %c0_6] : memref<1x10x24x128xf32, #tpu.memory_space<vmem>>, vector<1x10x8x128xf32>
    tpu.vector_store %arg18[%c0_4, %c0_5, %c16, %c0_6], %2 {strides = array<i32>} : memref<1x10x24x128xf32, #tpu.memory_space<vmem>>, vector<1x10x8x128xf32>,
    %cst_7 = arith.constant 0.000000e+00 : f32
    %4 = vector.broadcast %cst_7 : f32 to vector<1x1x8x128xf32>
    %c0_8 = arith.constant 0 : index
    %c0_9 = arith.constant 0 : index
    %c8 = arith.constant 8 : index
    %c0_10 = arith.constant 0 : index
    %5 = vector.load %arg18[%c0_8, %c0_9, %c8, %c0_10] : memref<1x10x24x128xf32, #tpu.memory_space<vmem>>, vector<1x1x8x128xf32>
    tpu.vector_store %arg18[%c0_8, %c0_9, %c8, %c0_10], %4 {strides = array<i32>} : memref<1x10x24x128xf32, #tpu.memory_space<vmem>>, vector<1x1x8x128xf32>,
    %c0_11 = arith.constant 0 : index
    %c9 = arith.constant 9 : index
    %c8_12 = arith.constant 8 : index
    %c0_13 = arith.constant 0 : index
    %6 = vector.load %arg18[%c0_11, %c9, %c8_12, %c0_13] : memref<1x10x24x128xf32, #tpu.memory_space<vmem>>, vector<1x1x8x128xf32>
    tpu.vector_store %arg18[%c0_11, %c9, %c8_12, %c0_13], %4 {strides = array<i32>} : memref<1x10x24x128xf32, #tpu.memory_space<vmem>>, vector<1x1x8x128xf32>,
    %c0_14 = arith.constant 0 : index
    %c0_15 = arith.constant 0 : index
    %c0_16 = arith.constant 0 : index
    %c0_17 = arith.constant 0 : index
    %7 = vector.load %arg1[%c0_14, %c0_15, %c0_16, %c0_17] : memref<1x8x8x128xf32, #tpu.memory_space<vmem>>, vector<1x8x8x128xf32>
    %8 = vector.shape_cast %7 : vector<1x8x8x128xf32> to vector<1x64x128xf32>
    %cst_18 = arith.constant dense<0.000000e+00> : vector<1x128xf32>
    %9 = vector.multi_reduction <add>, %8, %cst_18 [1] : vector<1x64x128xf32> to vector<1x128xf32>
    %10 = arith.mulf %8, %8 : vector<1x64x128xf32>
    %cst_19 = arith.constant dense<0.000000e+00> : vector<1x128xf32>
    %11 = vector.multi_reduction <add>, %10, %cst_19 [1] : vector<1x64x128xf32> to vector<1x128xf32>
    %cst_20 = arith.constant 1.562500e-02 : f32
    %12 = vector.broadcast %cst_20 : f32 to vector<1x128xf32>
    %13 = arith.mulf %9, %12 : vector<1x128xf32>
    %cst_21 = arith.constant 1.562500e-02 : f32
    %14 = vector.broadcast %cst_21 : f32 to vector<1x128xf32>
    %15 = arith.mulf %11, %14 : vector<1x128xf32>
    %16 = arith.mulf %13, %13 : vector<1x128xf32>
    %17 = arith.subf %15, %16 : vector<1x128xf32>
    %cst_22 = arith.constant 0.000000e+00 : f32
    %18 = vector.broadcast %cst_22 : f32 to vector<1x128xf32>
    %19 = arith.maximumf %17, %18 : vector<1x128xf32>
    %cst_23 = arith.constant 9.99999974E-6 : f32
    %20 = vector.broadcast %cst_23 : f32 to vector<1x128xf32>
    %21 = arith.addf %19, %20 : vector<1x128xf32>
    %22 = math.rsqrt %21 : vector<1x128xf32>
    %c0_24 = arith.constant 0 : index
    %c0_25 = arith.constant 0 : index
    %23 = vector.load %arg2[%c0_24, %c0_25] : memref<1x128xf32, #tpu.memory_space<vmem>>, vector<1x128xf32>
    %24 = arith.mulf %22, %23 : vector<1x128xf32>
    %c0_26 = arith.constant 0 : index
    %c0_27 = arith.constant 0 : index
    %25 = vector.load %arg3[%c0_26, %c0_27] : memref<1x128xf32, #tpu.memory_space<vmem>>, vector<1x128xf32>
    %26 = arith.mulf %13, %24 : vector<1x128xf32>
    %27 = arith.subf %25, %26 : vector<1x128xf32>
    %28 = vector.shape_cast %24 : vector<1x128xf32> to vector<1x1x128xf32>
    %29 = vector.broadcast %28 : vector<1x1x128xf32> to vector<1x64x128xf32>
    %30 = arith.mulf %8, %29 : vector<1x64x128xf32>
    %31 = vector.shape_cast %27 : vector<1x128xf32> to vector<1x1x128xf32>
    %32 = vector.broadcast %31 : vector<1x1x128xf32> to vector<1x64x128xf32>
    %33 = arith.addf %30, %32 : vector<1x64x128xf32>
    %34 = arith.negf %33 : vector<1x64x128xf32>
    %35 = math.exp %34 : vector<1x64x128xf32>
    %cst_28 = arith.constant 1.000000e+00 : f32
    %36 = vector.broadcast %cst_28 : f32 to vector<1x64x128xf32>
    %37 = arith.addf %36, %35 : vector<1x64x128xf32>
    %38 = arith.divf %36, %37 : vector<1x64x128xf32>
    %39 = arith.mulf %33, %38 : vector<1x64x128xf32>
    %40 = vector.shape_cast %39 : vector<1x64x128xf32> to vector<1x8x8x128xf32>
    %c0_29 = arith.constant 0 : index
    %c1 = arith.constant 1 : index
    %c8_30 = arith.constant 8 : index
    %c0_31 = arith.constant 0 : index
    %41 = vector.load %arg18[%c0_29, %c1, %c8_30, %c0_31] : memref<1x10x24x128xf32, #tpu.memory_space<vmem>>, vector<1x8x8x128xf32>
    tpu.vector_store %arg18[%c0_29, %c1, %c8_30, %c0_31], %40 {strides = array<i32>} : memref<1x10x24x128xf32, #tpu.memory_space<vmem>>, vector<1x8x8x128xf32>,
    %c0_32 = arith.constant 0 : index
    %c0_33 = arith.constant 0 : index
    %42 = vector.load %arg5[%c0_32, %c0_33] : memref<1x128xf32, #tpu.memory_space<vmem>>, vector<1x128xf32>
    %43 = vector.shape_cast %42 : vector<1x128xf32> to vector<1x128xf32>
    %44 = vector.broadcast %43 : vector<1x128xf32> to vector<64x128xf32>
    %c0_34 = arith.constant 0 : index
    %c0_35 = arith.constant 0 : index
    %c7 = arith.constant 7 : index
    %c0_36 = arith.constant 0 : index
    %45 = vector.load %arg18[%c0_34, %c0_35, %c7, %c0_36] : memref<1x10x24x128xf32, #tpu.memory_space<vmem>>, vector<1x8x8x128xf32>
    %46 = vector.shape_cast %45 : vector<1x8x8x128xf32> to vector<64x128xf32>
    %c0_37 = arith.constant 0 : index
    %c0_38 = arith.constant 0 : index
    %c0_39 = arith.constant 0 : index
    %47 = vector.load %arg4[%c0_37, %c0_38, %c0_39] : memref<9x128x128xf32, #tpu.memory_space<vmem>>, vector<1x128x128xf32>
    %48 = vector.shape_cast %47 : vector<1x128x128xf32> to vector<128x128xf32>
    %cst_40 = arith.constant dense<0.000000e+00> : vector<64x128xf32>
    %49 = tpu.matmul %46, %48, %cst_40 {dimension_numbers = #tpu.dot_dimension_numbers<[1], [0], [0], [1], [0, 0, 1, 1], [], []>} : vector<64x128xf32>, vector<128x128xf32>, vector<64x128xf32> -> vector<64x128xf32>
    %50 = arith.addf %44, %49 : vector<64x128xf32>
    %c0_41 = arith.constant 0 : index
    %c0_42 = arith.constant 0 : index
    %c8_43 = arith.constant 8 : index
    %c0_44 = arith.constant 0 : index
    %51 = vector.load %arg18[%c0_41, %c0_42, %c8_43, %c0_44] : memref<1x10x24x128xf32, #tpu.memory_space<vmem>>, vector<1x8x8x128xf32>
    %52 = vector.shape_cast %51 : vector<1x8x8x128xf32> to vector<64x128xf32>
    %c1_45 = arith.constant 1 : index
    %c0_46 = arith.constant 0 : index
    %c0_47 = arith.constant 0 : index
    %53 = vector.load %arg4[%c1_45, %c0_46, %c0_47] : memref<9x128x128xf32, #tpu.memory_space<vmem>>, vector<1x128x128xf32>
    %54 = vector.shape_cast %53 : vector<1x128x128xf32> to vector<128x128xf32>
    %cst_48 = arith.constant dense<0.000000e+00> : vector<64x128xf32>
    %55 = tpu.matmul %52, %54, %cst_48 {dimension_numbers = #tpu.dot_dimension_numbers<[1], [0], [0], [1], [0, 0, 1, 1], [], []>} : vector<64x128xf32>, vector<128x128xf32>, vector<64x128xf32> -> vector<64x128xf32>
    %56 = arith.addf %50, %55 : vector<64x128xf32>
    %c0_49 = arith.constant 0 : index
    %c0_50 = arith.constant 0 : index
    %c9_51 = arith.constant 9 : index
    %c0_52 = arith.constant 0 : index
    %57 = vector.load %arg18[%c0_49, %c0_50, %c9_51, %c0_52] : memref<1x10x24x128xf32, #tpu.memory_space<vmem>>, vector<1x8x8x128xf32>
    %58 = vector.shape_cast %57 : vector<1x8x8x128xf32> to vector<64x128xf32>
    %c2 = arith.constant 2 : index
    %c0_53 = arith.constant 0 : index
    %c0_54 = arith.constant 0 : index
    %59 = vector.load %arg4[%c2, %c0_53, %c0_54] : memref<9x128x128xf32, #tpu.memory_space<vmem>>, vector<1x128x128xf32>
    %60 = vector.shape_cast %59 : vector<1x128x128xf32> to vector<128x128xf32>
    %cst_55 = arith.constant dense<0.000000e+00> : vector<64x128xf32>
    %61 = tpu.matmul %58, %60, %cst_55 {dimension_numbers = #tpu.dot_dimension_numbers<[1], [0], [0], [1], [0, 0, 1, 1], [], []>} : vector<64x128xf32>, vector<128x128xf32>, vector<64x128xf32> -> vector<64x128xf32>
    %62 = arith.addf %56, %61 : vector<64x128xf32>
    %c0_56 = arith.constant 0 : index
    %c1_57 = arith.constant 1 : index
    %c7_58 = arith.constant 7 : index
    %c0_59 = arith.constant 0 : index
    %63 = vector.load %arg18[%c0_56, %c1_57, %c7_58, %c0_59] : memref<1x10x24x128xf32, #tpu.memory_space<vmem>>, vector<1x8x8x128xf32>
    %64 = vector.shape_cast %63 : vector<1x8x8x128xf32> to vector<64x128xf32>
    %c3 = arith.constant 3 : index
    %c0_60 = arith.constant 0 : index
    %c0_61 = arith.constant 0 : index
    %65 = vector.load %arg4[%c3, %c0_60, %c0_61] : memref<9x128x128xf32, #tpu.memory_space<vmem>>, vector<1x128x128xf32>
    %66 = vector.shape_cast %65 : vector<1x128x128xf32> to vector<128x128xf32>
    %cst_62 = arith.constant dense<0.000000e+00> : vector<64x128xf32>
    %67 = tpu.matmul %64, %66, %cst_62 {dimension_numbers = #tpu.dot_dimension_numbers<[1], [0], [0], [1], [0, 0, 1, 1], [], []>} : vector<64x128xf32>, vector<128x128xf32>, vector<64x128xf32> -> vector<64x128xf32>
    %68 = arith.addf %62, %67 : vector<64x128xf32>
    %c0_63 = arith.constant 0 : index
    %c1_64 = arith.constant 1 : index
    %c8_65 = arith.constant 8 : index
    %c0_66 = arith.constant 0 : index
    %69 = vector.load %arg18[%c0_63, %c1_64, %c8_65, %c0_66] : memref<1x10x24x128xf32, #tpu.memory_space<vmem>>, vector<1x8x8x128xf32>
    %70 = vector.shape_cast %69 : vector<1x8x8x128xf32> to vector<64x128xf32>
    %c4 = arith.constant 4 : index
    %c0_67 = arith.constant 0 : index
    %c0_68 = arith.constant 0 : index
    %71 = vector.load %arg4[%c4, %c0_67, %c0_68] : memref<9x128x128xf32, #tpu.memory_space<vmem>>, vector<1x128x128xf32>
    %72 = vector.shape_cast %71 : vector<1x128x128xf32> to vector<128x128xf32>
    %cst_69 = arith.constant dense<0.000000e+00> : vector<64x128xf32>
    %73 = tpu.matmul %70, %72, %cst_69 {dimension_numbers = #tpu.dot_dimension_numbers<[1], [0], [0], [1], [0, 0, 1, 1], [], []>} : vector<64x128xf32>, vector<128x128xf32>, vector<64x128xf32> -> vector<64x128xf32>
    %74 = arith.addf %68, %73 : vector<64x128xf32>
    %c0_70 = arith.constant 0 : index
    %c1_71 = arith.constant 1 : index
    %c9_72 = arith.constant 9 : index
    %c0_73 = arith.constant 0 : index
    %75 = vector.load %arg18[%c0_70, %c1_71, %c9_72, %c0_73] : memref<1x10x24x128xf32, #tpu.memory_space<vmem>>, vector<1x8x8x128xf32>
    %76 = vector.shape_cast %75 : vector<1x8x8x128xf32> to vector<64x128xf32>
    %c5 = arith.constant 5 : index
    %c0_74 = arith.constant 0 : index
    %c0_75 = arith.constant 0 : index
    %77 = vector.load %arg4[%c5, %c0_74, %c0_75] : memref<9x128x128xf32, #tpu.memory_space<vmem>>, vector<1x128x128xf32>
    %78 = vector.shape_cast %77 : vector<1x128x128xf32> to vector<128x128xf32>
    %cst_76 = arith.constant dense<0.000000e+00> : vector<64x128xf32>
    %79 = tpu.matmul %76, %78, %cst_76 {dimension_numbers = #tpu.dot_dimension_numbers<[1], [0], [0], [1], [0, 0, 1, 1], [], []>} : vector<64x128xf32>, vector<128x128xf32>, vector<64x128xf32> -> vector<64x128xf32>
    %80 = arith.addf %74, %79 : vector<64x128xf32>
    %c0_77 = arith.constant 0 : index
    %c2_78 = arith.constant 2 : index
    %c7_79 = arith.constant 7 : index
    %c0_80 = arith.constant 0 : index
    %81 = vector.load %arg18[%c0_77, %c2_78, %c7_79, %c0_80] : memref<1x10x24x128xf32, #tpu.memory_space<vmem>>, vector<1x8x8x128xf32>
    %82 = vector.shape_cast %81 : vector<1x8x8x128xf32> to vector<64x128xf32>
    %c6 = arith.constant 6 : index
    %c0_81 = arith.constant 0 : index
    %c0_82 = arith.constant 0 : index
    %83 = vector.load %arg4[%c6, %c0_81, %c0_82] : memref<9x128x128xf32, #tpu.memory_space<vmem>>, vector<1x128x128xf32>
    %84 = vector.shape_cast %83 : vector<1x128x128xf32> to vector<128x128xf32>
    %cst_83 = arith.constant dense<0.000000e+00> : vector<64x128xf32>
    %85 = tpu.matmul %82, %84, %cst_83 {dimension_numbers = #tpu.dot_dimension_numbers<[1], [0], [0], [1], [0, 0, 1, 1], [], []>} : vector<64x128xf32>, vector<128x128xf32>, vector<64x128xf32> -> vector<64x128xf32>
    %86 = arith.addf %80, %85 : vector<64x128xf32>
    %c0_84 = arith.constant 0 : index
    %c2_85 = arith.constant 2 : index
    %c8_86 = arith.constant 8 : index
    %c0_87 = arith.constant 0 : index
    %87 = vector.load %arg18[%c0_84, %c2_85, %c8_86, %c0_87] : memref<1x10x24x128xf32, #tpu.memory_space<vmem>>, vector<1x8x8x128xf32>
    %88 = vector.shape_cast %87 : vector<1x8x8x128xf32> to vector<64x128xf32>
    %c7_88 = arith.constant 7 : index
    %c0_89 = arith.constant 0 : index
    %c0_90 = arith.constant 0 : index
    %89 = vector.load %arg4[%c7_88, %c0_89, %c0_90] : memref<9x128x128xf32, #tpu.memory_space<vmem>>, vector<1x128x128xf32>
    %90 = vector.shape_cast %89 : vector<1x128x128xf32> to vector<128x128xf32>
    %cst_91 = arith.constant dense<0.000000e+00> : vector<64x128xf32>
    %91 = tpu.matmul %88, %90, %cst_91 {dimension_numbers = #tpu.dot_dimension_numbers<[1], [0], [0], [1], [0, 0, 1, 1], [], []>} : vector<64x128xf32>, vector<128x128xf32>, vector<64x128xf32> -> vector<64x128xf32>
    %92 = arith.addf %86, %91 : vector<64x128xf32>
    %c0_92 = arith.constant 0 : index
    %c2_93 = arith.constant 2 : index
    %c9_94 = arith.constant 9 : index
    %c0_95 = arith.constant 0 : index
    %93 = vector.load %arg18[%c0_92, %c2_93, %c9_94, %c0_95] : memref<1x10x24x128xf32, #tpu.memory_space<vmem>>, vector<1x8x8x128xf32>
    %94 = vector.shape_cast %93 : vector<1x8x8x128xf32> to vector<64x128xf32>
    %c8_96 = arith.constant 8 : index
    %c0_97 = arith.constant 0 : index
    %c0_98 = arith.constant 0 : index
    %95 = vector.load %arg4[%c8_96, %c0_97, %c0_98] : memref<9x128x128xf32, #tpu.memory_space<vmem>>, vector<1x128x128xf32>
    %96 = vector.shape_cast %95 : vector<1x128x128xf32> to vector<128x128xf32>
    %cst_99 = arith.constant dense<0.000000e+00> : vector<64x128xf32>
    %97 = tpu.matmul %94, %96, %cst_99 {dimension_numbers = #tpu.dot_dimension_numbers<[1], [0], [0], [1], [0, 0, 1, 1], [], []>} : vector<64x128xf32>, vector<128x128xf32>, vector<64x128xf32> -> vector<64x128xf32>
    %98 = arith.addf %92, %97 : vector<64x128xf32>
    %99 = vector.shape_cast %98 : vector<64x128xf32> to vector<1x64x128xf32>
    %cst_100 = arith.constant dense<0.000000e+00> : vector<1x128xf32>
    %100 = vector.multi_reduction <add>, %99, %cst_100 [1] : vector<1x64x128xf32> to vector<1x128xf32>
    %101 = arith.mulf %99, %99 : vector<1x64x128xf32>
    %cst_101 = arith.constant dense<0.000000e+00> : vector<1x128xf32>
    %102 = vector.multi_reduction <add>, %101, %cst_101 [1] : vector<1x64x128xf32> to vector<1x128xf32>
    %c0_102 = arith.constant 0 : index
    %c0_103 = arith.constant 0 : index
    %103 = vector.load %arg8[%c0_102, %c0_103] : memref<128x128xf32, #tpu.memory_space<vmem>>, vector<128x128xf32>
    %cst_104 = arith.constant dense<0.000000e+00> : vector<1x128xf32>
    %104 = tpu.matmul %100, %103, %cst_104 {dimension_numbers = #tpu.dot_dimension_numbers<[1], [0], [0], [1], [0, 0, 1, 1], [], []>} : vector<1x128xf32>, vector<128x128xf32>, vector<1x128xf32> -> vector<1x128xf32>
    %cst_105 = arith.constant dense<0.000000e+00> : vector<1x128xf32>
    %105 = tpu.matmul %102, %103, %cst_105 {dimension_numbers = #tpu.dot_dimension_numbers<[1], [0], [0], [1], [0, 0, 1, 1], [], []>} : vector<1x128xf32>, vector<128x128xf32>, vector<1x128xf32> -> vector<1x128xf32>
    %106 = arith.mulf %104, %104 : vector<1x128xf32>
    %107 = arith.subf %105, %106 : vector<1x128xf32>
    %cst_106 = arith.constant 0.000000e+00 : f32
    %108 = vector.broadcast %cst_106 : f32 to vector<1x128xf32>
    %109 = arith.maximumf %107, %108 : vector<1x128xf32>
    %cst_107 = arith.constant 9.99999974E-6 : f32
    %110 = vector.broadcast %cst_107 : f32 to vector<1x128xf32>
    %111 = arith.addf %109, %110 : vector<1x128xf32>
    %112 = math.rsqrt %111 : vector<1x128xf32>
    %c0_108 = arith.constant 0 : index
    %c0_109 = arith.constant 0 : index
    %113 = vector.load %arg6[%c0_108, %c0_109] : memref<1x128xf32, #tpu.memory_space<vmem>>, vector<1x128xf32>
    %114 = arith.mulf %112, %113 : vector<1x128xf32>
    %c0_110 = arith.constant 0 : index
    %c0_111 = arith.constant 0 : index
    %115 = vector.load %arg7[%c0_110, %c0_111] : memref<1x128xf32, #tpu.memory_space<vmem>>, vector<1x128xf32>
    %116 = arith.mulf %104, %114 : vector<1x128xf32>
    %117 = arith.subf %115, %116 : vector<1x128xf32>
    %118 = vector.shape_cast %114 : vector<1x128xf32> to vector<1x1x128xf32>
    %119 = vector.broadcast %118 : vector<1x1x128xf32> to vector<1x64x128xf32>
    %120 = arith.mulf %99, %119 : vector<1x64x128xf32>
    %121 = vector.shape_cast %117 : vector<1x128xf32> to vector<1x1x128xf32>
    %122 = vector.broadcast %121 : vector<1x1x128xf32> to vector<1x64x128xf32>
    %123 = arith.addf %120, %122 : vector<1x64x128xf32>
    %124 = arith.negf %123 : vector<1x64x128xf32>
    %125 = math.exp %124 : vector<1x64x128xf32>
    %cst_112 = arith.constant 1.000000e+00 : f32
    %126 = vector.broadcast %cst_112 : f32 to vector<1x64x128xf32>
    %127 = arith.addf %126, %125 : vector<1x64x128xf32>
    %128 = arith.divf %126, %127 : vector<1x64x128xf32>
    %129 = arith.mulf %123, %128 : vector<1x64x128xf32>
    %130 = vector.shape_cast %129 : vector<1x64x128xf32> to vector<1x8x8x128xf32>
    %c0_113 = arith.constant 0 : index
    %c1_114 = arith.constant 1 : index
    %c8_115 = arith.constant 8 : index
    %c0_116 = arith.constant 0 : index
    %131 = vector.load %arg18[%c0_113, %c1_114, %c8_115, %c0_116] : memref<1x10x24x128xf32, #tpu.memory_space<vmem>>, vector<1x8x8x128xf32>
    tpu.vector_store %arg18[%c0_113, %c1_114, %c8_115, %c0_116], %130 {strides = array<i32>} : memref<1x10x24x128xf32, #tpu.memory_space<vmem>>, vector<1x8x8x128xf32>,
    %c0_117 = arith.constant 0 : index
    %c0_118 = arith.constant 0 : index
    %132 = vector.load %arg10[%c0_117, %c0_118] : memref<1x128xf32, #tpu.memory_space<vmem>>, vector<1x128xf32>
    %133 = vector.shape_cast %132 : vector<1x128xf32> to vector<1x128xf32>
    %134 = vector.broadcast %133 : vector<1x128xf32> to vector<64x128xf32>
    %c0_119 = arith.constant 0 : index
    %c0_120 = arith.constant 0 : index
    %c7_121 = arith.constant 7 : index
    %c0_122 = arith.constant 0 : index
    %135 = vector.load %arg18[%c0_119, %c0_120, %c7_121, %c0_122] : memref<1x10x24x128xf32, #tpu.memory_space<vmem>>, vector<1x8x8x128xf32>
    %136 = vector.shape_cast %135 : vector<1x8x8x128xf32> to vector<64x128xf32>
    %c0_123 = arith.constant 0 : index
    %c0_124 = arith.constant 0 : index
    %c0_125 = arith.constant 0 : index
    %137 = vector.load %arg9[%c0_123, %c0_124, %c0_125] : memref<9x128x128xf32, #tpu.memory_space<vmem>>, vector<1x128x128xf32>
    %138 = vector.shape_cast %137 : vector<1x128x128xf32> to vector<128x128xf32>
    %cst_126 = arith.constant dense<0.000000e+00> : vector<64x128xf32>
    %139 = tpu.matmul %136, %138, %cst_126 {dimension_numbers = #tpu.dot_dimension_numbers<[1], [0], [0], [1], [0, 0, 1, 1], [], []>} : vector<64x128xf32>, vector<128x128xf32>, vector<64x128xf32> -> vector<64x128xf32>
    %140 = arith.addf %134, %139 : vector<64x128xf32>
    %c0_127 = arith.constant 0 : index
    %c0_128 = arith.constant 0 : index
    %c8_129 = arith.constant 8 : index
    %c0_130 = arith.constant 0 : index
    %141 = vector.load %arg18[%c0_127, %c0_128, %c8_129, %c0_130] : memref<1x10x24x128xf32, #tpu.memory_space<vmem>>, vector<1x8x8x128xf32>
    %142 = vector.shape_cast %141 : vector<1x8x8x128xf32> to vector<64x128xf32>
    %c1_131 = arith.constant 1 : index
    %c0_132 = arith.constant 0 : index
    %c0_133 = arith.constant 0 : index
    %143 = vector.load %arg9[%c1_131, %c0_132, %c0_133] : memref<9x128x128xf32, #tpu.memory_space<vmem>>, vector<1x128x128xf32>
    %144 = vector.shape_cast %143 : vector<1x128x128xf32> to vector<128x128xf32>
    %cst_134 = arith.constant dense<0.000000e+00> : vector<64x128xf32>
    %145 = tpu.matmul %142, %144, %cst_134 {dimension_numbers = #tpu.dot_dimension_numbers<[1], [0], [0], [1], [0, 0, 1, 1], [], []>} : vector<64x128xf32>, vector<128x128xf32>, vector<64x128xf32> -> vector<64x128xf32>
    %146 = arith.addf %140, %145 : vector<64x128xf32>
    %c0_135 = arith.constant 0 : index
    %c0_136 = arith.constant 0 : index
    %c9_137 = arith.constant 9 : index
    %c0_138 = arith.constant 0 : index
    %147 = vector.load %arg18[%c0_135, %c0_136, %c9_137, %c0_138] : memref<1x10x24x128xf32, #tpu.memory_space<vmem>>, vector<1x8x8x128xf32>
    %148 = vector.shape_cast %147 : vector<1x8x8x128xf32> to vector<64x128xf32>
    %c2_139 = arith.constant 2 : index
    %c0_140 = arith.constant 0 : index
    %c0_141 = arith.constant 0 : index
    %149 = vector.load %arg9[%c2_139, %c0_140, %c0_141] : memref<9x128x128xf32, #tpu.memory_space<vmem>>, vector<1x128x128xf32>
    %150 = vector.shape_cast %149 : vector<1x128x128xf32> to vector<128x128xf32>
    %cst_142 = arith.constant dense<0.000000e+00> : vector<64x128xf32>
    %151 = tpu.matmul %148, %150, %cst_142 {dimension_numbers = #tpu.dot_dimension_numbers<[1], [0], [0], [1], [0, 0, 1, 1], [], []>} : vector<64x128xf32>, vector<128x128xf32>, vector<64x128xf32> -> vector<64x128xf32>
    %152 = arith.addf %146, %151 : vector<64x128xf32>
    %c0_143 = arith.constant 0 : index
    %c1_144 = arith.constant 1 : index
    %c7_145 = arith.constant 7 : index
    %c0_146 = arith.constant 0 : index
    %153 = vector.load %arg18[%c0_143, %c1_144, %c7_145, %c0_146] : memref<1x10x24x128xf32, #tpu.memory_space<vmem>>, vector<1x8x8x128xf32>
    %154 = vector.shape_cast %153 : vector<1x8x8x128xf32> to vector<64x128xf32>
    %c3_147 = arith.constant 3 : index
    %c0_148 = arith.constant 0 : index
    %c0_149 = arith.constant 0 : index
    %155 = vector.load %arg9[%c3_147, %c0_148, %c0_149] : memref<9x128x128xf32, #tpu.memory_space<vmem>>, vector<1x128x128xf32>
    %156 = vector.shape_cast %155 : vector<1x128x128xf32> to vector<128x128xf32>
    %cst_150 = arith.constant dense<0.000000e+00> : vector<64x128xf32>
    %157 = tpu.matmul %154, %156, %cst_150 {dimension_numbers = #tpu.dot_dimension_numbers<[1], [0], [0], [1], [0, 0, 1, 1], [], []>} : vector<64x128xf32>, vector<128x128xf32>, vector<64x128xf32> -> vector<64x128xf32>
    %158 = arith.addf %152, %157 : vector<64x128xf32>
    %c0_151 = arith.constant 0 : index
    %c1_152 = arith.constant 1 : index
    %c8_153 = arith.constant 8 : index
    %c0_154 = arith.constant 0 : index
    %159 = vector.load %arg18[%c0_151, %c1_152, %c8_153, %c0_154] : memref<1x10x24x128xf32, #tpu.memory_space<vmem>>, vector<1x8x8x128xf32>
    %160 = vector.shape_cast %159 : vector<1x8x8x128xf32> to vector<64x128xf32>
    %c4_155 = arith.constant 4 : index
    %c0_156 = arith.constant 0 : index
    %c0_157 = arith.constant 0 : index
    %161 = vector.load %arg9[%c4_155, %c0_156, %c0_157] : memref<9x128x128xf32, #tpu.memory_space<vmem>>, vector<1x128x128xf32>
    %162 = vector.shape_cast %161 : vector<1x128x128xf32> to vector<128x128xf32>
    %cst_158 = arith.constant dense<0.000000e+00> : vector<64x128xf32>
    %163 = tpu.matmul %160, %162, %cst_158 {dimension_numbers = #tpu.dot_dimension_numbers<[1], [0], [0], [1], [0, 0, 1, 1], [], []>} : vector<64x128xf32>, vector<128x128xf32>, vector<64x128xf32> -> vector<64x128xf32>
    %164 = arith.addf %158, %163 : vector<64x128xf32>
    %c0_159 = arith.constant 0 : index
    %c1_160 = arith.constant 1 : index
    %c9_161 = arith.constant 9 : index
    %c0_162 = arith.constant 0 : index
    %165 = vector.load %arg18[%c0_159, %c1_160, %c9_161, %c0_162] : memref<1x10x24x128xf32, #tpu.memory_space<vmem>>, vector<1x8x8x128xf32>
    %166 = vector.shape_cast %165 : vector<1x8x8x128xf32> to vector<64x128xf32>
    %c5_163 = arith.constant 5 : index
    %c0_164 = arith.constant 0 : index
    %c0_165 = arith.constant 0 : index
    %167 = vector.load %arg9[%c5_163, %c0_164, %c0_165] : memref<9x128x128xf32, #tpu.memory_space<vmem>>, vector<1x128x128xf32>
    %168 = vector.shape_cast %167 : vector<1x128x128xf32> to vector<128x128xf32>
    %cst_166 = arith.constant dense<0.000000e+00> : vector<64x128xf32>
    %169 = tpu.matmul %166, %168, %cst_166 {dimension_numbers = #tpu.dot_dimension_numbers<[1], [0], [0], [1], [0, 0, 1, 1], [], []>} : vector<64x128xf32>, vector<128x128xf32>, vector<64x128xf32> -> vector<64x128xf32>
    %170 = arith.addf %164, %169 : vector<64x128xf32>
    %c0_167 = arith.constant 0 : index
    %c2_168 = arith.constant 2 : index
    %c7_169 = arith.constant 7 : index
    %c0_170 = arith.constant 0 : index
    %171 = vector.load %arg18[%c0_167, %c2_168, %c7_169, %c0_170] : memref<1x10x24x128xf32, #tpu.memory_space<vmem>>, vector<1x8x8x128xf32>
    %172 = vector.shape_cast %171 : vector<1x8x8x128xf32> to vector<64x128xf32>
    %c6_171 = arith.constant 6 : index
    %c0_172 = arith.constant 0 : index
    %c0_173 = arith.constant 0 : index
    %173 = vector.load %arg9[%c6_171, %c0_172, %c0_173] : memref<9x128x128xf32, #tpu.memory_space<vmem>>, vector<1x128x128xf32>
    %174 = vector.shape_cast %173 : vector<1x128x128xf32> to vector<128x128xf32>
    %cst_174 = arith.constant dense<0.000000e+00> : vector<64x128xf32>
    %175 = tpu.matmul %172, %174, %cst_174 {dimension_numbers = #tpu.dot_dimension_numbers<[1], [0], [0], [1], [0, 0, 1, 1], [], []>} : vector<64x128xf32>, vector<128x128xf32>, vector<64x128xf32> -> vector<64x128xf32>
    %176 = arith.addf %170, %175 : vector<64x128xf32>
    %c0_175 = arith.constant 0 : index
    %c2_176 = arith.constant 2 : index
    %c8_177 = arith.constant 8 : index
    %c0_178 = arith.constant 0 : index
    %177 = vector.load %arg18[%c0_175, %c2_176, %c8_177, %c0_178] : memref<1x10x24x128xf32, #tpu.memory_space<vmem>>, vector<1x8x8x128xf32>
    %178 = vector.shape_cast %177 : vector<1x8x8x128xf32> to vector<64x128xf32>
    %c7_179 = arith.constant 7 : index
    %c0_180 = arith.constant 0 : index
    %c0_181 = arith.constant 0 : index
    %179 = vector.load %arg9[%c7_179, %c0_180, %c0_181] : memref<9x128x128xf32, #tpu.memory_space<vmem>>, vector<1x128x128xf32>
    %180 = vector.shape_cast %179 : vector<1x128x128xf32> to vector<128x128xf32>
    %cst_182 = arith.constant dense<0.000000e+00> : vector<64x128xf32>
    %181 = tpu.matmul %178, %180, %cst_182 {dimension_numbers = #tpu.dot_dimension_numbers<[1], [0], [0], [1], [0, 0, 1, 1], [], []>} : vector<64x128xf32>, vector<128x128xf32>, vector<64x128xf32> -> vector<64x128xf32>
    %182 = arith.addf %176, %181 : vector<64x128xf32>
    %c0_183 = arith.constant 0 : index
    %c2_184 = arith.constant 2 : index
    %c9_185 = arith.constant 9 : index
    %c0_186 = arith.constant 0 : index
    %183 = vector.load %arg18[%c0_183, %c2_184, %c9_185, %c0_186] : memref<1x10x24x128xf32, #tpu.memory_space<vmem>>, vector<1x8x8x128xf32>
    %184 = vector.shape_cast %183 : vector<1x8x8x128xf32> to vector<64x128xf32>
    %c8_187 = arith.constant 8 : index
    %c0_188 = arith.constant 0 : index
    %c0_189 = arith.constant 0 : index
    %185 = vector.load %arg9[%c8_187, %c0_188, %c0_189] : memref<9x128x128xf32, #tpu.memory_space<vmem>>, vector<1x128x128xf32>
    %186 = vector.shape_cast %185 : vector<1x128x128xf32> to vector<128x128xf32>
    %cst_190 = arith.constant dense<0.000000e+00> : vector<64x128xf32>
    %187 = tpu.matmul %184, %186, %cst_190 {dimension_numbers = #tpu.dot_dimension_numbers<[1], [0], [0], [1], [0, 0, 1, 1], [], []>} : vector<64x128xf32>, vector<128x128xf32>, vector<64x128xf32> -> vector<64x128xf32>
    %188 = arith.addf %182, %187 : vector<64x128xf32>
    %189 = vector.shape_cast %188 : vector<64x128xf32> to vector<1x64x128xf32>
    %190 = arith.addf %189, %99 : vector<1x64x128xf32>
    %cst_191 = arith.constant dense<0.000000e+00> : vector<1x128xf32>
    %191 = vector.multi_reduction <add>, %190, %cst_191 [1] : vector<1x64x128xf32> to vector<1x128xf32>
    %192 = arith.mulf %190, %190 : vector<1x64x128xf32>
    %cst_192 = arith.constant dense<0.000000e+00> : vector<1x128xf32>
    %193 = vector.multi_reduction <add>, %192, %cst_192 [1] : vector<1x64x128xf32> to vector<1x128xf32>
    %c0_193 = arith.constant 0 : index
    %c0_194 = arith.constant 0 : index
    %194 = vector.load %arg8[%c0_193, %c0_194] : memref<128x128xf32, #tpu.memory_space<vmem>>, vector<128x128xf32>
    %cst_195 = arith.constant dense<0.000000e+00> : vector<1x128xf32>
    %195 = tpu.matmul %191, %194, %cst_195 {dimension_numbers = #tpu.dot_dimension_numbers<[1], [0], [0], [1], [0, 0, 1, 1], [], []>} : vector<1x128xf32>, vector<128x128xf32>, vector<1x128xf32> -> vector<1x128xf32>
    %cst_196 = arith.constant dense<0.000000e+00> : vector<1x128xf32>
    %196 = tpu.matmul %193, %194, %cst_196 {dimension_numbers = #tpu.dot_dimension_numbers<[1], [0], [0], [1], [0, 0, 1, 1], [], []>} : vector<1x128xf32>, vector<128x128xf32>, vector<1x128xf32> -> vector<1x128xf32>
    %197 = arith.mulf %195, %195 : vector<1x128xf32>
    %198 = arith.subf %196, %197 : vector<1x128xf32>
    %cst_197 = arith.constant 0.000000e+00 : f32
    %199 = vector.broadcast %cst_197 : f32 to vector<1x128xf32>
    %200 = arith.maximumf %198, %199 : vector<1x128xf32>
    %cst_198 = arith.constant 9.99999974E-6 : f32
    %201 = vector.broadcast %cst_198 : f32 to vector<1x128xf32>
    %202 = arith.addf %200, %201 : vector<1x128xf32>
    %203 = math.rsqrt %202 : vector<1x128xf32>
    %c0_199 = arith.constant 0 : index
    %c0_200 = arith.constant 0 : index
    %204 = vector.load %arg11[%c0_199, %c0_200] : memref<1x128xf32, #tpu.memory_space<vmem>>, vector<1x128xf32>
    %205 = arith.mulf %203, %204 : vector<1x128xf32>
    %c0_201 = arith.constant 0 : index
    %c0_202 = arith.constant 0 : index
    %206 = vector.load %arg12[%c0_201, %c0_202] : memref<1x128xf32, #tpu.memory_space<vmem>>, vector<1x128xf32>
    %207 = arith.mulf %195, %205 : vector<1x128xf32>
    %208 = arith.subf %206, %207 : vector<1x128xf32>
    %209 = vector.shape_cast %205 : vector<1x128xf32> to vector<1x1x128xf32>
    %210 = vector.broadcast %209 : vector<1x1x128xf32> to vector<1x64x128xf32>
    %211 = arith.mulf %190, %210 : vector<1x64x128xf32>
    %212 = vector.shape_cast %208 : vector<1x128xf32> to vector<1x1x128xf32>
    %213 = vector.broadcast %212 : vector<1x1x128xf32> to vector<1x64x128xf32>
    %214 = arith.addf %211, %213 : vector<1x64x128xf32>
    %215 = arith.negf %214 : vector<1x64x128xf32>
    %216 = math.exp %215 : vector<1x64x128xf32>
    %cst_203 = arith.constant 1.000000e+00 : f32
    %217 = vector.broadcast %cst_203 : f32 to vector<1x64x128xf32>
    %218 = arith.addf %217, %216 : vector<1x64x128xf32>
    %219 = arith.divf %217, %218 : vector<1x64x128xf32>
    %220 = arith.mulf %214, %219 : vector<1x64x128xf32>
    %221 = vector.shape_cast %220 : vector<1x64x128xf32> to vector<1x8x8x128xf32>
    %c0_204 = arith.constant 0 : index
    %c1_205 = arith.constant 1 : index
    %c8_206 = arith.constant 8 : index
    %c0_207 = arith.constant 0 : index
    %222 = vector.load %arg18[%c0_204, %c1_205, %c8_206, %c0_207] : memref<1x10x24x128xf32, #tpu.memory_space<vmem>>, vector<1x8x8x128xf32>
    tpu.vector_store %arg18[%c0_204, %c1_205, %c8_206, %c0_207], %221 {strides = array<i32>} : memref<1x10x24x128xf32, #tpu.memory_space<vmem>>, vector<1x8x8x128xf32>,
    %c0_208 = arith.constant 0 : index
    %c0_209 = arith.constant 0 : index
    %223 = vector.load %arg14[%c0_208, %c0_209] : memref<1x128xf32, #tpu.memory_space<vmem>>, vector<1x128xf32>
    %224 = vector.shape_cast %223 : vector<1x128xf32> to vector<1x128xf32>
    %225 = vector.broadcast %224 : vector<1x128xf32> to vector<64x128xf32>
    %c0_210 = arith.constant 0 : index
    %c0_211 = arith.constant 0 : index
    %c7_212 = arith.constant 7 : index
    %c0_213 = arith.constant 0 : index
    %226 = vector.load %arg18[%c0_210, %c0_211, %c7_212, %c0_213] : memref<1x10x24x128xf32, #tpu.memory_space<vmem>>, vector<1x8x8x128xf32>
    %227 = vector.shape_cast %226 : vector<1x8x8x128xf32> to vector<64x128xf32>
    %c0_214 = arith.constant 0 : index
    %c0_215 = arith.constant 0 : index
    %c0_216 = arith.constant 0 : index
    %228 = vector.load %arg13[%c0_214, %c0_215, %c0_216] : memref<9x128x128xf32, #tpu.memory_space<vmem>>, vector<1x128x128xf32>
    %229 = vector.shape_cast %228 : vector<1x128x128xf32> to vector<128x128xf32>
    %cst_217 = arith.constant dense<0.000000e+00> : vector<64x128xf32>
    %230 = tpu.matmul %227, %229, %cst_217 {dimension_numbers = #tpu.dot_dimension_numbers<[1], [0], [0], [1], [0, 0, 1, 1], [], []>} : vector<64x128xf32>, vector<128x128xf32>, vector<64x128xf32> -> vector<64x128xf32>
    %231 = arith.addf %225, %230 : vector<64x128xf32>
    %c0_218 = arith.constant 0 : index
    %c0_219 = arith.constant 0 : index
    %c8_220 = arith.constant 8 : index
    %c0_221 = arith.constant 0 : index
    %232 = vector.load %arg18[%c0_218, %c0_219, %c8_220, %c0_221] : memref<1x10x24x128xf32, #tpu.memory_space<vmem>>, vector<1x8x8x128xf32>
    %233 = vector.shape_cast %232 : vector<1x8x8x128xf32> to vector<64x128xf32>
    %c1_222 = arith.constant 1 : index
    %c0_223 = arith.constant 0 : index
    %c0_224 = arith.constant 0 : index
    %234 = vector.load %arg13[%c1_222, %c0_223, %c0_224] : memref<9x128x128xf32, #tpu.memory_space<vmem>>, vector<1x128x128xf32>
    %235 = vector.shape_cast %234 : vector<1x128x128xf32> to vector<128x128xf32>
    %cst_225 = arith.constant dense<0.000000e+00> : vector<64x128xf32>
    %236 = tpu.matmul %233, %235, %cst_225 {dimension_numbers = #tpu.dot_dimension_numbers<[1], [0], [0], [1], [0, 0, 1, 1], [], []>} : vector<64x128xf32>, vector<128x128xf32>, vector<64x128xf32> -> vector<64x128xf32>
    %237 = arith.addf %231, %236 : vector<64x128xf32>
    %c0_226 = arith.constant 0 : index
    %c0_227 = arith.constant 0 : index
    %c9_228 = arith.constant 9 : index
    %c0_229 = arith.constant 0 : index
    %238 = vector.load %arg18[%c0_226, %c0_227, %c9_228, %c0_229] : memref<1x10x24x128xf32, #tpu.memory_space<vmem>>, vector<1x8x8x128xf32>
    %239 = vector.shape_cast %238 : vector<1x8x8x128xf32> to vector<64x128xf32>
    %c2_230 = arith.constant 2 : index
    %c0_231 = arith.constant 0 : index
    %c0_232 = arith.constant 0 : index
    %240 = vector.load %arg13[%c2_230, %c0_231, %c0_232] : memref<9x128x128xf32, #tpu.memory_space<vmem>>, vector<1x128x128xf32>
    %241 = vector.shape_cast %240 : vector<1x128x128xf32> to vector<128x128xf32>
    %cst_233 = arith.constant dense<0.000000e+00> : vector<64x128xf32>
    %242 = tpu.matmul %239, %241, %cst_233 {dimension_numbers = #tpu.dot_dimension_numbers<[1], [0], [0], [1], [0, 0, 1, 1], [], []>} : vector<64x128xf32>, vector<128x128xf32>, vector<64x128xf32> -> vector<64x128xf32>
    %243 = arith.addf %237, %242 : vector<64x128xf32>
    %c0_234 = arith.constant 0 : index
    %c1_235 = arith.constant 1 : index
    %c7_236 = arith.constant 7 : index
    %c0_237 = arith.constant 0 : index
    %244 = vector.load %arg18[%c0_234, %c1_235, %c7_236, %c0_237] : memref<1x10x24x128xf32, #tpu.memory_space<vmem>>, vector<1x8x8x128xf32>
    %245 = vector.shape_cast %244 : vector<1x8x8x128xf32> to vector<64x128xf32>
    %c3_238 = arith.constant 3 : index
    %c0_239 = arith.constant 0 : index
    %c0_240 = arith.constant 0 : index
    %246 = vector.load %arg13[%c3_238, %c0_239, %c0_240] : memref<9x128x128xf32, #tpu.memory_space<vmem>>, vector<1x128x128xf32>
    %247 = vector.shape_cast %246 : vector<1x128x128xf32> to vector<128x128xf32>
    %cst_241 = arith.constant dense<0.000000e+00> : vector<64x128xf32>
    %248 = tpu.matmul %245, %247, %cst_241 {dimension_numbers = #tpu.dot_dimension_numbers<[1], [0], [0], [1], [0, 0, 1, 1], [], []>} : vector<64x128xf32>, vector<128x128xf32>, vector<64x128xf32> -> vector<64x128xf32>
    %249 = arith.addf %243, %248 : vector<64x128xf32>
    %c0_242 = arith.constant 0 : index
    %c1_243 = arith.constant 1 : index
    %c8_244 = arith.constant 8 : index
    %c0_245 = arith.constant 0 : index
    %250 = vector.load %arg18[%c0_242, %c1_243, %c8_244, %c0_245] : memref<1x10x24x128xf32, #tpu.memory_space<vmem>>, vector<1x8x8x128xf32>
    %251 = vector.shape_cast %250 : vector<1x8x8x128xf32> to vector<64x128xf32>
    %c4_246 = arith.constant 4 : index
    %c0_247 = arith.constant 0 : index
    %c0_248 = arith.constant 0 : index
    %252 = vector.load %arg13[%c4_246, %c0_247, %c0_248] : memref<9x128x128xf32, #tpu.memory_space<vmem>>, vector<1x128x128xf32>
    %253 = vector.shape_cast %252 : vector<1x128x128xf32> to vector<128x128xf32>
    %cst_249 = arith.constant dense<0.000000e+00> : vector<64x128xf32>
    %254 = tpu.matmul %251, %253, %cst_249 {dimension_numbers = #tpu.dot_dimension_numbers<[1], [0], [0], [1], [0, 0, 1, 1], [], []>} : vector<64x128xf32>, vector<128x128xf32>, vector<64x128xf32> -> vector<64x128xf32>
    %255 = arith.addf %249, %254 : vector<64x128xf32>
    %c0_250 = arith.constant 0 : index
    %c1_251 = arith.constant 1 : index
    %c9_252 = arith.constant 9 : index
    %c0_253 = arith.constant 0 : index
    %256 = vector.load %arg18[%c0_250, %c1_251, %c9_252, %c0_253] : memref<1x10x24x128xf32, #tpu.memory_space<vmem>>, vector<1x8x8x128xf32>
    %257 = vector.shape_cast %256 : vector<1x8x8x128xf32> to vector<64x128xf32>
    %c5_254 = arith.constant 5 : index
    %c0_255 = arith.constant 0 : index
    %c0_256 = arith.constant 0 : index
    %258 = vector.load %arg13[%c5_254, %c0_255, %c0_256] : memref<9x128x128xf32, #tpu.memory_space<vmem>>, vector<1x128x128xf32>
    %259 = vector.shape_cast %258 : vector<1x128x128xf32> to vector<128x128xf32>
    %cst_257 = arith.constant dense<0.000000e+00> : vector<64x128xf32>
    %260 = tpu.matmul %257, %259, %cst_257 {dimension_numbers = #tpu.dot_dimension_numbers<[1], [0], [0], [1], [0, 0, 1, 1], [], []>} : vector<64x128xf32>, vector<128x128xf32>, vector<64x128xf32> -> vector<64x128xf32>
    %261 = arith.addf %255, %260 : vector<64x128xf32>
    %c0_258 = arith.constant 0 : index
    %c2_259 = arith.constant 2 : index
    %c7_260 = arith.constant 7 : index
    %c0_261 = arith.constant 0 : index
    %262 = vector.load %arg18[%c0_258, %c2_259, %c7_260, %c0_261] : memref<1x10x24x128xf32, #tpu.memory_space<vmem>>, vector<1x8x8x128xf32>
    %263 = vector.shape_cast %262 : vector<1x8x8x128xf32> to vector<64x128xf32>
    %c6_262 = arith.constant 6 : index
    %c0_263 = arith.constant 0 : index
    %c0_264 = arith.constant 0 : index
    %264 = vector.load %arg13[%c6_262, %c0_263, %c0_264] : memref<9x128x128xf32, #tpu.memory_space<vmem>>, vector<1x128x128xf32>
    %265 = vector.shape_cast %264 : vector<1x128x128xf32> to vector<128x128xf32>
    %cst_265 = arith.constant dense<0.000000e+00> : vector<64x128xf32>
    %266 = tpu.matmul %263, %265, %cst_265 {dimension_numbers = #tpu.dot_dimension_numbers<[1], [0], [0], [1], [0, 0, 1, 1], [], []>} : vector<64x128xf32>, vector<128x128xf32>, vector<64x128xf32> -> vector<64x128xf32>
    %267 = arith.addf %261, %266 : vector<64x128xf32>
    %c0_266 = arith.constant 0 : index
    %c2_267 = arith.constant 2 : index
    %c8_268 = arith.constant 8 : index
    %c0_269 = arith.constant 0 : index
    %268 = vector.load %arg18[%c0_266, %c2_267, %c8_268, %c0_269] : memref<1x10x24x128xf32, #tpu.memory_space<vmem>>, vector<1x8x8x128xf32>
    %269 = vector.shape_cast %268 : vector<1x8x8x128xf32> to vector<64x128xf32>
    %c7_270 = arith.constant 7 : index
    %c0_271 = arith.constant 0 : index
    %c0_272 = arith.constant 0 : index
    %270 = vector.load %arg13[%c7_270, %c0_271, %c0_272] : memref<9x128x128xf32, #tpu.memory_space<vmem>>, vector<1x128x128xf32>
    %271 = vector.shape_cast %270 : vector<1x128x128xf32> to vector<128x128xf32>
    %cst_273 = arith.constant dense<0.000000e+00> : vector<64x128xf32>
    %272 = tpu.matmul %269, %271, %cst_273 {dimension_numbers = #tpu.dot_dimension_numbers<[1], [0], [0], [1], [0, 0, 1, 1], [], []>} : vector<64x128xf32>, vector<128x128xf32>, vector<64x128xf32> -> vector<64x128xf32>
    %273 = arith.addf %267, %272 : vector<64x128xf32>
    %c0_274 = arith.constant 0 : index
    %c2_275 = arith.constant 2 : index
    %c9_276 = arith.constant 9 : index
    %c0_277 = arith.constant 0 : index
    %274 = vector.load %arg18[%c0_274, %c2_275, %c9_276, %c0_277] : memref<1x10x24x128xf32, #tpu.memory_space<vmem>>, vector<1x8x8x128xf32>
    %275 = vector.shape_cast %274 : vector<1x8x8x128xf32> to vector<64x128xf32>
    %c8_278 = arith.constant 8 : index
    %c0_279 = arith.constant 0 : index
    %c0_280 = arith.constant 0 : index
    %276 = vector.load %arg13[%c8_278, %c0_279, %c0_280] : memref<9x128x128xf32, #tpu.memory_space<vmem>>, vector<1x128x128xf32>
    %277 = vector.shape_cast %276 : vector<1x128x128xf32> to vector<128x128xf32>
    %cst_281 = arith.constant dense<0.000000e+00> : vector<64x128xf32>
    %278 = tpu.matmul %275, %277, %cst_281 {dimension_numbers = #tpu.dot_dimension_numbers<[1], [0], [0], [1], [0, 0, 1, 1], [], []>} : vector<64x128xf32>, vector<128x128xf32>, vector<64x128xf32> -> vector<64x128xf32>
    %279 = arith.addf %273, %278 : vector<64x128xf32>
    %280 = vector.shape_cast %279 : vector<64x128xf32> to vector<1x64x128xf32>
    %281 = vector.shape_cast %8 : vector<1x64x128xf32> to vector<64x128xf32>
    %c0_282 = arith.constant 0 : index
    %c0_283 = arith.constant 0 : index
    %282 = vector.load %arg15[%c0_282, %c0_283] : memref<128x128xf32, #tpu.memory_space<vmem>>, vector<128x128xf32>
    %cst_284 = arith.constant dense<0.000000e+00> : vector<64x128xf32>
    %283 = tpu.matmul %281, %282, %cst_284 {dimension_numbers = #tpu.dot_dimension_numbers<[1], [0], [0], [1], [0, 0, 1, 1], [], []>} : vector<64x128xf32>, vector<128x128xf32>, vector<64x128xf32> -> vector<64x128xf32>
    %c0_285 = arith.constant 0 : index
    %c0_286 = arith.constant 0 : index
    %284 = vector.load %arg16[%c0_285, %c0_286] : memref<1x128xf32, #tpu.memory_space<vmem>>, vector<1x128xf32>
    %285 = vector.broadcast %284 : vector<1x128xf32> to vector<64x128xf32>
    %286 = arith.addf %283, %285 : vector<64x128xf32>
    %287 = vector.shape_cast %286 : vector<64x128xf32> to vector<1x64x128xf32>
    %288 = arith.addf %280, %287 : vector<1x64x128xf32>
    %c0_287 = arith.constant 0 : index
    %c0_288 = arith.constant 0 : index
    %c0_289 = arith.constant 0 : index
    %289 = vector.load %arg17[%c0_287, %c0_288, %c0_289] : memref<1x64x128xf32, #tpu.memory_space<vmem>>, vector<1x64x128xf32>
    tpu.vector_store %arg17[%c0_287, %c0_288, %c0_289], %288 {strides = array<i32>} : memref<1x64x128xf32, #tpu.memory_space<vmem>>, vector<1x64x128xf32>,
    return
  }
  func.func @transform_0(%arg0: i32) -> (i32, i32, i32, i32) {
    %c0_i32 = arith.constant 0 : i32
    %c0_i32_0 = arith.constant 0 : i32
    %c0_i32_1 = arith.constant 0 : i32
    %c0_i32_2 = arith.constant 0 : i32
    return %arg0, %c0_i32, %c0_i32_0, %c0_i32_1 : i32, i32, i32, i32
  }
  func.func @transform_1(%arg0: i32) -> (i32, i32) {
    %c0_i32 = arith.constant 0 : i32
    %c0_i32_0 = arith.constant 0 : i32
    %c0_i32_1 = arith.constant 0 : i32
    return %c0_i32, %c0_i32_0 : i32, i32
  }
  func.func @transform_2(%arg0: i32) -> (i32, i32) {
    %c0_i32 = arith.constant 0 : i32
    %c0_i32_0 = arith.constant 0 : i32
    %c0_i32_1 = arith.constant 0 : i32
    return %c0_i32, %c0_i32_0 : i32, i32
  }
  func.func @transform_3(%arg0: i32) -> (i32, i32, i32) {
    %c0_i32 = arith.constant 0 : i32
    %c0_i32_0 = arith.constant 0 : i32
    %c0_i32_1 = arith.constant 0 : i32
    %c0_i32_2 = arith.constant 0 : i32
    return %c0_i32, %c0_i32_0, %c0_i32_1 : i32, i32, i32
  }
  func.func @transform_4(%arg0: i32) -> (i32, i32) {
    %c0_i32 = arith.constant 0 : i32
    %c0_i32_0 = arith.constant 0 : i32
    %c0_i32_1 = arith.constant 0 : i32
    return %c0_i32, %c0_i32_0 : i32, i32
  }
  func.func @transform_5(%arg0: i32) -> (i32, i32) {
    %c0_i32 = arith.constant 0 : i32
    %c0_i32_0 = arith.constant 0 : i32
    %c0_i32_1 = arith.constant 0 : i32
    return %c0_i32, %c0_i32_0 : i32, i32
  }
  func.func @transform_6(%arg0: i32) -> (i32, i32) {
    %c0_i32 = arith.constant 0 : i32
    %c0_i32_0 = arith.constant 0 : i32
    %c0_i32_1 = arith.constant 0 : i32
    return %c0_i32, %c0_i32_0 : i32, i32
  }
  func.func @transform_7(%arg0: i32) -> (i32, i32) {
    %c0_i32 = arith.constant 0 : i32
    %c0_i32_0 = arith.constant 0 : i32
    %c0_i32_1 = arith.constant 0 : i32
    return %c0_i32, %c0_i32_0 : i32, i32
  }
  func.func @transform_8(%arg0: i32) -> (i32, i32, i32) {
    %c0_i32 = arith.constant 0 : i32
    %c0_i32_0 = arith.constant 0 : i32
    %c0_i32_1 = arith.constant 0 : i32
    %c0_i32_2 = arith.constant 0 : i32
    return %c0_i32, %c0_i32_0, %c0_i32_1 : i32, i32, i32
  }
  func.func @transform_9(%arg0: i32) -> (i32, i32) {
    %c0_i32 = arith.constant 0 : i32
    %c0_i32_0 = arith.constant 0 : i32
    %c0_i32_1 = arith.constant 0 : i32
    return %c0_i32, %c0_i32_0 : i32, i32
  }
  func.func @transform_10(%arg0: i32) -> (i32, i32) {
    %c0_i32 = arith.constant 0 : i32
    %c0_i32_0 = arith.constant 0 : i32
    %c0_i32_1 = arith.constant 0 : i32
    return %c0_i32, %c0_i32_0 : i32, i32
  }
  func.func @transform_11(%arg0: i32) -> (i32, i32) {
    %c0_i32 = arith.constant 0 : i32
    %c0_i32_0 = arith.constant 0 : i32
    %c0_i32_1 = arith.constant 0 : i32
    return %c0_i32, %c0_i32_0 : i32, i32
  }
  func.func @transform_12(%arg0: i32) -> (i32, i32, i32) {
    %c0_i32 = arith.constant 0 : i32
    %c0_i32_0 = arith.constant 0 : i32
    %c0_i32_1 = arith.constant 0 : i32
    %c0_i32_2 = arith.constant 0 : i32
    return %c0_i32, %c0_i32_0, %c0_i32_1 : i32, i32, i32
  }
  func.func @transform_13(%arg0: i32) -> (i32, i32) {
    %c0_i32 = arith.constant 0 : i32
    %c0_i32_0 = arith.constant 0 : i32
    %c0_i32_1 = arith.constant 0 : i32
    return %c0_i32, %c0_i32_0 : i32, i32
  }
  func.func @transform_14(%arg0: i32) -> (i32, i32) {
    %c0_i32 = arith.constant 0 : i32
    %c0_i32_0 = arith.constant 0 : i32
    %c0_i32_1 = arith.constant 0 : i32
    return %c0_i32, %c0_i32_0 : i32, i32
  }
  func.func @transform_15(%arg0: i32) -> (i32, i32) {
    %c0_i32 = arith.constant 0 : i32
    %c0_i32_0 = arith.constant 0 : i32
    %c0_i32_1 = arith.constant 0 : i32
    return %c0_i32, %c0_i32_0 : i32, i32
  }
  func.func @transform_16(%arg0: i32) -> (i32, i32, i32) {
    %c0_i32 = arith.constant 0 : i32
    %c0_i32_0 = arith.constant 0 : i32
    %c0_i32_1 = arith.constant 0 : i32
    return %arg0, %c0_i32, %c0_i32_0 : i32, i32, i32
  }
}

</mosaic_0001>

<bundles_post_ra>
// kernel: tpu_custom_call.1
= control target key start
LH: loop header
LB: loop body
LE: loop exit
PB: predicated region body
PF: predicated region fallthrough
CT: control target
= control target key end

     0   :  { %s10405_s0 = inlined_call_operand.hbm [shape: f32[2,8,8,128], index: 0, kind: input, shape index: {}]   ;;  %s10406_s1 = inlined_call_operand.vmem [shape: f32[1,128], index: 1, kind: input, shape index: {}]   ;;  %s10407_s2 = inlined_call_operand.vmem [shape: f32[1,128], index: 2, kind: input, shape index: {}]   ;;  %s10408_s3 = inlined_call_operand.hbm [shape: f32[9,128,128], index: 3, kind: input, shape index: {}]   ;;  %s10409_s4 = inlined_call_operand.vmem [shape: f32[1,128], index: 4, kind: input, shape index: {}]   ;;  %s10410_s5 = inlined_call_operand.vmem [shape: f32[1,128], index: 5, kind: input, shape index: {}]   ;;  %s10411_s6 = inlined_call_operand.vmem [shape: f32[1,128], index: 6, kind: input, shape index: {}]   ;;  %s10412_s7 = inlined_call_operand.hbm [shape: f32[128,128], index: 7, kind: input, shape index: {}]   ;;  %s10413_s8 = inlined_call_operand.hbm [shape: f32[9,128,128], index: 8, kind: input, shape index: {}]   ;;  %s10414_s9 = inlined_call_operand.vmem [shape: f32[1,128], index: 9, kind: input, shape index: {}]   ;;  %s10415_s10 = inlined_call_operand.vmem [shape: f32[1,128], index: 10, kind: input, shape index: {}]   ;;  %s10416_s11 = inlined_call_operand.vmem [shape: f32[1,128], index: 11, kind: input, shape index: {}]   ;;  %s10417_s12 = inlined_call_operand.hbm [shape: f32[9,128,128], index: 12, kind: input, shape index: {}]   ;;  %s10418_s13 = inlined_call_operand.vmem [shape: f32[1,128], index: 13, kind: input, shape index: {}]   ;;  %s10419_s14 = inlined_call_operand.hbm [shape: f32[128,128], index: 14, kind: input, shape index: {}]   ;;  %s10420_s15 = inlined_call_operand.vmem [shape: f32[1,128], index: 15, kind: input, shape index: {}]   ;;  %s10421_s16 = inlined_call_operand.hbm [shape: f32[2,64,128], index: 16, kind: output, shape index: {}]  }
   0x1   :  { %10429 = sst [smem:[#allocation20_spill]] %s10405_s0 }
   0x2   :  { %10430 = sst [smem:[#allocation21_spill]] %s10408_s3 }
   0x3   :  { %10431 = sst [smem:[#allocation22_spill]] %s10411_s6 }
   0x4   :  { %10432 = sst [smem:[#allocation23_spill]] %s10414_s9 }
   0x5   :  { %10433 = sst [smem:[#allocation24_spill]] %s10415_s10 }
   0x6   :  { %10434 = sst [smem:[#allocation25_spill]] %s10416_s11 }
   0x7   :  { %10435 = sst [smem:[#allocation26_spill]] %s10418_s13 }
   0x8   :  { %10436 = sst [smem:[#allocation27_spill]] %s10420_s15 }
   0x9   :  { %10437 = sst [smem:[#allocation28_spill]] %s10421_s16 }
   0xa   :  { %21 = vsyncpa [#allocation4], 0 }
   0xb   :  { %23 = vsyncpa [#allocation4 + $0x1], 0 }
   0xc   :  { %24 = vsyncpa [#allocation7], 0 }
   0xd   :  { %25 = vsyncpa [#allocation10], 0 }
   0xe   :  { %26 = vsyncpa [#allocation13], 0 }
   0xf   :  { %27 = vsyncpa [#allocation5], 0 }
  0x10   :  { %29 = vsyncpa [#allocation5 + $0x1], 0  ;;  %s9349_s21 = smov 0   ;;  %s9351_s22 = smov 0  }
  0x11   :  { %s9353_s23 = smov 0   ;;  %s9355_s24 = smov 0  }
  0x12 LB: > { %s9250_s25 = smov [#allocation6]   ;;  %s9370_s27 = sadd.s32 4294967295, %s9248_s24   ;;  %s9248_s24 = sphi %s9355_s24, %s10470_s24   ;;  %s9244_s23 = sphi %s9353_s23, %s10469_s23   ;;  %s9240_s22 = sphi %s9351_s22, %s10468_s22   ;;  %s9236_s21 = sphi %s9349_s21, %s10467_s21  }
  0x13   : > { %s425_s26 = sshll.u32 %s9250_s25, 4  ;;  %p5394_p0 = scmp.ge.s32.totalorder %s9248_s24, 1  ;;  %s9375_s26 = int_to_ptr.vmem [resolvable:$true] %s425_s26 }
  0x14   : > { %p10424_p1 = scmp.eq.s32.totalorder %s9370_s27, 0  ;;  %p407_p2 = scmp.lt.s32.totalorder %s9248_s24, 3 }
  0x15   : > { %s9251_s29 = smov [#allocation9]   ;;  %s9252_s17 = smov [#allocation8]  }
  0x16   : > { %p9377_p3 = pnand %p5394_p0, %p407_p2  ;;  %s460_s30 = sshll.u32 %s9251_s29, 4  ;;  %s9390_s30 = int_to_ptr.vmem [resolvable:$true] %s460_s30 }
  0x17   : > { %s447_s18 = sshll.u32 %s9252_s17, 4  ;;  %s10440_s3 = sld [smem:[#allocation21_spill]]  ;;  %s9392_s18 = int_to_ptr.vmem [resolvable:$true] %s447_s18 }
  0x18   : > { %s10438_s28 = scalar_select %p9377_p3, 1, 0 }
  0x19   : > { %p8807_p5 = pneg %p9377_p3 }
  0x1b   : > { %p9386_p6 = pnand %p8807_p5, %p10424_p1 }
  0x1d   : > { %s9000_s25 = scalar_lea.hbm %s10440_s3, 18432  ;;  %p9402_p8 = pneg %p9386_p6 }
  0x1e   : > { %p9001_p7 = scmp.ne.s32.totalorder %s10440_s3, %s9000_s25  ;;  %p9007_p11 = scmp.lt.u32.totalorder %s9000_s25, %s10440_s3 }
  0x20   : > { %p9003_p9 = pnand %p9402_p8, %p9001_p7 }
  0x22   : > { %p9004_p10 = pneg %p9003_p9 }
  0x24   : > { %p9009_p12 = pnand %p9007_p11, %p9004_p10 }
  0x26   : > { %9012 = shalt.err (!%p9009_p12)
}
  0x27   : > { %s9013_s15 = scalar_lea.vmem %s9375_s26, 18432  ;;  %p9021_p5 = scmp.lt.s32.totalorder %s9375_s26, %s9375_s26 }
  0x28   : > { %p9014_p13 = scmp.ne.s32.totalorder %s9375_s26, %s9013_s15  ;;  %p9022_p4 = scmp.lt.s32.totalorder %s9013_s15, %s9013_s15 }
  0x2a   : > { %p9016_p0 = pnand %p9014_p13, %p9402_p8  ;;  %p9023_p7 = por %p9022_p4, %p9021_p5 }
  0x2c   : > { %p9017_p2 = pneg %p9016_p0 }
  0x2e   : > { %p9024_p9 = pnand %p9023_p7, %p9017_p2 }
  0x30   : > { %9027 = shalt.err (!%p9024_p9)
}
  0x31   : > { %s10426_s16 = smov 128   ;;  %s10427_s13 = smov 8  }
  0x32   : > { %8810 = dma.hbm_to_vmem [thread:$0]  (!%p9386_p6), %s10440_s3, 18432, %s9375_s26, [#allocation7], %s10426_s16, %s10426_s16, %s10427_s13  }
  0x33   : > { %s9028_s15 = scalar_lea.hbm %s10413_s8, 18432 }
  0x34   : > { %p9029_p4 = scmp.ne.s32.totalorder %s10413_s8, %s9028_s15  ;;  %p9035_p12 = scmp.lt.u32.totalorder %s9028_s15, %s10413_s8 }
  0x36   : > { %p9031_p10 = pnand %p9029_p4, %p9402_p8 }
  0x38   : > { %p9032_p11 = pneg %p9031_p10 }
  0x3a   : > { %p9037_p13 = pnand %p9035_p12, %p9032_p11 }
  0x3c   : > { %9040 = shalt.err (!%p9037_p13)
}
  0x3d   : > { %s9041_s26 = scalar_lea.vmem %s9390_s30, 18432  ;;  %p9049_p7 = scmp.lt.s32.totalorder %s9390_s30, %s9390_s30 }
  0x3e   : > { %p9042_p0 = scmp.ne.s32.totalorder %s9390_s30, %s9041_s26  ;;  %p9050_p9 = scmp.lt.s32.totalorder %s9041_s26, %s9041_s26 }
  0x40   : > { %p9044_p2 = pnand %p9042_p0, %p9402_p8  ;;  %p9051_p4 = por %p9050_p9, %p9049_p7 }
  0x42   : > { %p9045_p5 = pneg %p9044_p2 }
  0x44   : > { %p9052_p10 = pnand %p9051_p4, %p9045_p5 }
  0x46   : > { %9055 = shalt.err (!%p9052_p10)
}
  0x47   : > { %8816 = dma.hbm_to_vmem [thread:$0]  (!%p9386_p6), %s10413_s8, 18432, %s9390_s30, [#allocation10], %s10426_s16, %s10426_s16, %s10427_s13  }
  0x48   : > { %s9056_s19 = scalar_lea.hbm %s10412_s7, 2048 }
  0x49   : > { %p9057_p11 = scmp.ne.s32.totalorder %s10412_s7, %s9056_s19  ;;  %p9063_p0 = scmp.lt.u32.totalorder %s9056_s19, %s10412_s7 }
  0x4b   : > { %p9059_p12 = pnand %p9057_p11, %p9402_p8 }
  0x4d   : > { %p9060_p13 = pneg %p9059_p12 }
  0x4f   : > { %p9065_p2 = pnand %p9063_p0, %p9060_p13 }
  0x51   : > { %9068 = shalt.err (!%p9065_p2)
}
  0x52   : > { %s9069_s30 = scalar_lea.vmem %s9392_s18, 2048  ;;  %p9077_p4 = scmp.lt.s32.totalorder %s9392_s18, %s9392_s18 }
  0x53   : > { %p9070_p5 = scmp.ne.s32.totalorder %s9392_s18, %s9069_s30  ;;  %p9078_p10 = scmp.lt.s32.totalorder %s9069_s30, %s9069_s30 }
  0x55   : > { %p9072_p7 = pnand %p9070_p5, %p9402_p8  ;;  %p9079_p11 = por %p9078_p10, %p9077_p4 }
  0x57   : > { %p9073_p9 = pneg %p9072_p7 }
  0x59   : > { %p9080_p12 = pnand %p9079_p11, %p9073_p9 }
  0x5b   : > { %9083 = shalt.err (!%p9080_p12)
}
  0x5c   : > { %8813 = dma.hbm_to_vmem [thread:$0]  (!%p9386_p6), %s10412_s7, 2048, %s9392_s18, [#allocation7], %s10426_s16, %s10426_s16, %s10427_s13  }
  0x5d   : > { %s9255_s9 = smov [#allocation11]   ;;  %s9256_s11 = smov [#allocation12]  }
  0x5e   : > { %s482_s10 = sshll.u32 %s9255_s9, 4  ;;  %s498_s19 = sshll.u32 %s9256_s11, 4  ;;  %s483_s10 = int_to_ptr.vmem [resolvable:$true] %s482_s10  ;;  %s499_s19 = int_to_ptr.vmem [resolvable:$true] %s498_s19 }
  0x5f   : > { %s9084_s17 = scalar_lea.hbm %s10417_s12, 18432 }
  0x60   : > { %p9085_p13 = scmp.ne.s32.totalorder %s10417_s12, %s9084_s17  ;;  %p9091_p5 = scmp.lt.u32.totalorder %s9084_s17, %s10417_s12 }
  0x62   : > { %p9087_p0 = pnand %p9085_p13, %p9402_p8 }
  0x64   : > { %p9088_p2 = pneg %p9087_p0 }
  0x66   : > { %p9093_p7 = pnand %p9091_p5, %p9088_p2 }
  0x68   : > { %9096 = shalt.err (!%p9093_p7)
}
  0x69   : > { %s9097_s18 = scalar_lea.vmem %s483_s10, 18432  ;;  %p9105_p11 = scmp.lt.s32.totalorder %s483_s10, %s483_s10 }
  0x6a   : > { %p9098_p9 = scmp.ne.s32.totalorder %s483_s10, %s9097_s18  ;;  %p9106_p12 = scmp.lt.s32.totalorder %s9097_s18, %s9097_s18 }
  0x6c   : > { %p9100_p4 = pnand %p9098_p9, %p9402_p8  ;;  %p9107_p1 = por %p9106_p12, %p9105_p11 }
  0x6e   : > { %p9101_p10 = pneg %p9100_p4 }
  0x70   : > { %p9108_p3 = pnand %p9107_p1, %p9101_p10 }
  0x72   : > { %9111 = shalt.err (!%p9108_p3)
}
  0x73   : > { %8819 = dma.hbm_to_vmem [thread:$0]  (!%p9386_p6), %s10417_s12, 18432, %s483_s10, [#allocation10], %s10426_s16, %s10426_s16, %s10427_s13  }
  0x74   : > { %s9112_s20 = scalar_lea.hbm %s10419_s14, 2048 }
  0x75   : > { %p9113_p1 = scmp.ne.s32.totalorder %s10419_s14, %s9112_s20  ;;  %p9119_p0 = scmp.lt.u32.totalorder %s9112_s20, %s10419_s14 }
  0x77   : > { %p9115_p3 = pnand %p9113_p1, %p9402_p8 }
  0x79   : > { %p9116_p13 = pneg %p9115_p3 }
  0x7b   : > { %p9121_p2 = pnand %p9119_p0, %p9116_p13 }
  0x7d   : > { %9124 = shalt.err (!%p9121_p2)
}
  0x7e   : > { %s9125_s26 = scalar_lea.vmem %s499_s19, 2048  ;;  %p9133_p4 = scmp.lt.s32.totalorder %s499_s19, %s499_s19 }
  0x7f   : > { %p9126_p5 = scmp.ne.s32.totalorder %s499_s19, %s9125_s26  ;;  %p9134_p10 = scmp.lt.s32.totalorder %s9125_s26, %s9125_s26 }
  0x81   : > { %p9128_p7 = pnand %p9126_p5, %p9402_p8  ;;  %p9135_p11 = por %p9134_p10, %p9133_p4 }
  0x83   : > { %p9129_p9 = pneg %p9128_p7 }
  0x85   : > { %p9136_p12 = pnand %p9135_p11, %p9129_p9 }
  0x87   : > { %9139 = shalt.err (!%p9136_p12)
}
  0x88   : > { %8822 = dma.hbm_to_vmem [thread:$0]  (!%p9386_p6), %s10419_s14, 2048, %s499_s19, [#allocation13], %s10426_s16, %s10426_s16, %s10427_s13  }
  0x89   : > { %s5393_s0 = sadd.s32 4294967294, %s9248_s24   ;;  %s9522_s29 = sadd.s32 1, %s9248_s24  }
  0x8a   : > { %s42_s3 = sadd.s32 1, %s9244_s23  ;;  %s39_s6 = ssub.s32 %s9248_s24, %s9522_s29 }
  0x8b   : > { %p49_p8 = scmp.ne.s32.totalorder %s9244_s23, %s9240_s22  ;;  %p40_p1 = scmp.eq.s32.totalorder %s39_s6, 0 }
  0x8c   : > { %p50_p3 = scmp.eq.s32.totalorder %s9248_s24, 0  ;;  %p55_p13 = scmp.ne.s32.totalorder %s9240_s22, %s9236_s21 }
  0x8d   : > { %p394_p0 = scmp.eq.s32.totalorder %s9370_s27, 1  ;;  %p10442_p5 = scmp.eq.s32.totalorder %s9370_s27, 0 }
  0x8e   : > { %s9534_s9 = scalar_select %p40_p1, %s9244_s23, %s42_s3  }
  0x8f   : > { %p51_p2 = por %p50_p3, %p49_p8  ;;  %p9538_p7 = por %p10442_p5, %p55_p13 }
  0x90   : > { %p9542_p6 = por %p394_p0, %p49_p8  ;;  %p400_p9 = scmp.eq.s32.totalorder %s5393_s0, 1 }
  0x91   : > { %p8836_p4 = scmp.lt.s32.totalorder %s9248_s24, 2  ;;  %s515_s20 = sand.u32 1, %s9244_s23  }
  0x92   : > { %s10444_s19 = scalar_select %p9542_p6, 1, 0 }
  0x93   : > { %p9548_p10 = por %p400_p9, %p55_p13  ;;  %s5401_s17 = sshll.u32 %s515_s20, 6 }
  0x94   : > { %s5445_s15 = sshll.u32 %s9248_s24, 10  ;;  %s10446_s10 = sld [smem:[#allocation20_spill]] }
  0x95   : > { %s10445_s25 = scalar_select %p9548_p10, 1, 0 }
  0x96   : > { %s519_s3 = scalar_lea.vmem [#allocation3], %s5401_s17  ;;  %p9558_p11 = pnand %p8836_p4, %p51_p2 }
  0x97   : > { %s526_s6 = sshll.u32 %s519_s3, 4  ;;  %s9564_s16 = scalar_lea.sflag [#allocation4], %s515_s20  ;;  %s9562_s6 = int_to_ptr.vmem [resolvable:$true] %s526_s6 }
  0x98   : > { %p9142_p8 = pneg %p9558_p11 }
  0x9a   : > { %s9556_s18 = scalar_lea.hbm %s10446_s10, %s5445_s15  ;;  %s9145_s30 = scalar_lea.hbm %s10446_s10, 2048 }
  0x9b   : > { %s9140_s13 = scalar_lea.hbm %s9556_s18, 1024  ;;  %p9146_p13 = scmp.lt.u32.totalorder %s9556_s18, %s10446_s10 }
  0x9c   : > { %p9141_p12 = scmp.ne.s32.totalorder %s9556_s18, %s9140_s13  ;;  %p9147_p0 = scmp.lt.u32.totalorder %s9145_s30, %s9140_s13 }
  0x9d   : > { %p9149_p5 = scmp.lt.u32.totalorder %s9140_s13, %s9556_s18 }
  0x9e   : > { %p9143_p1 = pnand %p9142_p8, %p9141_p12  ;;  %p9148_p2 = por %p9147_p0, %p9146_p13 }
  0xa0   : > { %p9144_p3 = pneg %p9143_p1  ;;  %p9150_p9 = por %p9149_p5, %p9148_p2 }
  0xa2   : > { %p9151_p4 = pnand %p9150_p9, %p9144_p3 }
  0xa4   : > { %9154 = shalt.err (!%p9151_p4)
}
  0xa5   : > { %s9155_s20 = scalar_lea.vmem %s9562_s6, 1024  ;;  %s9257_s17 = smov [#allocation3]  }
  0xa6   : > { %p9156_p12 = scmp.ne.s32.totalorder %s9562_s6, %s9155_s20  ;;  %s9160_s15 = sshll.u32 %s9257_s17, 4  ;;  %s9161_s15 = int_to_ptr.vmem [resolvable:$false] %s9160_s15 }
  0xa7   : > { %s9162_s26 = scalar_lea.vmem %s9161_s15, 2048  ;;  %p9163_p6 = scmp.lt.s32.totalorder %s9562_s6, %s9161_s15 }
  0xa8   : > { %p9158_p1 = pnand %p9156_p12, %p9142_p8  ;;  %p9164_p13 = scmp.lt.s32.totalorder %s9162_s26, %s9155_s20 }
  0xaa   : > { %p9159_p10 = pneg %p9158_p1  ;;  %p9165_p0 = por %p9164_p13, %p9163_p6 }
  0xac   : > { %p9166_p2 = pnand %p9165_p0, %p9159_p10 }
  0xae   : > { %9169 = shalt.err (!%p9166_p2)
}
  0xaf   : > { %s10448_s13 = smov 8   ;;  %s10449_s30 = smov 128  }
  0xb0   : > { %8826 = dma.hbm_to_vmem [thread:$0]  (!%p9558_p11), %s9556_s18, 1024, %s9562_s6, %s9564_s16, %s10449_s30, %s10449_s30, %s10448_s13  }
  0xb1   : > { %p10450_p8 = scmp.ne.s32.totalorder %s10438_s28, 0 }
  0xb2   : > { %s9598_s3 = sand.u32 (!%p10450_p8), 1, %s9240_s22  }
  0xb3   : > { %538 = sbr.rel (%p10450_p8) target bundleno = 2320 (0x910), region = 84  ;;  %s5405_s20 = sshll.u32 (!%p10450_p8), %s9598_s3, 6 }
  0xb4   : > { %s541_s17 = scalar_lea.sflag (!%p10450_p8), [#allocation4], %s9598_s3  ;;  %s9604_s0 = scalar_lea.vmem (!%p10450_p8), [#allocation3], %s5405_s20 }
  0xba   : > { %9215 = dma.done.wait (%p9538_p7), %s541_s17, 1024  }
  0xbb   : > { %9217 = vsyncadd (%p9538_p7), %s541_s17, 4294966272  ;;  %p10451_p6 = scmp.eq.s32.totalorder %s9370_s27, 0 }
  0xbd   : > { %9219 = dma.done.wait (%p10451_p6), [#allocation7], 20480   ;;  %p10452_p10 = pmov %p10451_p6 }
  0xbe   : > { %p10453_p11 = pmov %p10451_p6 }
  0xbf   : > { %9221 = vsyncadd (%p10452_p10), [#allocation7], 4294946816 }
  0xc0   : > { %9223 = dma.done.wait (%p10453_p11), [#allocation10], 36864   ;;  %p10454_p3 = pmov %p10451_p6 }
  0xc2   : > { %9225 = vsyncadd (%p10454_p3), [#allocation10], 4294930432  ;;  %p10455_p5 = pmov %p10454_p3 }
  0xc3   : > { %p10456_p9 = pmov %p10454_p3 }
  0xc4   : > { %9227 = dma.done.wait (%p10455_p5), [#allocation13], 2048  }
  0xc5   : > { %9229 = vsyncadd (%p10456_p9), [#allocation13], 4294965248  ;;  %v9258_v0 = vmov 0.0   ;;  %v796_v1 = vld [vmem:[#allocation6] sm:$0xff]  ;;  %v797_v2 = vld [vmem:[#allocation6 + $0x8] sm:$0xff]  ;;  %vm9260_vm0 = vmmov 0  }
  0xc6   : > { %613 = vst [vmem:[#allocation2] sm:$0xff] %v9258_v0  ;;  %633 = vst [vmem:[#allocation2 + $0x8] sm:$0xff] %v9258_v0  ;;  %v1486_v3 = vld [vmem:[#allocation6 + $0x280] sm:$0xff]  ;;  %v7559_v4 = vpack.c.bf16 %v797_v2, %v796_v1  ;;  %v1487_v5 = vld [vmem:[#allocation6 + $0x288] sm:$0xff]  ;;  %s10457_s28 = sld [smem:[#allocation22_spill]]  ;;  %s10458_s18 = sld [smem:[#allocation23_spill]] }
  0xc7   : > { %614 = vst [vmem:[#allocation2 + $0x18] sm:$0xff] %v9258_v0  ;;  %615 = vst [vmem:[#allocation2 + $0x30] sm:$0xff] %v9258_v0  ;;  %v798_v6 = vld [vmem:[#allocation6 + $0x10] sm:$0xff]  ;;  %v799_v7 = vld [vmem:[#allocation6 + $0x18] sm:$0xff]  ;;  %v7719_v8 = vpack.c.bf16 %v1487_v5, %v1486_v3  ;;  %s10459_s26 = sld [smem:[#allocation24_spill]]  ;;  %s10460_s17 = sld [smem:[#allocation25_spill]] }
  0xc8   : > { %616 = vst [vmem:[#allocation2 + $0x48] sm:$0xff] %v9258_v0  ;;  %617 = vst [vmem:[#allocation2 + $0x60] sm:$0xff] %v9258_v0  ;;  %v7563_v9 = vpack.c.bf16 %v799_v7, %v798_v6  ;;  %v1488_v10 = vld [vmem:[#allocation6 + $0x290] sm:$0xff]  ;;  %v1489_v11 = vld [vmem:[#allocation6 + $0x298] sm:$0xff]  ;;  %7560 = vmatprep.subr.bf16.mxu1 %v7559_v4  ;;  %s10461_s11 = sld [smem:[#allocation26_spill]]  ;;  %s10462_s15 = sld [smem:[#allocation27_spill]] }
  0xc9   : > { %618 = vst [vmem:[#allocation2 + $0x78] sm:$0xff] %v9258_v0  ;;  %619 = vst [vmem:[#allocation2 + $0x90] sm:$0xff] %v9258_v0  ;;  %v800_v12 = vld [vmem:[#allocation6 + $0x20] sm:$0xff]  ;;  %v7723_v13 = vpack.c.bf16 %v1489_v11, %v1488_v10  ;;  %v801_v14 = vld [vmem:[#allocation6 + $0x28] sm:$0xff]  ;;  %7562 = vmatpush3.bf16.msra.mxu1 %v7559_v4  ;;  %7720 = vmatprep.subr.bf16.mxu0 %v7719_v8  ;;  %s5446_s13 = sshll.u32 %s9370_s27, 10  ;;  %s5259_s16 = scalar_lea.sflag [#allocation5], %s9598_s3 }
  0xca   : > { %620 = vst [vmem:[#allocation2 + $0xa8] sm:$0xff] %v9258_v0  ;;  %621 = vst [vmem:[#allocation2 + $0xc0] sm:$0xff] %v9258_v0  ;;  %v1490_v15 = vld [vmem:[#allocation6 + $0x2a0] sm:$0xff]  ;;  %v1491_v16 = vld [vmem:[#allocation6 + $0x2a8] sm:$0xff]  ;;  %7722 = vmatpush3.bf16.msra.mxu0 %v7719_v8  ;;  %7564 = vmatprep.subr.bf16.mxu1 %v7563_v9  ;;  %v7567_v17 = vpack.c.bf16 %v801_v14, %v800_v12  ;;  %p10464_p4 = scmp.ne.s32.totalorder %s10444_s19, 0 }
  0xcb   : > { %622 = vst [vmem:[#allocation2 + $0xd8] sm:$0xff] %v9258_v0  ;;  %623 = vst [vmem:[#allocation2 + $0x10] sm:$0xff] %v9258_v0  ;;  %7724 = vmatprep.subr.bf16.mxu0 %v7723_v13  ;;  %v7727_v18 = vpack.c.bf16 %v1491_v16, %v1490_v15  ;;  %v802_v19 = vld [vmem:[#allocation6 + $0x30] sm:$0xff]  ;;  %v803_v20 = vld [vmem:[#allocation6 + $0x38] sm:$0xff] }
  0xcc   : > { %624 = vst [vmem:[#allocation2 + $0x28] sm:$0xff] %v9258_v0  ;;  %625 = vst [vmem:[#allocation2 + $0x40] sm:$0xff] %v9258_v0  ;;  %v1492_v21 = vld [vmem:[#allocation6 + $0x2b0] sm:$0xff]  ;;  %v1493_v22 = vld [vmem:[#allocation6 + $0x2b8] sm:$0xff]  ;;  %v7571_v23 = vpack.c.bf16 %v803_v20, %v802_v19 }
  0xcd   : > { %626 = vst [vmem:[#allocation2 + $0x58] sm:$0xff] %v9258_v0  ;;  %627 = vst [vmem:[#allocation2 + $0x70] sm:$0xff] %v9258_v0  ;;  %7566 = vmatpush3.bf16.msra.mxu1 %v7563_v9  ;;  %v804_v24 = vld [vmem:[#allocation6 + $0x40] sm:$0xff]  ;;  %v805_v25 = vld [vmem:[#allocation6 + $0x48] sm:$0xff]  ;;  %v7731_v26 = vpack.c.bf16 %v1493_v22, %v1492_v21 }
  0xce   : > { %628 = vst [vmem:[#allocation2 + $0x88] sm:$0xff] %v9258_v0  ;;  %629 = vst [vmem:[#allocation2 + $0xa0] sm:$0xff] %v9258_v0  ;;  %7726 = vmatpush3.bf16.msra.mxu0 %v7723_v13  ;;  %7568 = vmatprep.subr.bf16.mxu1 %v7567_v17  ;;  %v788_v27 = vld [vmem:[#allocation2 + $0x7] sm:$0xff]  ;;  %v1494_v28 = vld [vmem:[#allocation6 + $0x2c0] sm:$0xff]  ;;  %v7575_v31 = vpack.c.bf16 %v805_v25, %v804_v24 }
  0xcf   : > { %630 = vst [vmem:[#allocation2 + $0xb8] sm:$0xff] %v9258_v0  ;;  %631 = vst [vmem:[#allocation2 + $0xd0] sm:$0xff] %v9258_v0  ;;  %7728 = vmatprep.subr.bf16.mxu0 %v7727_v18  ;;  %v1495_v29 = vld [vmem:[#allocation6 + $0x2c8] sm:$0xff]  ;;  %6219 = vmatprep.mubr.f32.mxu1 %v788_v27  ;;  %v9645_v30 = vld [vmem:[%s9604_s0] sm:$0xff] }
  0xd0   : > { %632 = vst [vmem:[#allocation2 + $0xe8] sm:$0xff] %v9258_v0  ;;  %635 = vst [vmem:[#allocation2 + $0xe0] sm:$0xff] %v9258_v0  ;;  %v9648_v32 = vld [vmem:[%s9604_s0 + $0x8] sm:$0xff]  ;;  %v9651_v33 = vld [vmem:[%s9604_s0 + $0x10] sm:$0xff]  ;;  %v657_v35 = vmul.f32 %v9645_v30, %v9645_v30  ;;  %v7735_v41 = vpack.c.bf16 %v1495_v29, %v1494_v28 }
  0xd1   : > { %7570 = vmatpush3.bf16.msra.mxu1 %v7567_v17  ;;  %v9654_v34 = vld [vmem:[%s9604_s0 + $0x18] sm:$0xff]  ;;  %v806_v36 = vld [vmem:[#allocation6 + $0x50] sm:$0xff]  ;;  %v644_v38 = vadd.f32 %v9648_v32, %v9645_v30  ;;  %v658_v39 = vmul.f32 %v9648_v32, %v9648_v32  ;;  %v659_v40 = vmul.f32 %v9651_v33, %v9651_v33  ;;  %v9665_v42 = vld [vmem:[%s9604_s0 + $0x20] sm:$0xff] }
  0xd2   : > { %7730 = vmatpush3.bf16.msra.mxu0 %v7727_v18  ;;  %7572 = vmatprep.subr.bf16.mxu1 %v7571_v23  ;;  %v807_v37 = vld [vmem:[#allocation6 + $0x58] sm:$0xff]  ;;  %v1496_v43 = vld [vmem:[#allocation6 + $0x2d0] sm:$0xff]  ;;  %v660_v46 = vmul.f32 %v9654_v34, %v9654_v34  ;;  %v9671_v49 = vld [vmem:[%s9604_s0 + $0x28] sm:$0xff]  ;;  %v661_v53 = vmul.f32 %v9665_v42, %v9665_v42 }
  0xd3   : > { %7732 = vmatprep.subr.bf16.mxu0 %v7731_v26  ;;  %v1497_v44 = vld [vmem:[#allocation6 + $0x2d8] sm:$0xff]  ;;  %v645_v45 = vadd.f32 %v644_v38, %v9651_v33  ;;  %v665_v47 = vadd.f32 %v658_v39, %v657_v35  ;;  %v7579_v48 = vpack.c.bf16 %v807_v37, %v806_v36  ;;  %v808_v50 = vld [vmem:[#allocation6 + $0x60] sm:$0xff]  ;;  %v809_v51 = vld [vmem:[#allocation6 + $0x68] sm:$0xff]  ;;  %v662_v60 = vmul.f32 %v9671_v49, %v9671_v49 }
  0xd4   : > { %v7739_v55 = vpack.c.bf16 %v1497_v44, %v1496_v43  ;;  %v9677_v56 = vld [vmem:[%s9604_s0 + $0x30] sm:$0xff]  ;;  %v1498_v57 = vld [vmem:[#allocation6 + $0x2e0] sm:$0xff]  ;;  %v1499_v58 = vld [vmem:[#allocation6 + $0x2e8] sm:$0xff]  ;;  %v7583_v62 = vpack.c.bf16 %v809_v51, %v808_v50 }
  0xd5   : > { %7574 = vmatpush3.bf16.msra.mxu1 %v7571_v23  ;;  %v646_v52 = vadd.f32 %v645_v45, %v9654_v34  ;;  %v666_v54 = vadd.f32 %v665_v47, %v659_v40  ;;  %v9683_v63 = vld [vmem:[%s9604_s0 + $0x38] sm:$0xff]  ;;  %v663_v2 = vmul.f32 %v9677_v56, %v9677_v56  ;;  %v7743_v4 = vpack.c.bf16 %v1499_v58, %v1498_v57  ;;  %v810_v5 = vld [vmem:[#allocation6 + $0x70] sm:$0xff]  ;;  %v934_v16 = vld [vmem:[#allocation6 + $0x80] sm:$0xff] }
  0xd6   : > { %7734 = vmatpush3.bf16.msra.mxu0 %v7731_v26  ;;  %7576 = vmatprep.subr.bf16.mxu1 %v7575_v31  ;;  %v811_v6 = vld [vmem:[#allocation6 + $0x78] sm:$0xff]  ;;  %v1500_v7 = vld [vmem:[#allocation6 + $0x2f0] sm:$0xff]  ;;  %v664_v10 = vmul.f32 %v9683_v63, %v9683_v63  ;;  %v935_v17 = vld [vmem:[#allocation6 + $0x88] sm:$0xff] }
  0xd7   : > { %7736 = vmatprep.subr.bf16.mxu0 %v7735_v41  ;;  %v647_v59 = vadd.f32 %v646_v52, %v9665_v42  ;;  %v667_v61 = vadd.f32 %v666_v54, %v660_v46  ;;  %v1501_v8 = vld [vmem:[#allocation6 + $0x2f8] sm:$0xff]  ;;  %v7587_v12 = vpack.c.bf16 %v811_v6, %v810_v5  ;;  %v1625_v20 = vld [vmem:[#allocation6 + $0x300] sm:$0xff]  ;;  %v1626_v21 = vld [vmem:[#allocation6 + $0x308] sm:$0xff]  ;;  %v9692_v22 = vpack.c.bf16 %v935_v17, %v934_v16 }
  0xd8   : > { %v7747_v15 = vpack.c.bf16 %v1501_v8, %v1500_v7  ;;  %v9694_v25 = vpack.c.bf16 %v1626_v21, %v1625_v20  ;;  %v690_v46 = vlaneseq }
  0xd9   : > { %7578 = vmatpush3.bf16.msra.mxu1 %v7575_v31  ;;  %v648_v1 = vadd.f32 %v647_v59, %v9671_v49  ;;  %v668_v3 = vadd.f32 %v667_v61, %v661_v53  ;;  %v687_v53 = vld [vmem:[%s10407_s2] sm:$0x1] }
  0xda   : > { %7738 = vmatpush3.bf16.msra.mxu0 %v7735_v41  ;;  %7580 = vmatprep.subr.bf16.mxu1 %v7579_v48  ;;  %v691_v47 = vshrl.u32 %v690_v46, 7 }
  0xdb   : > { %7740 = vmatprep.subr.bf16.mxu0 %v7739_v55  ;;  %v649_v9 = vadd.f32 %v648_v1, %v9677_v56  ;;  %v669_v11 = vadd.f32 %v668_v3, %v662_v60 }
  0xdc   : > { %v9701_v50 = vsub.s32 0, %v691_v47 }
  0xdd   : > { %7582 = vmatpush3.bf16.msra.mxu1 %v7579_v48  ;;  %v650_v13 = vadd.f32 %v649_v9, %v9683_v63  ;;  %v670_v14 = vadd.f32 %v669_v11, %v663_v2  ;;  %v685_v48 = vld [vmem:[%s10406_s1] sm:$0x1] }
  0xde   : > { %7742 = vmatpush3.bf16.msra.mxu0 %v7739_v55  ;;  %7584 = vmatprep.subr.bf16.mxu1 %v7583_v62 }
  0xdf   : > { %7744 = vmatprep.subr.bf16.mxu0 %v7743_v4  ;;  %v651_v18 = vrot.slane %v650_v13, 4  ;;  %v671_v19 = vadd.f32 %v670_v14, %v664_v10 }
  0xe1   : > { %7586 = vmatpush3.bf16.msra.mxu1 %v7583_v62  ;;  %v652_v23 = vadd.f32 %v651_v18, %v650_v13  ;;  %v672_v24 = vrot.slane %v671_v19, 4 }
  0xe2   : > { %7746 = vmatpush3.bf16.msra.mxu0 %v7743_v4  ;;  %7588 = vmatprep.subr.bf16.mxu1 %v7587_v12 }
  0xe3   : > { %7748 = vmatprep.subr.bf16.mxu0 %v7747_v15  ;;  %v653_v26 = vrot.slane %v652_v23, 2  ;;  %v673_v27 = vadd.f32 %v672_v24, %v671_v19 }
  0xe5   : > { %7590 = vmatpush3.bf16.msra.mxu1 %v7587_v12  ;;  %v654_v28 = vadd.f32 %v653_v26, %v652_v23  ;;  %v674_v29 = vrot.slane %v673_v27, 2 }
  0xe6   : > { %7750 = vmatpush3.bf16.msra.mxu0 %v7747_v15  ;;  %7592 = vmatprep.subr.bf16.mxu1 %v9692_v22 }
  0xe7   : > { %7752 = vmatprep.subr.bf16.mxu0 %v9694_v25  ;;  %v655_v31 = vrot.slane %v654_v28, 1  ;;  %v675_v35 = vadd.f32 %v674_v29, %v673_v27 }
  0xe9   : > { %v656_v36 = vadd.f32 %v655_v31, %v654_v28  ;;  %v676_v37 = vrot.slane %v675_v35, 1 }
  0xeb   : > { %v677_v38 = vadd.f32 %v676_v37, %v675_v35  ;;  %v678_v39 = vmul.f32 0.015625, %v656_v36 }
  0xed   : > { %v679_v40 = vmul.f32 0.015625, %v677_v38  ;;  %v680_v41 = vmul.f32 %v678_v39, %v678_v39 }
  0xef   : > { %v681_v43 = vsub.f32 %v679_v40, %v680_v41 }
  0xf1   : > { %v682_v44 = vmax.f32 %v681_v43, 0.0 }
  0xf3   : > { %v683_v45 = vadd.f32 1e-05, %v682_v44 }
  0xf5   : > { %8887 = vrsqrt.f32 %v683_v45 }
  0xff   : > { %v8888_v51 = vpop.eup %8887 }
 0x100   : > { %v686_v52 = vmul.f32 %v8888_v51, %v685_v48  ;;  %v936_v48 = vld [vmem:[#allocation6 + $0x90] sm:$0xff]  ;;  %v937_v51 = vld [vmem:[#allocation6 + $0x98] sm:$0xff] }
 0x102   : > { %v688_v54 = vmul.f32 %v686_v52, %v678_v39  ;;  %v693_v55 = vrot.slane %v686_v52, %v9701_v50 }
 0x104   : > { %v689_v57 = vsub.f32 %v687_v53, %v688_v54  ;;  %v694_v58 = vmul.f32 %v693_v55, %v9645_v30  ;;  %v695_v59 = vmul.f32 %v693_v55, %v9648_v32  ;;  %v696_v60 = vmul.f32 %v693_v55, %v9651_v33  ;;  %v1627_v54 = vld [vmem:[#allocation6 + $0x310] sm:$0xff] }
 0x105   : > { %v697_v61 = vmul.f32 %v693_v55, %v9654_v34  ;;  %v698_v62 = vmul.f32 %v693_v55, %v9665_v42  ;;  %v699_v1 = vmul.f32 %v693_v55, %v9671_v49  ;;  %v700_v3 = vmul.f32 %v693_v55, %v9677_v56 }
 0x106   : > { %v706_v2 = vrot.slane %v689_v57, %v9701_v50  ;;  %v701_v4 = vmul.f32 %v693_v55, %v9683_v63  ;;  %v1628_v55 = vld [vmem:[#allocation6 + $0x318] sm:$0xff] }
 0x108   : > { %v708_v5 = vadd.f32 %v706_v2, %v694_v58  ;;  %v709_v6 = vadd.f32 %v706_v2, %v695_v59  ;;  %v710_v7 = vadd.f32 %v706_v2, %v696_v60  ;;  %v711_v30 = vadd.f32 %v706_v2, %v697_v61  ;;  %v938_v60 = vld [vmem:[#allocation6 + $0xa0] sm:$0xff]  ;;  %v939_v61 = vld [vmem:[#allocation6 + $0xa8] sm:$0xff] }
 0x109   : > { %v712_v8 = vadd.f32 %v706_v2, %v698_v62  ;;  %v713_v32 = vadd.f32 %v706_v2, %v699_v1  ;;  %v714_v34 = vadd.f32 %v706_v2, %v700_v3  ;;  %v715_v42 = vadd.f32 %v706_v2, %v701_v4  ;;  %v1629_v3 = vld [vmem:[#allocation6 + $0x320] sm:$0xff] }
 0x10a   : > { %v5412_v9 = vmul.f32 -1.442695, %v708_v5  ;;  %v5413_v33 = vmul.f32 -1.442695, %v709_v6  ;;  %v5414_v10 = vmul.f32 -1.442695, %v710_v7  ;;  %v7595_v59 = vpack.c.bf16 %v937_v51, %v936_v48 }
 0x10b   : > { %v5415_v11 = vmul.f32 -1.442695, %v711_v30  ;;  %v5416_v49 = vmul.f32 -1.442695, %v712_v8  ;;  %v5417_v12 = vmul.f32 -1.442695, %v713_v32  ;;  %v7755_v2 = vpack.c.bf16 %v1628_v55, %v1627_v54 }
 0x10c   : > { %8889 = vpow2.f32 %v5412_v9  ;;  %v5418_v56 = vmul.f32 -1.442695, %v714_v34  ;;  %v5419_v63 = vmul.f32 -1.442695, %v715_v42  ;;  %v1639_v48 = vld [vmem:[#allocation6 + $0x370] sm:$0xff]  ;;  %v1640_v51 = vld [vmem:[#allocation6 + $0x378] sm:$0xff] }
 0x10d   : > { %8891 = vpow2.f32 %v5413_v33  ;;  %v940_v33 = vld [vmem:[#allocation6 + $0xb0] sm:$0xff]  ;;  %v1072_v54 = vld [vmem:[#allocation6 + $0x100] sm:$0xff]  ;;  %v1073_v55 = vld [vmem:[#allocation6 + $0x108] sm:$0xff] }
 0x10e   : > { %8893 = vpow2.f32 %v5414_v10  ;;  %v941_v10 = vld [vmem:[#allocation6 + $0xb8] sm:$0xff] }
 0x10f   : > { %8895 = vpow2.f32 %v5415_v11 }
 0x110   : > { %8897 = vpow2.f32 %v5416_v49  ;;  %v7603_v49 = vpack.c.bf16 %v941_v10, %v940_v33 }
 0x111   : > { %8899 = vpow2.f32 %v5417_v12 }
 0x112   : > { %8901 = vpow2.f32 %v5418_v56 }
 0x113   : > { %8903 = vpow2.f32 %v5419_v63  ;;  %v942_v63 = vld [vmem:[#allocation6 + $0xc0] sm:$0xff] }
 0x116   : > { %v8890_v13 = vpop.eup %8889 }
 0x117   : > { %v8892_v14 = vpop.eup %8891  ;;  %v740_v15 = vadd.f32 1.0, %v8890_v13  ;;  %v943_v13 = vld [vmem:[#allocation6 + $0xc8] sm:$0xff] }
 0x118   : > { %v8894_v16 = vpop.eup %8893  ;;  %v741_v17 = vadd.f32 1.0, %v8892_v14  ;;  %v1633_v14 = vld [vmem:[#allocation6 + $0x340] sm:$0xff] }
 0x119   : > { %v8896_v18 = vpop.eup %8895  ;;  %8905 = vrcp.f32 %v740_v15  ;;  %v742_v19 = vadd.f32 1.0, %v8894_v16  ;;  %v1634_v15 = vld [vmem:[#allocation6 + $0x348] sm:$0xff] }
 0x11a   : > { %v8898_v20 = vpop.eup %8897  ;;  %8907 = vrcp.f32 %v741_v17  ;;  %v743_v21 = vadd.f32 1.0, %v8896_v18 }
 0x11b   : > { %v8900_v23 = vpop.eup %8899  ;;  %8909 = vrcp.f32 %v742_v19  ;;  %v744_v24 = vadd.f32 1.0, %v8898_v20  ;;  %v7607_v19 = vpack.c.bf16 %v943_v13, %v942_v63 }
 0x11c   : > { %v8902_v26 = vpop.eup %8901  ;;  %8911 = vrcp.f32 %v743_v21  ;;  %v745_v27 = vadd.f32 1.0, %v8900_v23  ;;  %v7767_v21 = vpack.c.bf16 %v1634_v15, %v1633_v14  ;;  %v944_v23 = vld [vmem:[#allocation6 + $0xd0] sm:$0xff]  ;;  %v1079_v15 = vld [vmem:[#allocation6 + $0x138] sm:$0xff] }
 0x11d   : > { %v8904_v28 = vpop.eup %8903  ;;  %8913 = vrcp.f32 %v744_v24  ;;  %v746_v29 = vadd.f32 1.0, %v8902_v26  ;;  %v945_v24 = vld [vmem:[#allocation6 + $0xd8] sm:$0xff]  ;;  %v1635_v26 = vld [vmem:[#allocation6 + $0x350] sm:$0xff] }
 0x11e   : > { %8915 = vrcp.f32 %v745_v27  ;;  %v747_v31 = vadd.f32 1.0, %v8904_v28  ;;  %v1636_v27 = vld [vmem:[#allocation6 + $0x358] sm:$0xff]  ;;  %v7611_v28 = vpack.c.bf16 %v945_v24, %v944_v23  ;;  %v1078_v14 = vld [vmem:[#allocation6 + $0x130] sm:$0xff] }
 0x11f   : > { %8917 = vrcp.f32 %v746_v29  ;;  %v7771_v29 = vpack.c.bf16 %v1636_v27, %v1635_v26  ;;  %v7635_v23 = vpack.c.bf16 %v1079_v15, %v1078_v14  ;;  %v1080_v26 = vld [vmem:[#allocation6 + $0x140] sm:$0xff]  ;;  %v1081_v27 = vld [vmem:[#allocation6 + $0x148] sm:$0xff]  ;;  %v1213_v14 = vld [vmem:[#allocation6 + $0x198] sm:$0xff] }
 0x120   : > { %8919 = vrcp.f32 %v747_v31  ;;  %v946_v31 = vld [vmem:[#allocation6 + $0xe0] sm:$0xff]  ;;  %v1903_v15 = vld [vmem:[#allocation6 + $0x410] sm:$0xff] }
 0x123   : > { %v8906_v35 = vpop.eup %8905 }
 0x124   : > { %v8908_v36 = vpop.eup %8907  ;;  %v9716_v37 = vmul.f32 %v8906_v35, %v708_v5  ;;  %v1630_v5 = vld [vmem:[#allocation6 + $0x328] sm:$0xff] }
 0x125   : > { %v8910_v38 = vpop.eup %8909  ;;  %v9718_v39 = vmul.f32 %v8908_v36, %v709_v6  ;;  %v7759_v9 = vpack.c.bf16 %v1630_v5, %v1629_v3  ;;  %v947_v35 = vld [vmem:[#allocation6 + $0xe8] sm:$0xff]  ;;  %v1637_v36 = vld [vmem:[#allocation6 + $0x360] sm:$0xff]  ;;  %v1074_v3 = vld [vmem:[#allocation6 + $0x110] sm:$0xff] }
 0x126   : > { %v8912_v40 = vpop.eup %8911  ;;  %773 = vst [vmem:[#allocation2 + $0x20] sm:$0xff] %v9716_v37  ;;  %v9721_v41 = vmul.f32 %v8910_v38, %v710_v7  ;;  %v1638_v38 = vld [vmem:[#allocation6 + $0x368] sm:$0xff]  ;;  %v1075_v5 = vld [vmem:[#allocation6 + $0x118] sm:$0xff] }
 0x127   : > { %v8914_v43 = vpop.eup %8913  ;;  %774 = vst [vmem:[#allocation2 + $0x38] sm:$0xff] %v9718_v39  ;;  %v9724_v44 = vmul.f32 %v8912_v40, %v711_v30  ;;  %v7615_v40 = vpack.c.bf16 %v947_v35, %v946_v31  ;;  %v7627_v33 = vpack.c.bf16 %v1075_v5, %v1074_v3  ;;  %v7639_v35 = vpack.c.bf16 %v1081_v27, %v1080_v26  ;;  %v1087_v3 = vld [vmem:[#allocation6 + $0x178] sm:$0xff]  ;;  %v1777_v5 = vld [vmem:[#allocation6 + $0x3f0] sm:$0xff]  ;;  %v1215_v26 = vld [vmem:[#allocation6 + $0x1a8] sm:$0xff] }
 0x128   : > { %v8916_v45 = vpop.eup %8915  ;;  %775 = vst [vmem:[#allocation2 + $0x50] sm:$0xff] %v9721_v41  ;;  %v9727_v46 = vmul.f32 %v8914_v43, %v712_v8  ;;  %v7599_v8 = vpack.c.bf16 %v939_v61, %v938_v60  ;;  %v7775_v43 = vpack.c.bf16 %v1638_v38, %v1637_v36  ;;  %v1764_v60 = vld [vmem:[#allocation6 + $0x388] sm:$0xff]  ;;  %v7623_v61 = vpack.c.bf16 %v1073_v55, %v1072_v54  ;;  %v1775_v55 = vld [vmem:[#allocation6 + $0x3e0] sm:$0xff] }
 0x129   : > { %v8918_v47 = vpop.eup %8917  ;;  %776 = vst [vmem:[#allocation2 + $0x68] sm:$0xff] %v9724_v44  ;;  %v9730_v52 = vmul.f32 %v8916_v45, %v713_v32  ;;  %v948_v45 = vld [vmem:[#allocation6 + $0xf0] sm:$0xff]  ;;  %v1085_v54 = vld [vmem:[#allocation6 + $0x168] sm:$0xff]  ;;  %v1905_v27 = vld [vmem:[#allocation6 + $0x420] sm:$0xff] }
 0x12a   : > { %v8920_v53 = vpop.eup %8919  ;;  %777 = vst [vmem:[#allocation2 + $0x80] sm:$0xff] %v9727_v46  ;;  %v9733_v57 = vmul.f32 %v8918_v47, %v714_v34  ;;  %v1631_v34 = vld [vmem:[#allocation6 + $0x330] sm:$0xff]  ;;  %v949_v47 = vld [vmem:[#allocation6 + $0xf8] sm:$0xff] }
 0x12b   : > { %778 = vst [vmem:[#allocation2 + $0x98] sm:$0xff] %v9730_v52  ;;  %v9736_v58 = vmul.f32 %v8920_v53, %v715_v42  ;;  %v7619_v53 = vpack.c.bf16 %v949_v47, %v948_v45  ;;  %v1623_v36 = vld [vmem:[#allocation2 + $0xdf] sm:$0xff]  ;;  %v1774_v47 = vld [vmem:[#allocation6 + $0x3d8] sm:$0xff] }
 0x12c   : > { %779 = vst [vmem:[#allocation2 + $0xb0] sm:$0xff] %v9733_v57  ;;  %v1773_v45 = vld [vmem:[#allocation6 + $0x3d0] sm:$0xff] }
 0x12d   : > { %v9739_v62 = vld [vmem:[#allocation2 + $0x1f] sm:$0xff]  ;;  %780 = vst [vmem:[#allocation2 + $0xc8] sm:$0xff] %v9736_v58 }
 0x12e   : > { %v9741_v1 = vld [vmem:[#allocation2 + $0x21] sm:$0xff]  ;;  %6220 = vmatmul.mubr.f32.vlgmr.msra.gmra.mrb[0].mxu1 %v9739_v62  ;;  %v9746_v4 = vld [vmem:[#allocation2 + $0x39] sm:$0xff] }
 0x12f   : > { %6439 = vmatprep.mubr.f32.mxu0 %v9741_v1  ;;  %v9748_v6 = vld [vmem:[#allocation2 + $0x37] sm:$0xff]  ;;  %7594 = vmatpush3.bf16.msra.mxu1 %v9692_v22  ;;  %v9752_v7 = vld [vmem:[#allocation2 + $0x4f] sm:$0xff] }
 0x130   : > { %6440 = vmatmul.mubr.f32.vlgmr.msra.gmra.mrb[0].mxu0 %v9746_v4  ;;  %v9754_v30 = vld [vmem:[#allocation2 + $0x51] sm:$0xff]  ;;  %7596 = vmatprep.subr.bf16.mxu1 %v7595_v59  ;;  %v9757_v32 = vld [vmem:[#allocation2 + $0x69] sm:$0xff] }
 0x131   : > { %7754 = vmatpush3.bf16.msra.mxu0 %v9694_v25  ;;  %6222 = vmatprep.mubr.f32.mxu1 %v9748_v6  ;;  %v1632_v22 = vld [vmem:[#allocation6 + $0x338] sm:$0xff]  ;;  %v9765_v25 = vld [vmem:[#allocation2 + $0x7f] sm:$0xff] }
 0x132   : > { %7756 = vmatprep.subr.bf16.mxu0 %v7755_v2  ;;  %6223 = vmatmul.mubr.f32.gmra.mrb[2].mxu1 %v9752_v7  ;;  %v9762_v11 = vld [vmem:[#allocation2 + $0x67] sm:$0xff]  ;;  %v9769_v12 = vld [vmem:[#allocation2 + $0x99] sm:$0xff]  ;;  %v7763_v56 = vpack.c.bf16 %v1632_v22, %v1631_v34  ;;  %v1076_v34 = vld [vmem:[#allocation6 + $0x120] sm:$0xff] }
 0x133   : > { %6442 = vmatprep.mubr.f32.mxu0 %v9754_v30  ;;  %7598 = vmatpush3.bf16.msra.mxu1 %v7595_v59  ;;  %v9767_v42 = vld [vmem:[#allocation2 + $0x81] sm:$0xff]  ;;  %v9774_v16 = vld [vmem:[#allocation2 + $0x97] sm:$0xff]  ;;  %v9777_v17 = vld [vmem:[#allocation2 + $0xaf] sm:$0xff] }
 0x134   : > { %6443 = vmatmul.mubr.f32.gmra.mrb[2].mxu0 %v9757_v32  ;;  %7600 = vmatprep.subr.bf16.mxu1 %v7599_v8  ;;  %v9779_v18 = vld [vmem:[#allocation2 + $0xb1] sm:$0xff]  ;;  %v9781_v20 = vld [vmem:[#allocation2 + $0xc9] sm:$0xff] }
 0x135   : > { %7758 = vmatpush3.bf16.msra.mxu0 %v7755_v2  ;;  %6225 = vmatprep.mubr.f32.mxu1 %v9762_v11  ;;  %v1763_v59 = vld [vmem:[#allocation6 + $0x380] sm:$0xff]  ;;  %v1077_v22 = vld [vmem:[#allocation6 + $0x128] sm:$0xff]  ;;  %v9799_v31 = vld [vmem:[#allocation2 + $0xc7] sm:$0xff] }
 0x136   : > { %7760 = vmatprep.subr.bf16.mxu0 %v7759_v9  ;;  %6226 = vmatmul.mubr.f32.gmra.mrb[4].mxu1 %v9765_v25  ;;  %v7783_v2 = vpack.c.bf16 %v1764_v60, %v1763_v59  ;;  %v7631_v63 = vpack.c.bf16 %v1077_v22, %v1076_v34  ;;  %v1776_v59 = vld [vmem:[#allocation6 + $0x3e8] sm:$0xff]  ;;  %v1901_v22 = vld [vmem:[#allocation6 + $0x400] sm:$0xff] }
 0x137   : > { %6445 = vmatprep.mubr.f32.mxu0 %v9767_v42  ;;  %7602 = vmatpush3.bf16.msra.mxu1 %v7599_v8  ;;  %v1765_v8 = vld [vmem:[#allocation6 + $0x390] sm:$0xff]  ;;  %v1211_v34 = vld [vmem:[#allocation6 + $0x188] sm:$0xff] }
 0x138   : > { %6446 = vmatmul.mubr.f32.gmra.mrb[4].mxu0 %v9769_v12  ;;  %7604 = vmatprep.subr.bf16.mxu1 %v7603_v49 }
 0x139   : > { %7762 = vmatpush3.bf16.msra.mxu0 %v7759_v9  ;;  %6228 = vmatprep.mubr.f32.mxu1 %v9774_v16  ;;  %v1766_v9 = vld [vmem:[#allocation6 + $0x398] sm:$0xff] }
 0x13a   : > { %7764 = vmatprep.subr.bf16.mxu0 %v7763_v56  ;;  %6229 = vmatmul.mubr.f32.gmra.mrb[6].mxu1 %v9777_v17  ;;  %v7787_v10 = vpack.c.bf16 %v1766_v9, %v1765_v8  ;;  %v1778_v8 = vld [vmem:[#allocation6 + $0x3f8] sm:$0xff] }
 0x13b   : > { %6448 = vmatprep.mubr.f32.mxu0 %v9779_v18  ;;  %7606 = vmatpush3.bf16.msra.mxu1 %v7603_v49  ;;  %v1767_v49 = vld [vmem:[#allocation6 + $0x3a0] sm:$0xff] }
 0x13c   : > { %6449 = vmatmul.mubr.f32.gmra.mrb[6].mxu0 %v9781_v20  ;;  %7608 = vmatprep.subr.bf16.mxu1 %v7607_v19 }
 0x13d   : > { %7766 = vmatpush3.bf16.msra.mxu0 %v7763_v56  ;;  %6263 = vmatprep.mubr.f32.mxu1 %v9258_v0  ;;  %v7779_v0 = vpack.c.bf16 %v1640_v51, %v1639_v48  ;;  %v1768_v56 = vld [vmem:[#allocation6 + $0x3a8] sm:$0xff]  ;;  %v1063_v48 = vld [vmem:[#allocation2 + $0x9] sm:$0xff] }
 0x13e   : > { %7768 = vmatprep.subr.bf16.mxu0 %v7767_v21  ;;  %6483 = vmatprep.mubr.f32.mxu0 %v9748_v6  ;;  %v7791_v13 = vpack.c.bf16 %v1768_v56, %v1767_v49  ;;  %v1902_v49 = vld [vmem:[#allocation6 + $0x408] sm:$0xff] }
 0x13f   : > { %7610 = vmatpush3.bf16.msra.mxu1 %v7607_v19  ;;  %v1769_v19 = vld [vmem:[#allocation6 + $0x3b0] sm:$0xff] }
 0x140   : > { %7612 = vmatprep.subr.bf16.mxu1 %v7611_v28 }
 0x141   : > { %7770 = vmatpush3.bf16.msra.mxu0 %v7767_v21  ;;  %v1770_v21 = vld [vmem:[#allocation6 + $0x3b8] sm:$0xff] }
 0x142   : > { %7772 = vmatprep.subr.bf16.mxu0 %v7771_v29  ;;  %v7795_v24 = vpack.c.bf16 %v1770_v21, %v1769_v19  ;;  %v1904_v19 = vld [vmem:[#allocation6 + $0x418] sm:$0xff] }
 0x143   : > { %7614 = vmatpush3.bf16.msra.mxu1 %v7611_v28  ;;  %v1771_v28 = vld [vmem:[#allocation6 + $0x3c0] sm:$0xff] }
 0x144   : > { %7616 = vmatprep.subr.bf16.mxu1 %v7615_v40 }
 0x145   : > { %7774 = vmatpush3.bf16.msra.mxu0 %v7771_v29  ;;  %v1772_v29 = vld [vmem:[#allocation6 + $0x3c8] sm:$0xff] }
 0x146   : > { %7776 = vmatprep.subr.bf16.mxu0 %v7775_v43  ;;  %v7799_v38 = vpack.c.bf16 %v1772_v29, %v1771_v28  ;;  %v1906_v28 = vld [vmem:[#allocation6 + $0x428] sm:$0xff] }
 0x147   : > { %7618 = vmatpush3.bf16.msra.mxu1 %v7615_v40  ;;  %v1082_v40 = vld [vmem:[#allocation6 + $0x150] sm:$0xff] }
 0x148   : > { %7620 = vmatprep.subr.bf16.mxu1 %v7619_v53 }
 0x149   : > { %7778 = vmatpush3.bf16.msra.mxu0 %v7775_v43  ;;  %v1083_v43 = vld [vmem:[#allocation6 + $0x158] sm:$0xff] }
 0x14a   : > { %7780 = vmatprep.subr.bf16.mxu0 %v7779_v0  ;;  %v7643_v51 = vpack.c.bf16 %v1083_v43, %v1082_v40  ;;  %v1907_v40 = vld [vmem:[#allocation6 + $0x430] sm:$0xff]  ;;  %v1908_v43 = vld [vmem:[#allocation6 + $0x438] sm:$0xff] }
 0x14b   : > { %7622 = vmatpush3.bf16.msra.mxu1 %v7619_v53  ;;  %v7803_v53 = vpack.c.bf16 %v1774_v47, %v1773_v45  ;;  %v7827_v45 = vpack.c.bf16 %v1908_v43, %v1907_v40  ;;  %v1218_v47 = vld [vmem:[#allocation6 + $0x1c0] sm:$0xff]  ;;  %v9259_v43 = vmov 0.0|0.0  }
 0x14c   : > { %7624 = vmatprep.subr.bf16.mxu1 %v7623_v61 }
 0x14d   : > { %7782 = vmatpush3.bf16.msra.mxu0 %v7779_v0  ;;  %v1084_v0 = vld [vmem:[#allocation6 + $0x160] sm:$0xff] }
 0x14e   : > { %7784 = vmatprep.subr.bf16.mxu0 %v7783_v2  ;;  %6264 = vmatmul.mubr.f32.vlgmr.msra.gmra.mrb[0].mxu1 %v9716_v37  ;;  %v7647_v60 = vpack.c.bf16 %v1085_v54, %v1084_v0 }
 0x14f   : > { %7626 = vmatpush3.bf16.msra.mxu1 %v7623_v61  ;;  %6266 = vmatprep.mubr.f32.mxu1 %v9718_v39  ;;  %v7807_v61 = vpack.c.bf16 %v1776_v59, %v1775_v55  ;;  %v1220_v55 = vld [vmem:[#allocation6 + $0x1d0] sm:$0xff]  ;;  %v1221_v59 = vld [vmem:[#allocation6 + $0x1d8] sm:$0xff] }
 0x150   : > { %6484 = vmatmul.mubr.f32.vlgmr.msra.gmra.mrb[0].mxu0 %v9752_v7  ;;  %7628 = vmatprep.subr.bf16.mxu1 %v7627_v33 }
 0x151   : > { %7786 = vmatpush3.bf16.msra.mxu0 %v7783_v2  ;;  %6486 = vmatprep.mubr.f32.mxu0 %v9762_v11  ;;  %v1086_v2 = vld [vmem:[#allocation6 + $0x170] sm:$0xff] }
 0x152   : > { %7788 = vmatprep.subr.bf16.mxu0 %v7787_v10  ;;  %6267 = vmatmul.mubr.f32.gmra.mrb[2].mxu1 %v9721_v41  ;;  %v7651_v9 = vpack.c.bf16 %v1087_v3, %v1086_v2  ;;  %v9818_v2 = vld [vmem:[#allocation2] sm:$0xff]  ;;  %v7675_v3 = vpack.c.bf16 %v1221_v59, %v1220_v55  ;;  %v2076_v55 = vld [vmem:[#allocation8 + $0x60] sm:$0xff]  ;;  %v2077_v59 = vld [vmem:[#allocation8 + $0x68] sm:$0xff] }
 0x153   : > { %7630 = vmatpush3.bf16.msra.mxu1 %v7627_v33  ;;  %6269 = vmatprep.mubr.f32.mxu1 %v9724_v44  ;;  %v7811_v33 = vpack.c.bf16 %v1778_v8, %v1777_v5  ;;  %v1222_v8 = vld [vmem:[#allocation6 + $0x1e0] sm:$0xff] }
 0x154   : > { %6487 = vmatmul.mubr.f32.gmra.mrb[2].mxu0 %v9765_v25  ;;  %7632 = vmatprep.subr.bf16.mxu1 %v7631_v63 }
 0x155   : > { %7790 = vmatpush3.bf16.msra.mxu0 %v7787_v10  ;;  %6489 = vmatprep.mubr.f32.mxu0 %v9774_v16  ;;  %v1210_v10 = vld [vmem:[#allocation6 + $0x180] sm:$0xff] }
 0x156   : > { %7792 = vmatprep.subr.bf16.mxu0 %v7791_v13  ;;  %6270 = vmatmul.mubr.f32.gmra.mrb[4].mxu1 %v9727_v46  ;;  %v7655_v56 = vpack.c.bf16 %v1211_v34, %v1210_v10  ;;  %v1914_v10 = vld [vmem:[#allocation6 + $0x468] sm:$0xff] }
 0x157   : > { %7634 = vmatpush3.bf16.msra.mxu1 %v7631_v63  ;;  %6272 = vmatprep.mubr.f32.mxu1 %v9730_v52  ;;  %v7815_v63 = vpack.c.bf16 %v1902_v49, %v1901_v22  ;;  %v1224_v49 = vld [vmem:[#allocation6 + $0x1f0] sm:$0xff] }
 0x158   : > { %6490 = vmatmul.mubr.f32.gmra.mrb[4].mxu0 %v9777_v17  ;;  %7636 = vmatprep.subr.bf16.mxu1 %v7635_v23 }
 0x159   : > { %7794 = vmatpush3.bf16.msra.mxu0 %v7791_v13  ;;  %6492 = vmatprep.mubr.f32.mxu0 %v9799_v31  ;;  %v1212_v13 = vld [vmem:[#allocation6 + $0x190] sm:$0xff] }
 0x15a   : > { %7796 = vmatprep.subr.bf16.mxu0 %v7795_v24  ;;  %6273 = vmatmul.mubr.f32.gmra.mrb[6].mxu1 %v9733_v57  ;;  %v7659_v21 = vpack.c.bf16 %v1213_v14, %v1212_v13  ;;  %v1916_v13 = vld [vmem:[#allocation6 + $0x478] sm:$0xff] }
 0x15b   : > { %7638 = vmatpush3.bf16.msra.mxu1 %v7635_v23  ;;  %6307 = vmatprep.mubr.f32.mxu1 %v1063_v48  ;;  %v7819_v23 = vpack.c.bf16 %v1904_v19, %v1903_v15  ;;  %v1219_v48 = vld [vmem:[#allocation6 + $0x1c8] sm:$0xff]  ;;  %v1348_v15 = vld [vmem:[#allocation6 + $0x200] sm:$0xff] }
 0x15c   : > { %6493 = vmatmul.mubr.f32.gmra.mrb[6].mxu0 %v1623_v36  ;;  %7640 = vmatprep.subr.bf16.mxu1 %v7639_v35  ;;  %v1216_v36 = vld [vmem:[#allocation6 + $0x1b0] sm:$0xff]  ;;  %v7671_v0 = vpack.c.bf16 %v1219_v48, %v1218_v47  ;;  %v1349_v19 = vld [vmem:[#allocation6 + $0x208] sm:$0xff]  ;;  %v2072_v47 = vld [vmem:[#allocation8 + $0x40] sm:$0xff] }
 0x15d   : > { %7798 = vmatpush3.bf16.msra.mxu0 %v7795_v24  ;;  %6527 = vmatprep.mubr.f32.mxu0 %v9718_v39  ;;  %v1214_v24 = vld [vmem:[#allocation6 + $0x1a0] sm:$0xff]  ;;  %v2073_v48 = vld [vmem:[#allocation8 + $0x48] sm:$0xff] }
 0x15e   : > { %7800 = vmatprep.subr.bf16.mxu0 %v7799_v38  ;;  %v7663_v29 = vpack.c.bf16 %v1215_v26, %v1214_v24  ;;  %v1352_v26 = vld [vmem:[#allocation6 + $0x220] sm:$0xff] }
 0x15f   : > { %7642 = vmatpush3.bf16.msra.mxu1 %v7639_v35  ;;  %v7823_v35 = vpack.c.bf16 %v1906_v28, %v1905_v27  ;;  %v1353_v27 = vld [vmem:[#allocation6 + $0x228] sm:$0xff] }
 0x160   : > { %7644 = vmatprep.subr.bf16.mxu1 %v7643_v51  ;;  %v7695_v28 = vpack.c.bf16 %v1353_v27, %v1352_v26 }
 0x161   : > { %7802 = vmatpush3.bf16.msra.mxu0 %v7799_v38  ;;  %v1217_v38 = vld [vmem:[#allocation6 + $0x1b8] sm:$0xff] }
 0x162   : > { %7804 = vmatprep.subr.bf16.mxu0 %v7803_v53 }
 0x163   : > { %7646 = vmatpush3.bf16.msra.mxu1 %v7643_v51  ;;  %v1909_v51 = vld [vmem:[#allocation6 + $0x440] sm:$0xff] }
 0x164   : > { %7648 = vmatprep.subr.bf16.mxu1 %v7647_v60 }
 0x165   : > { %7806 = vmatpush3.bf16.msra.mxu0 %v7803_v53  ;;  %v1910_v53 = vld [vmem:[#allocation6 + $0x448] sm:$0xff] }
 0x166   : > { %7808 = vmatprep.subr.bf16.mxu0 %v7807_v61  ;;  %v7831_v54 = vpack.c.bf16 %v1910_v53, %v1909_v51  ;;  %v9862_v51 = vpack.c.bf16 %v2073_v48, %v2072_v47  ;;  %v2074_v53 = vld [vmem:[#allocation8 + $0x50] sm:$0xff] }
 0x167   : > { %7650 = vmatpush3.bf16.msra.mxu1 %v7647_v60  ;;  %v1911_v60 = vld [vmem:[#allocation6 + $0x450] sm:$0xff] }
 0x168   : > { %7652 = vmatprep.subr.bf16.mxu1 %v7651_v9 }
 0x169   : > { %7810 = vmatpush3.bf16.msra.mxu0 %v7807_v61  ;;  %v1912_v61 = vld [vmem:[#allocation6 + $0x458] sm:$0xff] }
 0x16a   : > { %7812 = vmatprep.subr.bf16.mxu0 %v7811_v33  ;;  %v7835_v5 = vpack.c.bf16 %v1912_v61, %v1911_v60  ;;  %v9870_v60 = vpack.c.bf16 %v2077_v59, %v2076_v55  ;;  %v2078_v61 = vld [vmem:[#allocation8 + $0x70] sm:$0xff] }
 0x16b   : > { %7654 = vmatpush3.bf16.msra.mxu1 %v7651_v9  ;;  %v1223_v9 = vld [vmem:[#allocation6 + $0x1e8] sm:$0xff] }
 0x16c   : > { %7656 = vmatprep.subr.bf16.mxu1 %v7655_v56  ;;  %v7679_v34 = vpack.c.bf16 %v1223_v9, %v1222_v8 }
 0x16d   : > { %7814 = vmatpush3.bf16.msra.mxu0 %v7811_v33  ;;  %v1913_v33 = vld [vmem:[#allocation6 + $0x460] sm:$0xff] }
 0x16e   : > { %7816 = vmatprep.subr.bf16.mxu0 %v7815_v63  ;;  %6308 = vmatmul.mubr.f32.vlgmr.msra.gmra.mrb[0].mxu1 %v9741_v1  ;;  %v7667_v1 = vpack.c.bf16 %v1217_v38, %v1216_v36  ;;  %v7839_v22 = vpack.c.bf16 %v1914_v10, %v1913_v33  ;;  %v1356_v36 = vld [vmem:[#allocation6 + $0x240] sm:$0xff]  ;;  %v1357_v38 = vld [vmem:[#allocation6 + $0x248] sm:$0xff] }
 0x16f   : > { %7658 = vmatpush3.bf16.msra.mxu1 %v7655_v56  ;;  %6310 = vmatprep.mubr.f32.mxu1 %v9746_v4  ;;  %v1225_v56 = vld [vmem:[#allocation6 + $0x1f8] sm:$0xff] }
 0x170   : > { %6528 = vmatmul.mubr.f32.vlgmr.msra.gmra.mrb[0].mxu0 %v9721_v41  ;;  %7660 = vmatprep.subr.bf16.mxu1 %v7659_v21  ;;  %v7683_v14 = vpack.c.bf16 %v1225_v56, %v1224_v49 }
 0x171   : > { %7818 = vmatpush3.bf16.msra.mxu0 %v7815_v63  ;;  %6530 = vmatprep.mubr.f32.mxu0 %v9724_v44  ;;  %v1915_v63 = vld [vmem:[#allocation6 + $0x470] sm:$0xff] }
 0x172   : > { %7820 = vmatprep.subr.bf16.mxu0 %v7819_v23  ;;  %6311 = vmatmul.mubr.f32.gmra.mrb[2].mxu1 %v9754_v30 }
 0x173   : > { %7662 = vmatpush3.bf16.msra.mxu1 %v7659_v21  ;;  %6313 = vmatprep.mubr.f32.mxu1 %v9757_v32  ;;  %v1350_v21 = vld [vmem:[#allocation6 + $0x210] sm:$0xff] }
 0x174   : > { %6531 = vmatmul.mubr.f32.gmra.mrb[2].mxu0 %v9727_v46  ;;  %7664 = vmatprep.subr.bf16.mxu1 %v7663_v29 }
 0x175   : > { %7822 = vmatpush3.bf16.msra.mxu0 %v7819_v23  ;;  %6533 = vmatprep.mubr.f32.mxu0 %v9730_v52  ;;  %v1351_v23 = vld [vmem:[#allocation6 + $0x218] sm:$0xff] }
 0x176   : > { %7824 = vmatprep.subr.bf16.mxu0 %v7823_v35  ;;  %6314 = vmatmul.mubr.f32.gmra.mrb[4].mxu1 %v9767_v42  ;;  %v7691_v24 = vpack.c.bf16 %v1351_v23, %v1350_v21 }
 0x177   : > { %7666 = vmatpush3.bf16.msra.mxu1 %v7663_v29  ;;  %6316 = vmatprep.mubr.f32.mxu1 %v9769_v12  ;;  %v1354_v29 = vld [vmem:[#allocation6 + $0x230] sm:$0xff] }
 0x178   : > { %6534 = vmatmul.mubr.f32.gmra.mrb[4].mxu0 %v9733_v57  ;;  %7668 = vmatprep.subr.bf16.mxu1 %v7667_v1 }
 0x179   : > { %7826 = vmatpush3.bf16.msra.mxu0 %v7823_v35  ;;  %6536 = vmatprep.mubr.f32.mxu0 %v9736_v58  ;;  %v1355_v35 = vld [vmem:[#allocation6 + $0x238] sm:$0xff] }
 0x17a   : > { %7828 = vmatprep.subr.bf16.mxu0 %v7827_v45  ;;  %6317 = vmatmul.mubr.f32.gmra.mrb[6].mxu1 %v9779_v18 }
 0x17b   : > { %7670 = vmatpush3.bf16.msra.mxu1 %v7667_v1  ;;  %6351 = vmatprep.mubr.f32.mxu1 %v9739_v62  ;;  %v7843_v62 = vpack.c.bf16 %v1916_v13, %v1915_v63  ;;  %v2071_v1 = vld [vmem:[#allocation8 + $0x38] sm:$0xff]  ;;  %v5420_v63 = vld [vmem:[%s10409_s4] ss:$0 sm:$0xff] }
 0x17c   : > { %6537 = vmatmul.mubr.f32.gmra.mrb[6].mxu0 %v9818_v2  ;;  %7672 = vmatprep.subr.bf16.mxu1 %v7671_v0 }
 0x17d   : > { %7830 = vmatpush3.bf16.msra.mxu0 %v7827_v45  ;;  %6571 = vmatprep.mubr.f32.mxu0 %v9746_v4  ;;  %v7687_v4 = vpack.c.bf16 %v1349_v19, %v1348_v15 }
 0x17e   : > { %7832 = vmatprep.subr.bf16.mxu0 %v7831_v54 }
 0x17f   : > { %7674 = vmatpush3.bf16.msra.mxu1 %v7671_v0  ;;  %v2075_v0 = vld [vmem:[#allocation8 + $0x58] sm:$0xff] }
 0x180   : > { %7676 = vmatprep.subr.bf16.mxu1 %v7675_v3 }
 0x181   : > { %7834 = vmatpush3.bf16.msra.mxu0 %v7831_v54  ;;  %v9866_v54 = vpack.c.bf16 %v2075_v0, %v2074_v53 }
 0x182   : > { %7836 = vmatprep.subr.bf16.mxu0 %v7835_v5 }
 0x183   : > { %7678 = vmatpush3.bf16.msra.mxu1 %v7675_v3  ;;  %v2079_v3 = vld [vmem:[#allocation8 + $0x78] sm:$0xff] }
 0x184   : > { %7680 = vmatprep.subr.bf16.mxu1 %v7679_v34 }
 0x185   : > { %7838 = vmatpush3.bf16.msra.mxu0 %v7835_v5  ;;  %v9877_v5 = vpack.c.bf16 %v2079_v3, %v2078_v61 }
 0x186   : > { %7840 = vmatprep.subr.bf16.mxu0 %v7839_v22 }
 0x187   : > { %7682 = vmatpush3.bf16.msra.mxu1 %v7679_v34 }
 0x188   : > { %7684 = vmatprep.subr.bf16.mxu1 %v7683_v14 }
 0x189   : > { %7842 = vmatpush3.bf16.msra.mxu0 %v7839_v22 }
 0x18a   : > { %7844 = vmatprep.subr.bf16.mxu0 %v7843_v62 }
 0x18b   : > { %7686 = vmatpush3.bf16.msra.mxu1 %v7683_v14 }
 0x18c   : > { %7688 = vmatprep.subr.bf16.mxu1 %v7687_v4 }
 0x18d   : > { %7846 = vmatpush3.bf16.msra.mxu0 %v7843_v62 }
 0x18e   : > { %6352 = vmatmul.mubr.f32.vlgmr.msra.gmra.mrb[0].mxu1 %v9748_v6  ;;  %v7699_v6 = vpack.c.bf16 %v1355_v35, %v1354_v29  ;;  %8183 = vmatprep.subr.bf16.mxu0 %v9259_v43 }
 0x18f   : > { %7690 = vmatpush3.bf16.msra.mxu1 %v7687_v4  ;;  %6354 = vmatprep.mubr.f32.mxu1 %v9752_v7  ;;  %v1899_v7 = vld [vmem:[#allocation2 + $0xe1] sm:$0xff] }
 0x190   : > { %6572 = vmatmul.mubr.f32.vlgmr.msra.gmra.mrb[0].mxu0 %v9754_v30  ;;  %7692 = vmatprep.subr.bf16.mxu1 %v7691_v24  ;;  %v7703_v30 = vpack.c.bf16 %v1357_v38, %v1356_v36 }
 0x191   : > { %6574 = vmatprep.mubr.f32.mxu0 %v9757_v32  ;;  %v1358_v32 = vld [vmem:[#allocation6 + $0x250] sm:$0xff] }
 0x192   : > { %6355 = vmatmul.mubr.f32.gmra.mrb[2].mxu1 %v9762_v11  ;;  %v1359_v11 = vld [vmem:[#allocation6 + $0x258] sm:$0xff] }
 0x193   : > { %7694 = vmatpush3.bf16.msra.mxu1 %v7691_v24  ;;  %6357 = vmatprep.mubr.f32.mxu1 %v9765_v25  ;;  %v7707_v25 = vpack.c.bf16 %v1359_v11, %v1358_v32 }
 0x194   : > { %6575 = vmatmul.mubr.f32.gmra.mrb[2].mxu0 %v9767_v42  ;;  %7696 = vmatprep.subr.bf16.mxu1 %v7695_v28  ;;  %v1360_v42 = vld [vmem:[#allocation6 + $0x260] sm:$0xff] }
 0x195   : > { %6577 = vmatprep.mubr.f32.mxu0 %v9769_v12  ;;  %v1361_v12 = vld [vmem:[#allocation6 + $0x268] sm:$0xff] }
 0x196   : > { %6358 = vmatmul.mubr.f32.gmra.mrb[4].mxu1 %v9774_v16  ;;  %v7711_v16 = vpack.c.bf16 %v1361_v12, %v1360_v42 }
 0x197   : > { %7698 = vmatpush3.bf16.msra.mxu1 %v7695_v28  ;;  %6360 = vmatprep.mubr.f32.mxu1 %v9777_v17  ;;  %v2065_v17 = vld [vmem:[#allocation8 + $0x8] sm:$0xff] }
 0x198   : > { %6578 = vmatmul.mubr.f32.gmra.mrb[4].mxu0 %v9779_v18  ;;  %7700 = vmatprep.subr.bf16.mxu1 %v7699_v6  ;;  %v1362_v18 = vld [vmem:[#allocation6 + $0x270] sm:$0xff] }
 0x199   : > { %6580 = vmatprep.mubr.f32.mxu0 %v9781_v20  ;;  %v1363_v20 = vld [vmem:[#allocation6 + $0x278] sm:$0xff] }
 0x19a   : > { %6361 = vmatmul.mubr.f32.gmra.mrb[6].mxu1 %v9799_v31  ;;  %v7715_v40 = vpack.c.bf16 %v1363_v20, %v1362_v18 }
 0x19b   : > { %7702 = vmatpush3.bf16.msra.mxu1 %v7699_v6  ;;  %6395 = vmatprep.mubr.f32.mxu1 %v9716_v37  ;;  %v2064_v37 = vld [vmem:[#allocation8] sm:$0xff] }
 0x19c   : > { %6581 = vmatmul.mubr.f32.gmra.mrb[6].mxu0 %v1899_v7  ;;  %7704 = vmatprep.subr.bf16.mxu1 %v7703_v30  ;;  %v9844_v31 = vpack.c.bf16 %v2065_v17, %v2064_v37 }
 0x19d   : > { %7081 = vmatprep.mubr.msk.f32.mxu0 %vm9260_vm0, %v9818_v2 }
 0x19f   : > { %7706 = vmatpush3.bf16.msra.mxu1 %v7703_v30 }
 0x1a0   : > { %7708 = vmatprep.subr.bf16.mxu1 %v7707_v25 }
 0x1a3   : > { %7710 = vmatpush3.bf16.msra.mxu1 %v7707_v25 }
 0x1a4   : > { %7712 = vmatprep.subr.bf16.mxu1 %v7711_v16 }
 0x1a7   : > { %7714 = vmatpush3.bf16.msra.mxu1 %v7711_v16 }
 0x1a8   : > { %7716 = vmatprep.subr.bf16.mxu1 %v7715_v40 }
 0x1ab   : > { %7718 = vmatpush3.bf16.msra.mxu1 %v7715_v40 }
 0x1ac   : > { %7847 = vmatprep.subr.bf16.mxu1 %v9259_v43 }
 0x1ae   : > { %6396 = vmatmul.mubr.f32.vlgmr.msra.gmra.mrb[0].mxu1 %v9718_v39  ;;  %v2066_v39 = vld [vmem:[#allocation8 + $0x10] sm:$0xff] }
 0x1af   : > { %6398 = vmatprep.mubr.f32.mxu1 %v9721_v41  ;;  %7849 = vmatpush3.bf16.msra.mxu1 %v9844_v31  ;;  %v2067_v41 = vld [vmem:[#allocation8 + $0x18] sm:$0xff] }
 0x1b0   : > { %7850 = vmatprep.subr.bf16.mxu1 %v9259_v43 }
 0x1b2   : > { %6399 = vmatmul.mubr.f32.gmra.mrb[2].mxu1 %v9724_v44  ;;  %v9850_v44 = vpack.c.bf16 %v2067_v41, %v2066_v39 }
 0x1b3   : > { %6401 = vmatprep.mubr.f32.mxu1 %v9727_v46  ;;  %v2068_v46 = vld [vmem:[#allocation8 + $0x20] sm:$0xff] }
 0x1b4   : > { %7852 = vmatpush3.bf16.msra.mxu1 %v9850_v44 }
 0x1b5   : > { %7853 = vmatprep.subr.bf16.mxu1 %v9259_v43 }
 0x1b6   : > { %6402 = vmatmul.mubr.f32.gmra.mrb[4].mxu1 %v9730_v52  ;;  %v2069_v52 = vld [vmem:[#allocation8 + $0x28] sm:$0xff] }
 0x1b7   : > { %6404 = vmatprep.mubr.f32.mxu1 %v9733_v57  ;;  %v9854_v57 = vpack.c.bf16 %v2069_v52, %v2068_v46 }
 0x1b9   : > { %7855 = vmatpush3.bf16.msra.mxu1 %v9854_v57 }
 0x1ba   : > { %6405 = vmatmul.mubr.f32.gmra.mrb[6].mxu1 %v9736_v58  ;;  %7856 = vmatprep.subr.bf16.mxu1 %v9259_v43  ;;  %v2070_v58 = vld [vmem:[#allocation8 + $0x30] sm:$0xff] }
 0x1bb   : > { %v9858_v45 = vpack.c.bf16 %v2071_v1, %v2070_v58  ;;  %6615 = vmatprep.mubr.msk.f32.mxu1 %vm9260_vm0, %v9818_v2 }
 0x1bd   : > { %7858 = vmatpush3.bf16.msra.mxu1 %v9858_v45 }
 0x1be   : > { %7859 = vmatprep.subr.bf16.mxu1 %v9259_v43 }
 0x1c1   : > { %7861 = vmatpush3.bf16.msra.mxu1 %v9862_v51 }
 0x1c2   : > { %7862 = vmatprep.subr.bf16.mxu1 %v9259_v43 }
 0x1c5   : > { %7864 = vmatpush3.bf16.msra.mxu1 %v9866_v54 }
 0x1c6   : > { %7865 = vmatprep.subr.bf16.mxu1 %v9259_v43 }
 0x1c9   : > { %7867 = vmatpush3.bf16.msra.mxu1 %v9870_v60 }
 0x1ca   : > { %7868 = vmatprep.subr.bf16.mxu1 %v9259_v43 }
 0x1cd   : > { %7870 = vmatpush3.bf16.msra.mxu1 %v9877_v5 }
 0x1ce   : > { %7871 = vmatprep.subr.bf16.mxu1 %v9259_v43 }
 0x263   : > { %v6573_v8 = vpop.f32.mrb[0].mxu0 }
 0x264   : > { %v1983_v9 = vpop.f32.mrb[1].mxu0 }
 0x267   : > { %v6576_v33 = vpop.f32.mrb[2].mxu0 }
 0x268   : > { %v1993_v10 = vpop.f32.mrb[3].mxu0 }
 0x26b   : > { %v6579_v34 = vpop.f32.mrb[4].mxu0 }
 0x26c   : > { %v2003_v22 = vpop.f32.mrb[5].mxu0 }
 0x26f   : > { %v6582_v49 = vpop.f32.mrb[6].mxu0 }
 0x270   : > { %v2013_v56 = vpop.f32.mrb[7].mxu0 }
 0x281   : > { %v6397_v13 = vpop.f32.mrb[0].mxu1 }
 0x282   : > { %v8551_v14 = vadd.f32 %v6397_v13, %v5420_v63  ;;  %v1430_v62 = vpop.f32.mrb[1].mxu1 }
 0x283   : > { %v8553_v15 = vadd.f32 %v5420_v63, %v1430_v62  ;;  %v2336_v62 = vld [vmem:[#allocation9 + $0x8] sm:$0xff] }
 0x284   : > { %v9885_v19 = vadd.f32 %v8551_v14, %v6573_v8  ;;  %v2335_v14 = vld [vmem:[#allocation9] sm:$0xff] }
 0x285   : > { %v9887_v4 = vadd.f32 %v8553_v15, %v1983_v9  ;;  %v6400_v21 = vpop.f32.mrb[2].mxu1  ;;  %v2337_v15 = vld [vmem:[#allocation9 + $0x10] sm:$0xff] }
 0x286   : > { %v8555_v23 = vadd.f32 %v6400_v21, %v5420_v63  ;;  %v1440_v24 = vpop.f32.mrb[3].mxu1  ;;  %v2044_v16 = vmul.f32 %v9885_v19, %v9885_v19  ;;  %v2338_v21 = vld [vmem:[#allocation9 + $0x18] sm:$0xff] }
 0x287   : > { %v8557_v26 = vadd.f32 %v5420_v63, %v1440_v24  ;;  %v2030_v28 = vadd.f32 %v9887_v4, %v9885_v19  ;;  %v2043_v18 = vmul.f32 %v9887_v4, %v9887_v4  ;;  %v2340_v24 = vld [vmem:[#allocation9 + $0x28] sm:$0xff] }
 0x288   : > { %v9889_v27 = vadd.f32 %v8555_v23, %v6576_v33  ;;  %v2339_v23 = vld [vmem:[#allocation9 + $0x20] sm:$0xff] }
 0x289   : > { %v9893_v29 = vadd.f32 %v8557_v26, %v1993_v10  ;;  %v6403_v35 = vpop.f32.mrb[4].mxu1  ;;  %v2051_v46 = vadd.f32 %v2044_v16, %v2043_v18  ;;  %v2341_v26 = vld [vmem:[#allocation9 + $0x30] sm:$0xff]  ;;  %v2350_v18 = vld [vmem:[#allocation9 + $0x78] sm:$0xff] }
 0x28a   : > { %v8559_v6 = vadd.f32 %v6403_v35, %v5420_v63  ;;  %v1450_v36 = vpop.f32.mrb[5].mxu1  ;;  %v2046_v47 = vmul.f32 %v9889_v27, %v9889_v27  ;;  %v2343_v35 = vld [vmem:[#allocation9 + $0x40] sm:$0xff]  ;;  %v2349_v16 = vld [vmem:[#allocation9 + $0x70] sm:$0xff] }
 0x28b   : > { %v2031_v38 = vadd.f32 %v9893_v29, %v2030_v28  ;;  %v8561_v7 = vadd.f32 %v5420_v63, %v1450_v36  ;;  %v2045_v17 = vmul.f32 %v9893_v29, %v9893_v29  ;;  %v2342_v28 = vld [vmem:[#allocation9 + $0x38] sm:$0xff] }
 0x28c   : > { %v9896_v30 = vadd.f32 %v8559_v6, %v6579_v34  ;;  %v2344_v6 = vld [vmem:[#allocation9 + $0x48] sm:$0xff] }
 0x28d   : > { %v9898_v32 = vadd.f32 %v8561_v7, %v2003_v22  ;;  %v2032_v11 = vadd.f32 %v9889_v27, %v2031_v38  ;;  %v6406_v25 = vpop.f32.mrb[6].mxu1  ;;  %v2052_v58 = vadd.f32 %v2051_v46, %v2045_v17  ;;  %v7911_v36 = vpack.c.bf16 %v2344_v6, %v2343_v35  ;;  %v2345_v38 = vld [vmem:[#allocation9 + $0x50] sm:$0xff]  ;;  %v2346_v7 = vld [vmem:[#allocation9 + $0x58] sm:$0xff]  ;;  %v2473_v17 = vld [vmem:[#allocation9 + $0x80] sm:$0xff] }
 0x28e   : > { %v8563_v42 = vadd.f32 %v6406_v25, %v5420_v63  ;;  %v1460_v12 = vpop.f32.mrb[7].mxu1  ;;  %v2048_v8 = vmul.f32 %v9896_v30, %v9896_v30  ;;  %v2347_v25 = vld [vmem:[#allocation9 + $0x60] sm:$0xff] }
 0x28f   : > { %v2033_v20 = vadd.f32 %v9898_v32, %v2032_v11  ;;  %v8565_v40 = vadd.f32 %v5420_v63, %v1460_v12  ;;  %v2047_v53 = vmul.f32 %v9898_v32, %v9898_v32  ;;  %v2053_v0 = vadd.f32 %v2052_v58, %v2046_v47 }
 0x290   : > { %v9906_v37 = vadd.f32 %v8563_v42, %v6582_v49  ;;  %v7915_v11 = vpack.c.bf16 %v2346_v7, %v2345_v38  ;;  %v2348_v42 = vld [vmem:[#allocation9 + $0x68] sm:$0xff] }
 0x291   : > { %v9910_v39 = vadd.f32 %v8565_v40, %v2013_v56  ;;  %v2034_v41 = vadd.f32 %v9896_v30, %v2033_v20  ;;  %v2054_v61 = vadd.f32 %v2053_v0, %v2047_v53  ;;  %v7919_v12 = vpack.c.bf16 %v2348_v42, %v2347_v25  ;;  %v2327_v20 = vld [vmem:[#allocation2 + $0x7] sm:$0xff] }
 0x292   : > { %v2050_v49 = vmul.f32 %v9906_v37, %v9906_v37  ;;  %v7923_v40 = vpack.c.bf16 %v2350_v18, %v2349_v16 }
 0x293   : > { %v2035_v52 = vadd.f32 %v9910_v39, %v2034_v41  ;;  %v2049_v33 = vmul.f32 %v9910_v39, %v9910_v39  ;;  %v2055_v10 = vadd.f32 %v2054_v61, %v2048_v8  ;;  %v2474_v41 = vld [vmem:[#allocation9 + $0x88] sm:$0xff]  ;;  %v2227_v8 = vld [vmem:[%s10457_s28] sm:$0x1] }
 0x294   : > { %v9942_v46 = vpack.c.bf16 %v2474_v41, %v2473_v17 }
 0x295   : > { %v2036_v1 = vadd.f32 %v9906_v37, %v2035_v52  ;;  %v2056_v22 = vadd.f32 %v2055_v10, %v2049_v33 }
 0x297   : > { %v2037_v48 = vrot.slane %v2036_v1, 4  ;;  %v2057_v56 = vadd.f32 %v2056_v22, %v2050_v49 }
 0x299   : > { %v2038_v55 = vadd.f32 %v2037_v48, %v2036_v1  ;;  %v2058_v63 = vrot.slane %v2057_v56, 4 }
 0x29b   : > { %v2039_v59 = vrot.slane %v2038_v55, 2 }
 0x29d   : > { %v2040_v3 = vadd.f32 %v2039_v59, %v2038_v55  ;;  %v2225_v59 = vld [vmem:[%s10410_s5] sm:$0x1] }
 0x29f   : > { %v2041_v9 = vrot.slane %v2040_v3, 1 }
 0x2a1   : > { %v2042_v34 = vadd.f32 %v2041_v9, %v2040_v3 }
 0x2a3   : > { %6616 = vmatmul.mubr.f32.vlgmr.msra.gmra.mrb[8].mxu1 %v2042_v34 }
 0x2a4   : > { %7873 = vmatpush3.bf16.msra.mxu1 %v9844_v31  ;;  %6650 = vmatprep.mubr.msk.f32.mxu1 %vm9260_vm0, %v9818_v2  ;;  %v2059_v31 = vadd.f32 %v2058_v63, %v2057_v56 }
 0x2a5   : > { %7874 = vmatprep.subr.bf16.mxu1 %v9259_v43 }
 0x2a6   : > { %v2060_v13 = vrot.slane %v2059_v31, 2 }
 0x2a8   : > { %7876 = vmatpush3.bf16.msra.mxu1 %v9850_v44  ;;  %v2061_v44 = vadd.f32 %v2060_v13, %v2059_v31 }
 0x2a9   : > { %7877 = vmatprep.subr.bf16.mxu1 %v9259_v43 }
 0x2ac   : > { %7879 = vmatpush3.bf16.msra.mxu1 %v9854_v57  ;;  %v2062_v57 = vrot.slane %v2061_v44, 1 }
 0x2ad   : > { %7880 = vmatprep.subr.bf16.mxu1 %v9259_v43 }
 0x2b0   : > { %7882 = vmatpush3.bf16.msra.mxu1 %v9858_v45  ;;  %v2063_v45 = vadd.f32 %v2062_v57, %v2061_v44 }
 0x2b1   : > { %7883 = vmatprep.subr.bf16.mxu1 %v9259_v43 }
 0x2b4   : > { %7885 = vmatpush3.bf16.msra.mxu1 %v9862_v51  ;;  %v7895_v51 = vpack.c.bf16 %v2336_v62, %v2335_v14 }
 0x2b5   : > { %7886 = vmatprep.subr.bf16.mxu1 %v9259_v43 }
 0x2b8   : > { %7888 = vmatpush3.bf16.msra.mxu1 %v9866_v54  ;;  %v7899_v54 = vpack.c.bf16 %v2338_v21, %v2337_v15 }
 0x2b9   : > { %7889 = vmatprep.subr.bf16.mxu1 %v9259_v43 }
 0x2bc   : > { %7891 = vmatpush3.bf16.msra.mxu1 %v9870_v60  ;;  %v7903_v60 = vpack.c.bf16 %v2340_v24, %v2339_v23 }
 0x2bd   : > { %7892 = vmatprep.subr.bf16.mxu1 %v9259_v43 }
 0x2c0   : > { %7894 = vmatpush3.bf16.msra.mxu1 %v9877_v5  ;;  %v7907_v5 = vpack.c.bf16 %v2342_v28, %v2341_v26 }
 0x2c1   : > { %7896 = vmatprep.subr.bf16.mxu1 %v7895_v51 }
 0x2c3   : > { %6651 = vmatmul.mubr.f32.vlgmr.msra.gmra.mrb[10].mxu1 %v2063_v45 }
 0x2c4   : > { %7898 = vmatpush3.bf16.msra.mxu1 %v7895_v51  ;;  %6685 = vmatprep.mubr.f32.mxu1 %v2327_v20 }
 0x2c5   : > { %7900 = vmatprep.subr.bf16.mxu1 %v7899_v54 }
 0x2c8   : > { %7902 = vmatpush3.bf16.msra.mxu1 %v7899_v54 }
 0x2c9   : > { %7904 = vmatprep.subr.bf16.mxu1 %v7903_v60 }
 0x2cc   : > { %7906 = vmatpush3.bf16.msra.mxu1 %v7903_v60 }
 0x2cd   : > { %7908 = vmatprep.subr.bf16.mxu1 %v7907_v5 }
 0x2d0   : > { %7910 = vmatpush3.bf16.msra.mxu1 %v7907_v5 }
 0x2d1   : > { %7912 = vmatprep.subr.bf16.mxu1 %v7911_v36 }
 0x2d4   : > { %7914 = vmatpush3.bf16.msra.mxu1 %v7911_v36 }
 0x2d5   : > { %7916 = vmatprep.subr.bf16.mxu1 %v7915_v11 }
 0x2d8   : > { %7918 = vmatpush3.bf16.msra.mxu1 %v7915_v11 }
 0x2d9   : > { %7920 = vmatprep.subr.bf16.mxu1 %v7919_v12 }
 0x2dc   : > { %7922 = vmatpush3.bf16.msra.mxu1 %v7919_v12 }
 0x2dd   : > { %7924 = vmatprep.subr.bf16.mxu1 %v7923_v40 }
 0x2e0   : > { %7926 = vmatpush3.bf16.msra.mxu1 %v7923_v40 }
 0x2e1   : > { %7928 = vmatprep.subr.bf16.mxu1 %v9942_v46 }
 0x376   : > { %v2146_v52 = vpop.f32.mrb[8].mxu1 }
 0x377   : > { %v6617_v58 = vpop.f32.mrb[9].mxu1  ;;  %v2220_v1 = vmul.f32 %v2146_v52, %v2146_v52 }
 0x396   : > { %v2216_v47 = vpop.f32.mrb[10].mxu1 }
 0x397   : > { %v2221_v48 = vsub.f32 %v2216_v47, %v2220_v1  ;;  %v6652_v53 = vpop.f32.mrb[11].mxu1 }
 0x399   : > { %v2222_v0 = vmax.f32 %v2221_v48, 0.0 }
 0x39b   : > { %v2223_v55 = vadd.f32 1e-05, %v2222_v0 }
 0x39d   : > { %8921 = vrsqrt.f32 %v2223_v55 }
 0x3a7   : > { %v8922_v61 = vpop.eup %8921 }
 0x3a8   : > { %v2226_v3 = vmul.f32 %v8922_v61, %v2225_v59 }
 0x3aa   : > { %v2228_v9 = vmul.f32 %v2226_v3, %v2146_v52  ;;  %v2233_v33 = vrot.slane %v2226_v3, %v9701_v50 }
 0x3ac   : > { %v2229_v10 = vsub.f32 %v2227_v8, %v2228_v9  ;;  %v2234_v34 = vmul.f32 %v9887_v4, %v2233_v33  ;;  %v2235_v22 = vmul.f32 %v9885_v19, %v2233_v33  ;;  %v2236_v49 = vmul.f32 %v9893_v29, %v2233_v33 }
 0x3ad   : > { %v2237_v56 = vmul.f32 %v9889_v27, %v2233_v33  ;;  %v2238_v31 = vmul.f32 %v9898_v32, %v2233_v33  ;;  %v2239_v13 = vmul.f32 %v9896_v30, %v2233_v33  ;;  %v2240_v44 = vmul.f32 %v9910_v39, %v2233_v33 }
 0x3ae   : > { %v2246_v63 = vrot.slane %v2229_v10, %v9701_v50  ;;  %v2241_v57 = vmul.f32 %v9906_v37, %v2233_v33 }
 0x3b0   : > { %v2248_v45 = vadd.f32 %v2246_v63, %v2234_v34  ;;  %v2249_v14 = vadd.f32 %v2246_v63, %v2235_v22  ;;  %v2250_v62 = vadd.f32 %v2246_v63, %v2236_v49  ;;  %v2251_v51 = vadd.f32 %v2246_v63, %v2237_v56  ;;  %v2475_v49 = vld [vmem:[#allocation9 + $0x90] sm:$0xff]  ;;  %v2476_v56 = vld [vmem:[#allocation9 + $0x98] sm:$0xff] }
 0x3b1   : > { %v2252_v15 = vadd.f32 %v2246_v63, %v2238_v31  ;;  %v2253_v21 = vadd.f32 %v2246_v63, %v2239_v13  ;;  %v2254_v54 = vadd.f32 %v2246_v63, %v2240_v44  ;;  %v9961_v23 = vadd.f32 %v2246_v63, %v2241_v57 }
 0x3b2   : > { %v5421_v24 = vmul.f32 -1.442695, %v2248_v45  ;;  %v5422_v60 = vmul.f32 -1.442695, %v2249_v14  ;;  %v5423_v26 = vmul.f32 -1.442695, %v2250_v62  ;;  %v7931_v44 = vpack.c.bf16 %v2476_v56, %v2475_v49 }
 0x3b3   : > { %v5424_v28 = vmul.f32 -1.442695, %v2251_v51  ;;  %v5425_v5 = vmul.f32 -1.442695, %v2252_v15  ;;  %v5426_v35 = vmul.f32 -1.442695, %v2253_v21 }
 0x3b4   : > { %8923 = vpow2.f32 %v5421_v24  ;;  %v5427_v6 = vmul.f32 -1.442695, %v2254_v54  ;;  %v5428_v36 = vmul.f32 -1.442695, %v9961_v23  ;;  %v2622_v49 = vld [vmem:[#allocation9 + $0x158] sm:$0xff] }
 0x3b5   : > { %8925 = vpow2.f32 %v5422_v60 }
 0x3b6   : > { %8927 = vpow2.f32 %v5423_v26  ;;  %v2482_v26 = vld [vmem:[#allocation9 + $0xc8] sm:$0xff] }
 0x3b7   : > { %8929 = vpow2.f32 %v5424_v28 }
 0x3b8   : > { %8931 = vpow2.f32 %v5425_v5 }
 0x3b9   : > { %8933 = vpow2.f32 %v5426_v35 }
 0x3ba   : > { %8935 = vpow2.f32 %v5427_v6  ;;  %v2483_v6 = vld [vmem:[#allocation9 + $0xd0] sm:$0xff] }
 0x3bb   : > { %8937 = vpow2.f32 %v5428_v36  ;;  %v2484_v36 = vld [vmem:[#allocation9 + $0xd8] sm:$0xff] }
 0x3be   : > { %v8924_v38 = vpop.eup %8923 }
 0x3bf   : > { %v8926_v7 = vpop.eup %8925  ;;  %v2280_v11 = vadd.f32 1.0, %v8924_v38  ;;  %v7947_v38 = vpack.c.bf16 %v2484_v36, %v2483_v6 }
 0x3c0   : > { %v8928_v25 = vpop.eup %8927  ;;  %v2281_v42 = vadd.f32 1.0, %v8926_v7  ;;  %v2485_v7 = vld [vmem:[#allocation9 + $0xe0] sm:$0xff] }
 0x3c1   : > { %v8930_v12 = vpop.eup %8929  ;;  %v2282_v16 = vadd.f32 1.0, %v8928_v25  ;;  %8939 = vrcp.f32 %v2280_v11  ;;  %v2486_v11 = vld [vmem:[#allocation9 + $0xe8] sm:$0xff] }
 0x3c2   : > { %v8932_v18 = vpop.eup %8931  ;;  %v2283_v20 = vadd.f32 1.0, %v8930_v12  ;;  %8941 = vrcp.f32 %v2281_v42  ;;  %v7951_v25 = vpack.c.bf16 %v2486_v11, %v2485_v7  ;;  %v2487_v42 = vld [vmem:[#allocation9 + $0xf0] sm:$0xff]  ;;  %v2488_v12 = vld [vmem:[#allocation9 + $0xf8] sm:$0xff]  ;;  %v2754_v7 = vld [vmem:[#allocation9 + $0x1a8] sm:$0xff] }
 0x3c3   : > { %v8934_v40 = vpop.eup %8933  ;;  %v2284_v17 = vadd.f32 1.0, %v8932_v18  ;;  %8943 = vrcp.f32 %v2282_v16  ;;  %v7955_v16 = vpack.c.bf16 %v2488_v12, %v2487_v42  ;;  %v2611_v18 = vld [vmem:[#allocation9 + $0x100] sm:$0xff]  ;;  %v2755_v12 = vld [vmem:[#allocation9 + $0x1b0] sm:$0xff] }
 0x3c4   : > { %v8936_v41 = vpop.eup %8935  ;;  %v2285_v52 = vadd.f32 1.0, %v8934_v40  ;;  %8945 = vrcp.f32 %v2283_v20  ;;  %v2612_v20 = vld [vmem:[#allocation9 + $0x108] sm:$0xff] }
 0x3c5   : > { %v8938_v58 = vpop.eup %8937  ;;  %v2286_v1 = vadd.f32 1.0, %v8936_v41  ;;  %8947 = vrcp.f32 %v2284_v17  ;;  %v7959_v40 = vpack.c.bf16 %v2612_v20, %v2611_v18  ;;  %v2613_v17 = vld [vmem:[#allocation9 + $0x110] sm:$0xff]  ;;  %v2614_v41 = vld [vmem:[#allocation9 + $0x118] sm:$0xff] }
 0x3c6   : > { %v2287_v47 = vadd.f32 1.0, %v8938_v58  ;;  %8949 = vrcp.f32 %v2285_v52  ;;  %v2615_v52 = vld [vmem:[#allocation9 + $0x120] sm:$0xff]  ;;  %v2616_v58 = vld [vmem:[#allocation9 + $0x128] sm:$0xff] }
 0x3c7   : > { %8951 = vrcp.f32 %v2286_v1  ;;  %v7967_v1 = vpack.c.bf16 %v2616_v58, %v2615_v52 }
 0x3c8   : > { %8953 = vrcp.f32 %v2287_v47  ;;  %v2617_v47 = vld [vmem:[#allocation9 + $0x130] sm:$0xff] }
 0x3cb   : > { %v8940_v48 = vpop.eup %8939 }
 0x3cc   : > { %v8942_v53 = vpop.eup %8941  ;;  %v9964_v0 = vmul.f32 %v8940_v48, %v2248_v45  ;;  %v2477_v45 = vld [vmem:[#allocation9 + $0xa0] sm:$0xff]  ;;  %v2618_v48 = vld [vmem:[#allocation9 + $0x138] sm:$0xff] }
 0x3cd   : > { %v8944_v55 = vpop.eup %8943  ;;  %v9966_v59 = vmul.f32 %v8942_v53, %v2249_v14  ;;  %v2478_v14 = vld [vmem:[#allocation9 + $0xa8] sm:$0xff]  ;;  %v7971_v53 = vpack.c.bf16 %v2618_v48, %v2617_v47  ;;  %v2760_v47 = vld [vmem:[#allocation9 + $0x1d8] sm:$0xff] }
 0x3ce   : > { %v8946_v61 = vpop.eup %8945  ;;  %v9968_v3 = vmul.f32 %v8944_v55, %v2250_v62  ;;  %2312 = vst [vmem:[#allocation2 + $0x20] sm:$0xff] %v9964_v0  ;;  %v2619_v55 = vld [vmem:[#allocation9 + $0x140] sm:$0xff] }
 0x3cf   : > { %v8948_v8 = vpop.eup %8947  ;;  %v9971_v9 = vmul.f32 %v8946_v61, %v2251_v51  ;;  %2313 = vst [vmem:[#allocation2 + $0x38] sm:$0xff] %v9966_v59  ;;  %v7935_v51 = vpack.c.bf16 %v2478_v14, %v2477_v45  ;;  %v2620_v61 = vld [vmem:[#allocation9 + $0x148] sm:$0xff]  ;;  %v2625_v14 = vld [vmem:[#allocation9 + $0x170] sm:$0xff] }
 0x3d0   : > { %v8950_v33 = vpop.eup %8949  ;;  %v9974_v10 = vmul.f32 %v8948_v8, %v2252_v15  ;;  %2314 = vst [vmem:[#allocation2 + $0x50] sm:$0xff] %v9968_v3  ;;  %v7975_v8 = vpack.c.bf16 %v2620_v61, %v2619_v55  ;;  %v2762_v55 = vld [vmem:[#allocation9 + $0x1e8] sm:$0xff] }
 0x3d1   : > { %v8952_v34 = vpop.eup %8951  ;;  %v9977_v22 = vmul.f32 %v8950_v33, %v2253_v21  ;;  %2315 = vst [vmem:[#allocation2 + $0x68] sm:$0xff] %v9971_v9  ;;  %v2479_v21 = vld [vmem:[#allocation9 + $0xb0] sm:$0xff]  ;;  %v2602_v33 = vld [vmem:[#allocation2 + $0x9] sm:$0xff] }
 0x3d2   : > { %v8954_v63 = vpop.eup %8953  ;;  %v9980_v31 = vmul.f32 %v8952_v34, %v2254_v54  ;;  %2316 = vst [vmem:[#allocation2 + $0x80] sm:$0xff] %v9974_v10  ;;  %v2480_v54 = vld [vmem:[#allocation9 + $0xb8] sm:$0xff]  ;;  %v2621_v34 = vld [vmem:[#allocation9 + $0x150] sm:$0xff] }
 0x3d3   : > { %v9984_v13 = vmul.f32 %v8954_v63, %v9961_v23  ;;  %2317 = vst [vmem:[#allocation2 + $0x98] sm:$0xff] %v9977_v22  ;;  %v7939_v24 = vpack.c.bf16 %v2480_v54, %v2479_v21  ;;  %v7979_v56 = vpack.c.bf16 %v2622_v49, %v2621_v34  ;;  %v2623_v63 = vld [vmem:[#allocation9 + $0x160] sm:$0xff] }
 0x3d4   : > { %2318 = vst [vmem:[#allocation2 + $0xb0] sm:$0xff] %v9980_v31  ;;  %v2749_v54 = vld [vmem:[#allocation9 + $0x180] sm:$0xff] }
 0x3d5   : > { %2319 = vst [vmem:[#allocation2 + $0xc8] sm:$0xff] %v9984_v13  ;;  %v9989_v57 = vld [vmem:[#allocation2 + $0x1f] sm:$0xff]  ;;  %v2887_v49 = vld [vmem:[#allocation9 + $0x200] sm:$0xff] }
 0x3d6   : > { %6686 = vmatmul.mubr.f32.vlgmr.msra.gmra.mrb[12].mxu1 %v9989_v57  ;;  %v9992_v62 = vld [vmem:[#allocation2 + $0x37] sm:$0xff]  ;;  %v10019_v36 = vld [vmem:[#allocation2 + $0x21] sm:$0xff] }
 0x3d7   : > { %7930 = vmatpush3.bf16.msra.mxu1 %v9942_v46  ;;  %6688 = vmatprep.mubr.f32.mxu1 %v9992_v62  ;;  %v9996_v15 = vld [vmem:[#allocation2 + $0x4f] sm:$0xff]  ;;  %v10022_v11 = vld [vmem:[#allocation2 + $0x39] sm:$0xff] }
 0x3d8   : > { %7932 = vmatprep.subr.bf16.mxu1 %v7931_v44  ;;  %v9999_v23 = vld [vmem:[#allocation2 + $0x67] sm:$0xff]  ;;  %v2481_v46 = vld [vmem:[#allocation9 + $0xc0] sm:$0xff] }
 0x3d9   : > { %v10002_v60 = vld [vmem:[#allocation2 + $0x7f] sm:$0xff]  ;;  %v7943_v5 = vpack.c.bf16 %v2482_v26, %v2481_v46  ;;  %v10025_v42 = vld [vmem:[#allocation2 + $0x51] sm:$0xff]  ;;  %v10028_v18 = vld [vmem:[#allocation2 + $0x69] sm:$0xff] }
 0x3da   : > { %6689 = vmatmul.mubr.f32.gmra.mrb[14].mxu1 %v9996_v15  ;;  %v10005_v28 = vld [vmem:[#allocation2 + $0x97] sm:$0xff]  ;;  %v2751_v26 = vld [vmem:[#allocation9 + $0x190] sm:$0xff] }
 0x3db   : > { %7934 = vmatpush3.bf16.msra.mxu1 %v7931_v44  ;;  %6691 = vmatprep.mubr.f32.mxu1 %v9999_v23  ;;  %v10008_v35 = vld [vmem:[#allocation2 + $0xaf] sm:$0xff]  ;;  %v2624_v44 = vld [vmem:[#allocation9 + $0x168] sm:$0xff] }
 0x3dc   : > { %7936 = vmatprep.subr.bf16.mxu1 %v7935_v51  ;;  %v7983_v45 = vpack.c.bf16 %v2624_v44, %v2623_v63  ;;  %v10037_v58 = vld [vmem:[#allocation2 + $0xb1] sm:$0xff]  ;;  %v2889_v44 = vld [vmem:[#allocation9 + $0x210] sm:$0xff] }
 0x3de   : > { %6692 = vmatmul.mubr.f32.gmra.mrb[16].mxu1 %v10002_v60 }
 0x3df   : > { %7938 = vmatpush3.bf16.msra.mxu1 %v7935_v51  ;;  %6694 = vmatprep.mubr.f32.mxu1 %v10005_v28  ;;  %v2626_v51 = vld [vmem:[#allocation9 + $0x178] sm:$0xff] }
 0x3e0   : > { %7940 = vmatprep.subr.bf16.mxu1 %v7939_v24  ;;  %v7987_v21 = vpack.c.bf16 %v2626_v51, %v2625_v14  ;;  %v2891_v14 = vld [vmem:[#allocation9 + $0x220] sm:$0xff]  ;;  %v2892_v51 = vld [vmem:[#allocation9 + $0x228] sm:$0xff] }
 0x3e2   : > { %6695 = vmatmul.mubr.f32.gmra.mrb[18].mxu1 %v10008_v35 }
 0x3e3   : > { %7942 = vmatpush3.bf16.msra.mxu1 %v7939_v24  ;;  %6729 = vmatprep.mubr.f32.mxu1 %v9818_v2  ;;  %v7963_v2 = vpack.c.bf16 %v2614_v41, %v2613_v17  ;;  %v2750_v24 = vld [vmem:[#allocation9 + $0x188] sm:$0xff]  ;;  %v2757_v17 = vld [vmem:[#allocation9 + $0x1c0] sm:$0xff] }
 0x3e4   : > { %7944 = vmatprep.subr.bf16.mxu1 %v7943_v5  ;;  %v7991_v46 = vpack.c.bf16 %v2750_v24, %v2749_v54  ;;  %v2758_v41 = vld [vmem:[#allocation9 + $0x1c8] sm:$0xff]  ;;  %v2893_v54 = vld [vmem:[#allocation9 + $0x230] sm:$0xff]  ;;  %v2894_v24 = vld [vmem:[#allocation9 + $0x238] sm:$0xff] }
 0x3e5   : > { %v8007_v52 = vpack.c.bf16 %v2758_v41, %v2757_v17  ;;  %v2901_v41 = vld [vmem:[#allocation9 + $0x270] sm:$0xff] }
 0x3e7   : > { %7946 = vmatpush3.bf16.msra.mxu1 %v7943_v5  ;;  %v2752_v5 = vld [vmem:[#allocation9 + $0x198] sm:$0xff] }
 0x3e8   : > { %7948 = vmatprep.subr.bf16.mxu1 %v7947_v38  ;;  %v7995_v6 = vpack.c.bf16 %v2752_v5, %v2751_v26  ;;  %v2895_v26 = vld [vmem:[#allocation9 + $0x240] sm:$0xff]  ;;  %v2896_v5 = vld [vmem:[#allocation9 + $0x248] sm:$0xff] }
 0x3eb   : > { %7950 = vmatpush3.bf16.msra.mxu1 %v7947_v38  ;;  %v2753_v38 = vld [vmem:[#allocation9 + $0x1a0] sm:$0xff] }
 0x3ec   : > { %7952 = vmatprep.subr.bf16.mxu1 %v7951_v25 }
 0x3ef   : > { %7954 = vmatpush3.bf16.msra.mxu1 %v7951_v25  ;;  %v7999_v25 = vpack.c.bf16 %v2754_v7, %v2753_v38  ;;  %v10047_v38 = vld [vmem:[#allocation2 + $0xc7] sm:$0xff] }
 0x3f0   : > { %7956 = vmatprep.subr.bf16.mxu1 %v7955_v16  ;;  %v2897_v7 = vld [vmem:[#allocation9 + $0x250] sm:$0xff] }
 0x3f3   : > { %7958 = vmatpush3.bf16.msra.mxu1 %v7955_v16  ;;  %v2756_v16 = vld [vmem:[#allocation9 + $0x1b8] sm:$0xff] }
 0x3f4   : > { %7960 = vmatprep.subr.bf16.mxu1 %v7959_v40  ;;  %v8003_v20 = vpack.c.bf16 %v2756_v16, %v2755_v12  ;;  %v2899_v16 = vld [vmem:[#allocation9 + $0x260] sm:$0xff] }
 0x3f6   : > { %6730 = vmatmul.mubr.f32.vlgmr.msra.gmra.mrb[12].mxu1 %v9964_v0 }
 0x3f7   : > { %6732 = vmatprep.mubr.f32.mxu1 %v9966_v59  ;;  %7962 = vmatpush3.bf16.msra.mxu1 %v7959_v40  ;;  %v10031_v40 = vld [vmem:[#allocation2 + $0x81] sm:$0xff] }
 0x3f8   : > { %7964 = vmatprep.subr.bf16.mxu1 %v7963_v2 }
 0x3fa   : > { %6733 = vmatmul.mubr.f32.gmra.mrb[14].mxu1 %v9968_v3 }
 0x3fb   : > { %6735 = vmatprep.mubr.f32.mxu1 %v9971_v9  ;;  %7966 = vmatpush3.bf16.msra.mxu1 %v7963_v2  ;;  %v10034_v2 = vld [vmem:[#allocation2 + $0x99] sm:$0xff] }
 0x3fc   : > { %7968 = vmatprep.subr.bf16.mxu1 %v7967_v1 }
 0x3fe   : > { %6736 = vmatmul.mubr.f32.gmra.mrb[16].mxu1 %v9974_v10 }
 0x3ff   : > { %6738 = vmatprep.mubr.f32.mxu1 %v9977_v22  ;;  %7970 = vmatpush3.bf16.msra.mxu1 %v7967_v1  ;;  %v2759_v1 = vld [vmem:[#allocation9 + $0x1d0] sm:$0xff] }
 0x400   : > { %7972 = vmatprep.subr.bf16.mxu1 %v7971_v53  ;;  %v8011_v48 = vpack.c.bf16 %v2760_v47, %v2759_v1  ;;  %v3025_v47 = vld [vmem:[#allocation9 + $0x280] sm:$0xff] }
 0x402   : > { %6739 = vmatmul.mubr.f32.gmra.mrb[18].mxu1 %v9980_v31 }
 0x403   : > { %7974 = vmatpush3.bf16.msra.mxu1 %v7971_v53  ;;  %6773 = vmatprep.mubr.f32.mxu1 %v2602_v33  ;;  %v2761_v53 = vld [vmem:[#allocation9 + $0x1e0] sm:$0xff]  ;;  %v2764_v33 = vld [vmem:[#allocation9 + $0x1f8] sm:$0xff] }
 0x404   : > { %7976 = vmatprep.subr.bf16.mxu1 %v7975_v8  ;;  %v8015_v61 = vpack.c.bf16 %v2762_v55, %v2761_v53  ;;  %v3027_v55 = vld [vmem:[#allocation9 + $0x290] sm:$0xff] }
 0x407   : > { %7978 = vmatpush3.bf16.msra.mxu1 %v7975_v8  ;;  %v2763_v8 = vld [vmem:[#allocation9 + $0x1f0] sm:$0xff] }
 0x408   : > { %7980 = vmatprep.subr.bf16.mxu1 %v7979_v56  ;;  %v8019_v34 = vpack.c.bf16 %v2764_v33, %v2763_v8  ;;  %v3029_v8 = vld [vmem:[#allocation9 + $0x2a0] sm:$0xff]  ;;  %v3030_v33 = vld [vmem:[#allocation9 + $0x2a8] sm:$0xff] }
 0x40b   : > { %7982 = vmatpush3.bf16.msra.mxu1 %v7979_v56  ;;  %v2888_v56 = vld [vmem:[#allocation9 + $0x208] sm:$0xff] }
 0x40c   : > { %7984 = vmatprep.subr.bf16.mxu1 %v7983_v45  ;;  %v8023_v63 = vpack.c.bf16 %v2888_v56, %v2887_v49  ;;  %v3031_v49 = vld [vmem:[#allocation9 + $0x2b0] sm:$0xff]  ;;  %v3032_v56 = vld [vmem:[#allocation9 + $0x2b8] sm:$0xff] }
 0x40f   : > { %7986 = vmatpush3.bf16.msra.mxu1 %v7983_v45  ;;  %v2890_v45 = vld [vmem:[#allocation9 + $0x218] sm:$0xff] }
 0x410   : > { %7988 = vmatprep.subr.bf16.mxu1 %v7987_v21 }
 0x413   : > { %7990 = vmatpush3.bf16.msra.mxu1 %v7987_v21  ;;  %v8031_v21 = vpack.c.bf16 %v2892_v51, %v2891_v14  ;;  %v3035_v14 = vld [vmem:[#allocation9 + $0x2d0] sm:$0xff]  ;;  %v3036_v51 = vld [vmem:[#allocation9 + $0x2d8] sm:$0xff] }
 0x414   : > { %7992 = vmatprep.subr.bf16.mxu1 %v7991_v46 }
 0x416   : > { %6774 = vmatmul.mubr.f32.vlgmr.msra.gmra.mrb[12].mxu1 %v10019_v36 }
 0x417   : > { %6776 = vmatprep.mubr.f32.mxu1 %v10022_v11  ;;  %7994 = vmatpush3.bf16.msra.mxu1 %v7991_v46  ;;  %v8035_v46 = vpack.c.bf16 %v2894_v24, %v2893_v54  ;;  %v3037_v54 = vld [vmem:[#allocation9 + $0x2e0] sm:$0xff]  ;;  %v3038_v24 = vld [vmem:[#allocation9 + $0x2e8] sm:$0xff] }
 0x418   : > { %7996 = vmatprep.subr.bf16.mxu1 %v7995_v6 }
 0x41a   : > { %6777 = vmatmul.mubr.f32.gmra.mrb[14].mxu1 %v10025_v42 }
 0x41b   : > { %6779 = vmatprep.mubr.f32.mxu1 %v10028_v18  ;;  %7998 = vmatpush3.bf16.msra.mxu1 %v7995_v6  ;;  %v8039_v6 = vpack.c.bf16 %v2896_v5, %v2895_v26  ;;  %v3039_v26 = vld [vmem:[#allocation9 + $0x2f0] sm:$0xff]  ;;  %v3040_v5 = vld [vmem:[#allocation9 + $0x2f8] sm:$0xff] }
 0x41c   : > { %8000 = vmatprep.subr.bf16.mxu1 %v7999_v25 }
 0x41e   : > { %6780 = vmatmul.mubr.f32.gmra.mrb[16].mxu1 %v10031_v40 }
 0x41f   : > { %6782 = vmatprep.mubr.f32.mxu1 %v10034_v2  ;;  %8002 = vmatpush3.bf16.msra.mxu1 %v7999_v25  ;;  %v2898_v25 = vld [vmem:[#allocation9 + $0x258] sm:$0xff] }
 0x420   : > { %8004 = vmatprep.subr.bf16.mxu1 %v8003_v20  ;;  %v8043_v12 = vpack.c.bf16 %v2898_v25, %v2897_v7  ;;  %v3163_v7 = vld [vmem:[#allocation9 + $0x300] sm:$0xff]  ;;  %v3164_v25 = vld [vmem:[#allocation9 + $0x308] sm:$0xff] }
 0x422   : > { %6783 = vmatmul.mubr.f32.gmra.mrb[18].mxu1 %v10037_v58 }
 0x423   : > { %8006 = vmatpush3.bf16.msra.mxu1 %v8003_v20  ;;  %6817 = vmatprep.mubr.f32.mxu1 %v9989_v57  ;;  %v8027_v57 = vpack.c.bf16 %v2890_v45, %v2889_v44  ;;  %v2900_v20 = vld [vmem:[#allocation9 + $0x268] sm:$0xff]  ;;  %v3033_v44 = vld [vmem:[#allocation9 + $0x2c0] sm:$0xff] }
 0x424   : > { %8008 = vmatprep.subr.bf16.mxu1 %v8007_v52  ;;  %v8047_v17 = vpack.c.bf16 %v2900_v20, %v2899_v16  ;;  %v3034_v45 = vld [vmem:[#allocation9 + $0x2c8] sm:$0xff]  ;;  %v3165_v16 = vld [vmem:[#allocation9 + $0x310] sm:$0xff]  ;;  %v3166_v20 = vld [vmem:[#allocation9 + $0x318] sm:$0xff] }
 0x427   : > { %8010 = vmatpush3.bf16.msra.mxu1 %v8007_v52  ;;  %v2902_v52 = vld [vmem:[#allocation9 + $0x278] sm:$0xff] }
 0x428   : > { %8012 = vmatprep.subr.bf16.mxu1 %v8011_v48  ;;  %v8051_v1 = vpack.c.bf16 %v2902_v52, %v2901_v41  ;;  %v3168_v41 = vld [vmem:[#allocation9 + $0x328] sm:$0xff] }
 0x42b   : > { %8014 = vmatpush3.bf16.msra.mxu1 %v8011_v48  ;;  %v3026_v48 = vld [vmem:[#allocation9 + $0x288] sm:$0xff] }
 0x42c   : > { %8016 = vmatprep.subr.bf16.mxu1 %v8015_v61  ;;  %v8055_v53 = vpack.c.bf16 %v3026_v48, %v3025_v47  ;;  %v3170_v47 = vld [vmem:[#allocation9 + $0x338] sm:$0xff] }
 0x42f   : > { %8018 = vmatpush3.bf16.msra.mxu1 %v8015_v61  ;;  %v3028_v61 = vld [vmem:[#allocation9 + $0x298] sm:$0xff] }
 0x430   : > { %8020 = vmatprep.subr.bf16.mxu1 %v8019_v34 }
 0x433   : > { %8022 = vmatpush3.bf16.msra.mxu1 %v8019_v34  ;;  %v8063_v34 = vpack.c.bf16 %v3030_v33, %v3029_v8  ;;  %v3173_v8 = vld [vmem:[#allocation9 + $0x350] sm:$0xff]  ;;  %v3174_v33 = vld [vmem:[#allocation9 + $0x358] sm:$0xff] }
 0x434   : > { %8024 = vmatprep.subr.bf16.mxu1 %v8023_v63 }
 0x436   : > { %6818 = vmatmul.mubr.f32.vlgmr.msra.gmra.mrb[12].mxu1 %v9992_v62 }
 0x437   : > { %6820 = vmatprep.mubr.f32.mxu1 %v9996_v15  ;;  %8026 = vmatpush3.bf16.msra.mxu1 %v8023_v63  ;;  %v8067_v63 = vpack.c.bf16 %v3032_v56, %v3031_v49  ;;  %v3175_v49 = vld [vmem:[#allocation9 + $0x360] sm:$0xff]  ;;  %v3176_v56 = vld [vmem:[#allocation9 + $0x368] sm:$0xff] }
 0x438   : > { %8028 = vmatprep.subr.bf16.mxu1 %v8027_v57 }
 0x43a   : > { %6821 = vmatmul.mubr.f32.gmra.mrb[14].mxu1 %v9999_v23 }
 0x43b   : > { %6823 = vmatprep.mubr.f32.mxu1 %v10002_v60  ;;  %8030 = vmatpush3.bf16.msra.mxu1 %v8027_v57  ;;  %v8071_v57 = vpack.c.bf16 %v3034_v45, %v3033_v44  ;;  %v3177_v44 = vld [vmem:[#allocation9 + $0x370] sm:$0xff]  ;;  %v3178_v45 = vld [vmem:[#allocation9 + $0x378] sm:$0xff] }
 0x43c   : > { %8032 = vmatprep.subr.bf16.mxu1 %v8031_v21 }
 0x43e   : > { %6824 = vmatmul.mubr.f32.gmra.mrb[16].mxu1 %v10005_v28 }
 0x43f   : > { %6826 = vmatprep.mubr.f32.mxu1 %v10008_v35  ;;  %8034 = vmatpush3.bf16.msra.mxu1 %v8031_v21  ;;  %v8075_v21 = vpack.c.bf16 %v3036_v51, %v3035_v14  ;;  %v3301_v14 = vld [vmem:[#allocation9 + $0x380] sm:$0xff]  ;;  %v3302_v51 = vld [vmem:[#allocation9 + $0x388] sm:$0xff] }
 0x440   : > { %8036 = vmatprep.subr.bf16.mxu1 %v8035_v46 }
 0x442   : > { %6827 = vmatmul.mubr.f32.gmra.mrb[18].mxu1 %v10047_v38 }
 0x443   : > { %8038 = vmatpush3.bf16.msra.mxu1 %v8035_v46  ;;  %6861 = vmatprep.mubr.f32.mxu1 %v9964_v0  ;;  %v8059_v0 = vpack.c.bf16 %v3028_v61, %v3027_v55  ;;  %v8079_v46 = vpack.c.bf16 %v3038_v24, %v3037_v54  ;;  %v3172_v55 = vld [vmem:[#allocation9 + $0x348] sm:$0xff]  ;;  %v3303_v54 = vld [vmem:[#allocation9 + $0x390] sm:$0xff]  ;;  %v3304_v24 = vld [vmem:[#allocation9 + $0x398] sm:$0xff] }
 0x444   : > { %8040 = vmatprep.subr.bf16.mxu1 %v8039_v6 }
 0x447   : > { %8042 = vmatpush3.bf16.msra.mxu1 %v8039_v6  ;;  %v8083_v6 = vpack.c.bf16 %v3040_v5, %v3039_v26  ;;  %v3306_v26 = vld [vmem:[#allocation9 + $0x3a8] sm:$0xff] }
 0x448   : > { %8044 = vmatprep.subr.bf16.mxu1 %v8043_v12 }
 0x44b   : > { %8046 = vmatpush3.bf16.msra.mxu1 %v8043_v12  ;;  %v8087_v12 = vpack.c.bf16 %v3164_v25, %v3163_v7  ;;  %v3308_v7 = vld [vmem:[#allocation9 + $0x3b8] sm:$0xff] }
 0x44c   : > { %8048 = vmatprep.subr.bf16.mxu1 %v8047_v17 }
 0x44f   : > { %8050 = vmatpush3.bf16.msra.mxu1 %v8047_v17  ;;  %v3167_v17 = vld [vmem:[#allocation9 + $0x320] sm:$0xff] }
 0x450   : > { %8052 = vmatprep.subr.bf16.mxu1 %v8051_v1  ;;  %v8095_v52 = vpack.c.bf16 %v3168_v41, %v3167_v17  ;;  %v3314_v17 = vld [vmem:[#allocation9 + $0x3e8] sm:$0xff] }
 0x453   : > { %8054 = vmatpush3.bf16.msra.mxu1 %v8051_v1  ;;  %v3169_v1 = vld [vmem:[#allocation9 + $0x330] sm:$0xff] }
 0x454   : > { %8056 = vmatprep.subr.bf16.mxu1 %v8055_v53  ;;  %v8099_v48 = vpack.c.bf16 %v3170_v47, %v3169_v1  ;;  %v3439_v1 = vld [vmem:[#allocation9 + $0x400] sm:$0xff]  ;;  %v3440_v47 = vld [vmem:[#allocation9 + $0x408] sm:$0xff] }
 0x456   : > { %6862 = vmatmul.mubr.f32.vlgmr.msra.gmra.mrb[12].mxu1 %v9966_v59 }
 0x457   : > { %6864 = vmatprep.mubr.f32.mxu1 %v9968_v3  ;;  %8058 = vmatpush3.bf16.msra.mxu1 %v8055_v53  ;;  %v3171_v53 = vld [vmem:[#allocation9 + $0x340] sm:$0xff] }
 0x458   : > { %8060 = vmatprep.subr.bf16.mxu1 %v8059_v0  ;;  %v8103_v61 = vpack.c.bf16 %v3172_v55, %v3171_v53  ;;  %v3441_v53 = vld [vmem:[#allocation9 + $0x410] sm:$0xff]  ;;  %v3442_v55 = vld [vmem:[#allocation9 + $0x418] sm:$0xff] }
 0x45a   : > { %6865 = vmatmul.mubr.f32.gmra.mrb[14].mxu1 %v9971_v9 }
 0x45b   : > { %6867 = vmatprep.mubr.f32.mxu1 %v9974_v10  ;;  %8062 = vmatpush3.bf16.msra.mxu1 %v8059_v0  ;;  %v10065_v0 = vld [vmem:[#allocation2 + $0xc9] sm:$0xff] }
 0x45c   : > { %8064 = vmatprep.subr.bf16.mxu1 %v8063_v34 }
 0x45e   : > { %6868 = vmatmul.mubr.f32.gmra.mrb[16].mxu1 %v9977_v22 }
 0x45f   : > { %6870 = vmatprep.mubr.f32.mxu1 %v9980_v31  ;;  %8066 = vmatpush3.bf16.msra.mxu1 %v8063_v34  ;;  %v8107_v34 = vpack.c.bf16 %v3174_v33, %v3173_v8  ;;  %v3444_v8 = vld [vmem:[#allocation9 + $0x428] sm:$0xff] }
 0x460   : > { %8068 = vmatprep.subr.bf16.mxu1 %v8067_v63 }
 0x462   : > { %6871 = vmatmul.mubr.f32.gmra.mrb[18].mxu1 %v9984_v13 }
 0x463   : > { %8070 = vmatpush3.bf16.msra.mxu1 %v8067_v63  ;;  %6905 = vmatprep.mubr.f32.mxu1 %v10019_v36  ;;  %v8091_v36 = vpack.c.bf16 %v3166_v20, %v3165_v16  ;;  %v8111_v63 = vpack.c.bf16 %v3176_v56, %v3175_v49  ;;  %v3310_v16 = vld [vmem:[#allocation9 + $0x3c8] sm:$0xff]  ;;  %v3311_v20 = vld [vmem:[#allocation9 + $0x3d0] sm:$0xff]  ;;  %v3446_v49 = vld [vmem:[#allocation9 + $0x438] sm:$0xff] }
 0x464   : > { %8072 = vmatprep.subr.bf16.mxu1 %v8071_v57 }
 0x467   : > { %8074 = vmatpush3.bf16.msra.mxu1 %v8071_v57  ;;  %v8115_v57 = vpack.c.bf16 %v3178_v45, %v3177_v44  ;;  %v3448_v44 = vld [vmem:[#allocation9 + $0x448] sm:$0xff]  ;;  %v3450_v45 = vld [vmem:[#allocation9 + $0x458] sm:$0xff] }
 0x468   : > { %8076 = vmatprep.subr.bf16.mxu1 %v8075_v21 }
 0x46b   : > { %8078 = vmatpush3.bf16.msra.mxu1 %v8075_v21  ;;  %v8119_v21 = vpack.c.bf16 %v3302_v51, %v3301_v14  ;;  %v3452_v14 = vld [vmem:[#allocation9 + $0x468] sm:$0xff]  ;;  %v3454_v51 = vld [vmem:[#allocation9 + $0x478] sm:$0xff] }
 0x46c   : > { %8080 = vmatprep.subr.bf16.mxu1 %v8079_v46 }
 0x46f   : > { %8082 = vmatpush3.bf16.msra.mxu1 %v8079_v46  ;;  %v3305_v46 = vld [vmem:[#allocation9 + $0x3a0] sm:$0xff] }
 0x470   : > { %8084 = vmatprep.subr.bf16.mxu1 %v8083_v6  ;;  %v8127_v5 = vpack.c.bf16 %v3306_v26, %v3305_v46  ;;  %v3617_v26 = vld [vmem:[#allocation8 + $0x38] sm:$0xff] }
 0x473   : > { %8086 = vmatpush3.bf16.msra.mxu1 %v8083_v6  ;;  %v3307_v6 = vld [vmem:[#allocation9 + $0x3b0] sm:$0xff] }
 0x474   : > { %8088 = vmatprep.subr.bf16.mxu1 %v8087_v12  ;;  %v8131_v25 = vpack.c.bf16 %v3308_v7, %v3307_v6  ;;  %v3618_v6 = vld [vmem:[#allocation8 + $0x40] sm:$0xff]  ;;  %v3619_v7 = vld [vmem:[#allocation8 + $0x48] sm:$0xff] }
 0x476   : > { %6906 = vmatmul.mubr.f32.vlgmr.msra.gmra.mrb[12].mxu1 %v10022_v11 }
 0x477   : > { %6908 = vmatprep.mubr.f32.mxu1 %v10025_v42  ;;  %8090 = vmatpush3.bf16.msra.mxu1 %v8087_v12  ;;  %v3309_v12 = vld [vmem:[#allocation9 + $0x3c0] sm:$0xff] }
 0x478   : > { %8092 = vmatprep.subr.bf16.mxu1 %v8091_v36 }
 0x47a   : > { %6909 = vmatmul.mubr.f32.gmra.mrb[14].mxu1 %v10028_v18 }
 0x47b   : > { %6911 = vmatprep.mubr.f32.mxu1 %v10031_v40  ;;  %8094 = vmatpush3.bf16.msra.mxu1 %v8091_v36  ;;  %v3312_v36 = vld [vmem:[#allocation9 + $0x3d8] sm:$0xff] }
 0x47c   : > { %8096 = vmatprep.subr.bf16.mxu1 %v8095_v52 }
 0x47e   : > { %6912 = vmatmul.mubr.f32.gmra.mrb[16].mxu1 %v10034_v2 }
 0x47f   : > { %6914 = vmatprep.mubr.f32.mxu1 %v10037_v58  ;;  %8098 = vmatpush3.bf16.msra.mxu1 %v8095_v52  ;;  %v3316_v52 = vld [vmem:[#allocation9 + $0x3f8] sm:$0xff] }
 0x480   : > { %8100 = vmatprep.subr.bf16.mxu1 %v8099_v48 }
 0x482   : > { %6915 = vmatmul.mubr.f32.gmra.mrb[18].mxu1 %v10065_v0 }
 0x483   : > { %8102 = vmatpush3.bf16.msra.mxu1 %v8099_v48  ;;  %6949 = vmatprep.mubr.f32.mxu1 %v9992_v62  ;;  %v8123_v62 = vpack.c.bf16 %v3304_v24, %v3303_v54  ;;  %v8151_v48 = vpack.c.bf16 %v3440_v47, %v3439_v1  ;;  %v3610_v54 = vld [vmem:[#allocation8] sm:$0xff]  ;;  %v3611_v24 = vld [vmem:[#allocation8 + $0x8] sm:$0xff] }
 0x484   : > { %8104 = vmatprep.subr.bf16.mxu1 %v8103_v61 }
 0x487   : > { %8106 = vmatpush3.bf16.msra.mxu1 %v8103_v61  ;;  %v3443_v61 = vld [vmem:[#allocation9 + $0x420] sm:$0xff] }
 0x488   : > { %8108 = vmatprep.subr.bf16.mxu1 %v8107_v34  ;;  %v8159_v33 = vpack.c.bf16 %v3444_v8, %v3443_v61 }
 0x48b   : > { %8110 = vmatpush3.bf16.msra.mxu1 %v8107_v34  ;;  %v3445_v34 = vld [vmem:[#allocation9 + $0x430] sm:$0xff] }
 0x48c   : > { %8112 = vmatprep.subr.bf16.mxu1 %v8111_v63  ;;  %v8163_v56 = vpack.c.bf16 %v3446_v49, %v3445_v34 }
 0x48f   : > { %8114 = vmatpush3.bf16.msra.mxu1 %v8111_v63  ;;  %v3447_v63 = vld [vmem:[#allocation9 + $0x440] sm:$0xff] }
 0x490   : > { %8116 = vmatprep.subr.bf16.mxu1 %v8115_v57 }
 0x493   : > { %8118 = vmatpush3.bf16.msra.mxu1 %v8115_v57  ;;  %v10082_v57 = vld [vmem:[#allocation2] sm:$0xff] }
 0x494   : > { %8120 = vmatprep.subr.bf16.mxu1 %v8119_v21 }
 0x496   : > { %6950 = vmatmul.mubr.f32.vlgmr.msra.gmra.mrb[12].mxu1 %v9996_v15  ;;  %v3161_v15 = vld [vmem:[#allocation2 + $0xdf] sm:$0xff] }
 0x497   : > { %6952 = vmatprep.mubr.f32.mxu1 %v9999_v23  ;;  %8122 = vmatpush3.bf16.msra.mxu1 %v8119_v21  ;;  %v8135_v23 = vpack.c.bf16 %v3310_v16, %v3309_v12  ;;  %v3620_v12 = vld [vmem:[#allocation8 + $0x50] sm:$0xff]  ;;  %v3621_v16 = vld [vmem:[#allocation8 + $0x58] sm:$0xff] }
 0x498   : > { %8124 = vmatprep.subr.bf16.mxu1 %v8123_v62 }
 0x49a   : > { %6953 = vmatmul.mubr.f32.gmra.mrb[14].mxu1 %v10002_v60  ;;  %v8139_v60 = vpack.c.bf16 %v3312_v36, %v3311_v20  ;;  %v3623_v20 = vld [vmem:[#allocation8 + $0x68] sm:$0xff] }
 0x49b   : > { %6955 = vmatprep.mubr.f32.mxu1 %v10005_v28  ;;  %8126 = vmatpush3.bf16.msra.mxu1 %v8123_v62  ;;  %v3313_v28 = vld [vmem:[#allocation9 + $0x3e0] sm:$0xff]  ;;  %v10092_v62 = vpack.c.bf16 %v3611_v24, %v3610_v54 }
 0x49c   : > { %8128 = vmatprep.subr.bf16.mxu1 %v8127_v5  ;;  %v8143_v41 = vpack.c.bf16 %v3314_v17, %v3313_v28  ;;  %v3625_v28 = vld [vmem:[#allocation8 + $0x78] sm:$0xff] }
 0x49d   : > { %8185 = vmatpush3.bf16.msra.mxu0 %v10092_v62 }
 0x49e   : > { %6956 = vmatmul.mubr.f32.gmra.mrb[16].mxu1 %v10008_v35  ;;  %v3315_v35 = vld [vmem:[#allocation9 + $0x3f0] sm:$0xff]  ;;  %8186 = vmatprep.subr.bf16.mxu0 %v9259_v43 }
 0x49f   : > { %6958 = vmatprep.mubr.f32.mxu1 %v10047_v38  ;;  %8130 = vmatpush3.bf16.msra.mxu1 %v8127_v5  ;;  %v8147_v38 = vpack.c.bf16 %v3316_v52, %v3315_v35 }
 0x4a0   : > { %8132 = vmatprep.subr.bf16.mxu1 %v8131_v25 }
 0x4a2   : > { %6959 = vmatmul.mubr.f32.gmra.mrb[18].mxu1 %v3161_v15  ;;  %v10112_v15 = vpack.c.bf16 %v3621_v16, %v3620_v12 }
 0x4a3   : > { %8134 = vmatpush3.bf16.msra.mxu1 %v8131_v25  ;;  %6993 = vmatprep.mubr.f32.mxu1 %v9966_v59  ;;  %v8155_v59 = vpack.c.bf16 %v3442_v55, %v3441_v53  ;;  %v10108_v25 = vpack.c.bf16 %v3619_v7, %v3618_v6 }
 0x4a4   : > { %8136 = vmatprep.subr.bf16.mxu1 %v8135_v23 }
 0x4a7   : > { %8138 = vmatpush3.bf16.msra.mxu1 %v8135_v23  ;;  %v3622_v23 = vld [vmem:[#allocation8 + $0x60] sm:$0xff] }
 0x4a8   : > { %8140 = vmatprep.subr.bf16.mxu1 %v8139_v60  ;;  %v10116_v36 = vpack.c.bf16 %v3623_v20, %v3622_v23 }
 0x4ab   : > { %8142 = vmatpush3.bf16.msra.mxu1 %v8139_v60  ;;  %v3624_v60 = vld [vmem:[#allocation8 + $0x70] sm:$0xff] }
 0x4ac   : > { %8144 = vmatprep.subr.bf16.mxu1 %v8143_v41  ;;  %v10119_v17 = vpack.c.bf16 %v3625_v28, %v3624_v60 }
 0x4af   : > { %8146 = vmatpush3.bf16.msra.mxu1 %v8143_v41  ;;  %v5429_v41 = vld [vmem:[%s10458_s18] ss:$0 sm:$0xff] }
 0x4b0   : > { %8148 = vmatprep.subr.bf16.mxu1 %v8147_v38 }
 0x4b3   : > { %8150 = vmatpush3.bf16.msra.mxu1 %v8147_v38 }
 0x4b4   : > { %8152 = vmatprep.subr.bf16.mxu1 %v8151_v48 }
 0x4b6   : > { %6994 = vmatmul.mubr.f32.vlgmr.msra.gmra.mrb[12].mxu1 %v9968_v3  ;;  %v8167_v3 = vpack.c.bf16 %v3448_v44, %v3447_v63 }
 0x4b7   : > { %6996 = vmatprep.mubr.f32.mxu1 %v9971_v9  ;;  %8154 = vmatpush3.bf16.msra.mxu1 %v8151_v48  ;;  %v3449_v9 = vld [vmem:[#allocation9 + $0x450] sm:$0xff] }
 0x4b8   : > { %8156 = vmatprep.subr.bf16.mxu1 %v8155_v59 }
 0x4ba   : > { %6997 = vmatmul.mubr.f32.gmra.mrb[14].mxu1 %v9974_v10  ;;  %v8171_v10 = vpack.c.bf16 %v3450_v45, %v3449_v9 }
 0x4bb   : > { %6999 = vmatprep.mubr.f32.mxu1 %v9977_v22  ;;  %8158 = vmatpush3.bf16.msra.mxu1 %v8155_v59  ;;  %v3451_v22 = vld [vmem:[#allocation9 + $0x460] sm:$0xff] }
 0x4bc   : > { %8160 = vmatprep.subr.bf16.mxu1 %v8159_v33 }
 0x4be   : > { %7000 = vmatmul.mubr.f32.gmra.mrb[16].mxu1 %v9980_v31  ;;  %v8175_v31 = vpack.c.bf16 %v3452_v14, %v3451_v22 }
 0x4bf   : > { %7002 = vmatprep.mubr.f32.mxu1 %v9984_v13  ;;  %8162 = vmatpush3.bf16.msra.mxu1 %v8159_v33  ;;  %v3453_v13 = vld [vmem:[#allocation9 + $0x470] sm:$0xff] }
 0x4c0   : > { %8164 = vmatprep.subr.bf16.mxu1 %v8163_v56  ;;  %v8179_v21 = vpack.c.bf16 %v3454_v51, %v3453_v13 }
 0x4c2   : > { %7003 = vmatmul.mubr.f32.gmra.mrb[18].mxu1 %v10082_v57 }
 0x4c3   : > { %8166 = vmatpush3.bf16.msra.mxu1 %v8163_v56  ;;  %7037 = vmatprep.mubr.f32.mxu1 %v10022_v11  ;;  %v3437_v11 = vld [vmem:[#allocation2 + $0xe1] sm:$0xff] }
 0x4c4   : > { %8168 = vmatprep.subr.bf16.mxu1 %v8167_v3 }
 0x4c7   : > { %8170 = vmatpush3.bf16.msra.mxu1 %v8167_v3 }
 0x4c8   : > { %8172 = vmatprep.subr.bf16.mxu1 %v8171_v10 }
 0x4cb   : > { %8174 = vmatpush3.bf16.msra.mxu1 %v8171_v10 }
 0x4cc   : > { %8176 = vmatprep.subr.bf16.mxu1 %v8175_v31 }
 0x4cf   : > { %8178 = vmatpush3.bf16.msra.mxu1 %v8175_v31 }
 0x4d0   : > { %8180 = vmatprep.subr.bf16.mxu1 %v8179_v21 }
 0x4d3   : > { %8182 = vmatpush3.bf16.msra.mxu1 %v8179_v21 }
 0x4d6   : > { %7038 = vmatmul.mubr.f32.vlgmr.msra.gmra.mrb[12].mxu1 %v10025_v42  ;;  %v3612_v42 = vld [vmem:[#allocation8 + $0x10] sm:$0xff] }
 0x4d7   : > { %7040 = vmatprep.mubr.f32.mxu1 %v10028_v18  ;;  %v3613_v18 = vld [vmem:[#allocation8 + $0x18] sm:$0xff] }
 0x4d8   : > { %v10096_v46 = vpack.c.bf16 %v3613_v18, %v3612_v42 }
 0x4da   : > { %7041 = vmatmul.mubr.f32.gmra.mrb[14].mxu1 %v10031_v40  ;;  %8188 = vmatpush3.bf16.msra.mxu0 %v10096_v46  ;;  %v3614_v40 = vld [vmem:[#allocation8 + $0x20] sm:$0xff] }
 0x4db   : > { %7043 = vmatprep.mubr.f32.mxu1 %v10034_v2  ;;  %8189 = vmatprep.subr.bf16.mxu0 %v9259_v43  ;;  %v3615_v2 = vld [vmem:[#allocation8 + $0x28] sm:$0xff] }
 0x4de   : > { %7044 = vmatmul.mubr.f32.gmra.mrb[16].mxu1 %v10037_v58  ;;  %v10100_v58 = vpack.c.bf16 %v3615_v2, %v3614_v40 }
 0x4df   : > { %7046 = vmatprep.mubr.f32.mxu1 %v10065_v0  ;;  %v3616_v0 = vld [vmem:[#allocation8 + $0x30] sm:$0xff] }
 0x4e0   : > { %8191 = vmatpush3.bf16.msra.mxu0 %v10100_v58  ;;  %v10104_v5 = vpack.c.bf16 %v3617_v26, %v3616_v0 }
 0x4e1   : > { %8192 = vmatprep.subr.bf16.mxu0 %v9259_v43 }
 0x4e2   : > { %7047 = vmatmul.mubr.f32.gmra.mrb[18].mxu1 %v3437_v11 }
 0x4e4   : > { %8194 = vmatpush3.bf16.msra.mxu0 %v10104_v5 }
 0x4e5   : > { %8195 = vmatprep.subr.bf16.mxu0 %v9259_v43 }
 0x4e8   : > { %8197 = vmatpush3.bf16.msra.mxu0 %v10108_v25 }
 0x4e9   : > { %8198 = vmatprep.subr.bf16.mxu0 %v9259_v43 }
 0x4ec   : > { %8200 = vmatpush3.bf16.msra.mxu0 %v10112_v15 }
 0x4ed   : > { %8201 = vmatprep.subr.bf16.mxu0 %v9259_v43 }
 0x4f0   : > { %8203 = vmatpush3.bf16.msra.mxu0 %v10116_v36 }
 0x4f1   : > { %8204 = vmatprep.subr.bf16.mxu0 %v9259_v43 }
 0x4f4   : > { %8206 = vmatpush3.bf16.msra.mxu0 %v10119_v17 }
 0x4f5   : > { %8207 = vmatprep.subr.bf16.mxu0 %v9259_v43 }
 0x5a9   : > { %v7039_v35 = vpop.f32.mrb[12].mxu1 }
 0x5aa   : > { %v8567_v52 = vadd.f32 %v7039_v35, %v5429_v41  ;;  %v3521_v38 = vpop.f32.mrb[13].mxu1 }
 0x5ab   : > { %v8568_v1 = vadd.f32 %v5429_v41, %v3521_v38  ;;  %v3882_v38 = vld [vmem:[#allocation11 + $0x8] sm:$0xff] }
 0x5ac   : > { %v10128_v47 = vadd.f32 %v8567_v52, %v9885_v19  ;;  %v3881_v52 = vld [vmem:[#allocation11] sm:$0xff] }
 0x5ad   : > { %v10131_v48 = vadd.f32 %v8568_v1, %v9887_v4  ;;  %v7042_v53 = vpop.f32.mrb[14].mxu1  ;;  %v3883_v1 = vld [vmem:[#allocation11 + $0x10] sm:$0xff] }
 0x5ae   : > { %v3531_v55 = vpop.f32.mrb[15].mxu1  ;;  %v8569_v59 = vadd.f32 %v7042_v53, %v5429_v41  ;;  %v3590_v45 = vmul.f32 %v10128_v47, %v10128_v47  ;;  %v3884_v53 = vld [vmem:[#allocation11 + $0x18] sm:$0xff] }
 0x5af   : > { %v8570_v61 = vadd.f32 %v5429_v41, %v3531_v55  ;;  %v3576_v8 = vadd.f32 %v10128_v47, %v10131_v48  ;;  %v3885_v55 = vld [vmem:[#allocation11 + $0x20] sm:$0xff] }
 0x5b0   : > { %v10139_v56 = vadd.f32 %v8569_v59, %v9889_v27  ;;  %v3886_v59 = vld [vmem:[#allocation11 + $0x28] sm:$0xff] }
 0x5b1   : > { %v10136_v33 = vadd.f32 %v8570_v61, %v9893_v29  ;;  %v7045_v34 = vpop.f32.mrb[16].mxu1  ;;  %v3589_v29 = vmul.f32 %v10131_v48, %v10131_v48  ;;  %v3888_v61 = vld [vmem:[#allocation11 + $0x38] sm:$0xff] }
 0x5b2   : > { %v3541_v49 = vpop.f32.mrb[17].mxu1  ;;  %v8571_v63 = vadd.f32 %v7045_v34, %v5429_v41  ;;  %v3592_v42 = vmul.f32 %v10139_v56, %v10139_v56  ;;  %v3890_v34 = vld [vmem:[#allocation11 + $0x48] sm:$0xff] }
 0x5b3   : > { %v3577_v19 = vadd.f32 %v3576_v8, %v10136_v33  ;;  %v8572_v4 = vadd.f32 %v5429_v41, %v3541_v49  ;;  %v3597_v21 = vadd.f32 %v3590_v45, %v3589_v29  ;;  %v3889_v8 = vld [vmem:[#allocation11 + $0x40] sm:$0xff]  ;;  %v3895_v29 = vld [vmem:[#allocation11 + $0x70] sm:$0xff] }
 0x5b4   : > { %v10151_v27 = vadd.f32 %v8571_v63, %v9896_v30  ;;  %v8247_v49 = vpack.c.bf16 %v3890_v34, %v3889_v8  ;;  %v3892_v63 = vld [vmem:[#allocation11 + $0x58] sm:$0xff] }
 0x5b5   : > { %v10143_v44 = vadd.f32 %v8572_v4, %v9898_v32  ;;  %v3578_v3 = vadd.f32 %v3577_v19, %v10139_v56  ;;  %v7048_v9 = vpop.f32.mrb[18].mxu1  ;;  %v3591_v32 = vmul.f32 %v10136_v33, %v10136_v33  ;;  %v3891_v19 = vld [vmem:[#allocation11 + $0x50] sm:$0xff] }
 0x5b6   : > { %v3551_v10 = vpop.f32.mrb[19].mxu1  ;;  %v8573_v14 = vadd.f32 %v7048_v9, %v5429_v41  ;;  %v8251_v4 = vpack.c.bf16 %v3892_v63, %v3891_v19  ;;  %v3894_v9 = vld [vmem:[#allocation11 + $0x68] sm:$0xff] }
 0x5b7   : > { %v3579_v22 = vadd.f32 %v3578_v3, %v10143_v44  ;;  %v8574_v31 = vadd.f32 %v5429_v41, %v3551_v10  ;;  %v3598_v30 = vadd.f32 %v3597_v21, %v3591_v32  ;;  %v3593_v40 = vmul.f32 %v10143_v44, %v10143_v44  ;;  %v3893_v3 = vld [vmem:[#allocation11 + $0x60] sm:$0xff]  ;;  %v3896_v10 = vld [vmem:[#allocation11 + $0x78] sm:$0xff]  ;;  %v4020_v32 = vld [vmem:[#allocation11 + $0x88] sm:$0xff] }
 0x5b8   : > { %v10161_v11 = vadd.f32 %v8573_v14, %v9906_v37  ;;  %v3594_v37 = vmul.f32 %v10151_v27, %v10151_v27  ;;  %v8255_v45 = vpack.c.bf16 %v3894_v9, %v3893_v3  ;;  %v8259_v14 = vpack.c.bf16 %v3896_v10, %v3895_v29 }
 0x5b9   : > { %v10157_v13 = vadd.f32 %v8574_v31, %v9910_v39  ;;  %v3580_v51 = vadd.f32 %v3579_v22, %v10151_v27  ;;  %v3599_v39 = vadd.f32 %v3598_v30, %v3592_v42  ;;  %v3873_v22 = vld [vmem:[#allocation2 + $0x7] sm:$0xff]  ;;  %v4019_v31 = vld [vmem:[#allocation11 + $0x80] sm:$0xff] }
 0x5ba   : > { %v3596_v60 = vmul.f32 %v10161_v11, %v10161_v11 }
 0x5bb   : > { %v3581_v54 = vadd.f32 %v3580_v51, %v10157_v13  ;;  %v3600_v26 = vadd.f32 %v3599_v39, %v3593_v40  ;;  %v3595_v12 = vmul.f32 %v10157_v13, %v10157_v13  ;;  %v10192_v51 = vpack.c.bf16 %v4020_v32, %v4019_v31 }
 0x5bd   : > { %v3582_v24 = vadd.f32 %v3581_v54, %v10161_v11  ;;  %v3601_v16 = vadd.f32 %v3600_v26, %v3594_v37 }
 0x5bf   : > { %v3583_v18 = vrot.slane %v3582_v24, 4  ;;  %v3602_v20 = vadd.f32 %v3601_v16, %v3595_v12 }
 0x5c1   : > { %v3584_v2 = vadd.f32 %v3583_v18, %v3582_v24  ;;  %v3603_v28 = vadd.f32 %v3602_v20, %v3596_v60 }
 0x5c3   : > { %v3585_v0 = vrot.slane %v3584_v2, 2  ;;  %v3604_v41 = vrot.slane %v3603_v28, 4 }
 0x5c5   : > { %v3586_v6 = vadd.f32 %v3585_v0, %v3584_v2  ;;  %v3771_v2 = vld [vmem:[%s10459_s26] sm:$0x1] }
 0x5c7   : > { %v3587_v7 = vrot.slane %v3586_v6, 1 }
 0x5c9   : > { %v3588_v23 = vadd.f32 %v3587_v7, %v3586_v6  ;;  %v3773_v6 = vld [vmem:[%s10460_s17] sm:$0x1]  ;;  %s10463_s17 = sld [smem:[#allocation28_spill]] }
 0x5cb   : > { %7082 = vmatmul.mubr.f32.vlgmr.msra.gmra.mrb[8].mxu0 %v3588_v23 }
 0x5cc   : > { %8209 = vmatpush3.bf16.msra.mxu0 %v10092_v62  ;;  %7116 = vmatprep.mubr.msk.f32.mxu0 %vm9260_vm0, %v10082_v57  ;;  %v3605_v62 = vadd.f32 %v3604_v41, %v3603_v28 }
 0x5cd   : > { %8210 = vmatprep.subr.bf16.mxu0 %v9259_v43 }
 0x5ce   : > { %v3606_v35 = vrot.slane %v3605_v62, 2 }
 0x5cf   : > { %s10361_s28 = scalar_lea.hbm %s10463_s17, %s5446_s13 }
 0x5d0   : > { %8212 = vmatpush3.bf16.msra.mxu0 %v10096_v46  ;;  %v3607_v46 = vadd.f32 %v3606_v35, %v3605_v62 }
 0x5d1   : > { %8213 = vmatprep.subr.bf16.mxu0 %v9259_v43 }
 0x5d4   : > { %8215 = vmatpush3.bf16.msra.mxu0 %v10100_v58  ;;  %v3608_v58 = vrot.slane %v3607_v46, 1 }
 0x5d5   : > { %8216 = vmatprep.subr.bf16.mxu0 %v9259_v43 }
 0x5d8   : > { %8218 = vmatpush3.bf16.msra.mxu0 %v10104_v5  ;;  %v3609_v5 = vadd.f32 %v3608_v58, %v3607_v46 }
 0x5d9   : > { %8219 = vmatprep.subr.bf16.mxu0 %v9259_v43 }
 0x5dc   : > { %8221 = vmatpush3.bf16.msra.mxu0 %v10108_v25  ;;  %v8231_v25 = vpack.c.bf16 %v3882_v38, %v3881_v52 }
 0x5dd   : > { %8222 = vmatprep.subr.bf16.mxu0 %v9259_v43 }
 0x5e0   : > { %8224 = vmatpush3.bf16.msra.mxu0 %v10112_v15  ;;  %v8235_v15 = vpack.c.bf16 %v3884_v53, %v3883_v1 }
 0x5e1   : > { %8225 = vmatprep.subr.bf16.mxu0 %v9259_v43 }
 0x5e4   : > { %8227 = vmatpush3.bf16.msra.mxu0 %v10116_v36  ;;  %v8239_v36 = vpack.c.bf16 %v3886_v59, %v3885_v55 }
 0x5e5   : > { %8228 = vmatprep.subr.bf16.mxu0 %v9259_v43  ;;  %v3887_v43 = vld [vmem:[#allocation11 + $0x30] sm:$0xff] }
 0x5e8   : > { %8230 = vmatpush3.bf16.msra.mxu0 %v10119_v17  ;;  %v8243_v17 = vpack.c.bf16 %v3888_v61, %v3887_v43 }
 0x5e9   : > { %8232 = vmatprep.subr.bf16.mxu0 %v8231_v25 }
 0x5eb   : > { %7117 = vmatmul.mubr.f32.vlgmr.msra.gmra.mrb[10].mxu0 %v3609_v5 }
 0x5ec   : > { %8234 = vmatpush3.bf16.msra.mxu0 %v8231_v25  ;;  %7151 = vmatprep.mubr.f32.mxu0 %v3873_v22 }
 0x5ed   : > { %8236 = vmatprep.subr.bf16.mxu0 %v8235_v15 }
 0x5f0   : > { %8238 = vmatpush3.bf16.msra.mxu0 %v8235_v15 }
 0x5f1   : > { %8240 = vmatprep.subr.bf16.mxu0 %v8239_v36 }
 0x5f4   : > { %8242 = vmatpush3.bf16.msra.mxu0 %v8239_v36 }
 0x5f5   : > { %8244 = vmatprep.subr.bf16.mxu0 %v8243_v17 }
 0x5f8   : > { %8246 = vmatpush3.bf16.msra.mxu0 %v8243_v17 }
 0x5f9   : > { %8248 = vmatprep.subr.bf16.mxu0 %v8247_v49 }
 0x5fc   : > { %8250 = vmatpush3.bf16.msra.mxu0 %v8247_v49 }
 0x5fd   : > { %8252 = vmatprep.subr.bf16.mxu0 %v8251_v4 }
 0x600   : > { %8254 = vmatpush3.bf16.msra.mxu0 %v8251_v4 }
 0x601   : > { %8256 = vmatprep.subr.bf16.mxu0 %v8255_v45 }
 0x604   : > { %8258 = vmatpush3.bf16.msra.mxu0 %v8255_v45 }
 0x605   : > { %8260 = vmatprep.subr.bf16.mxu0 %v8259_v14 }
 0x608   : > { %8262 = vmatpush3.bf16.msra.mxu0 %v8259_v14 }
 0x609   : > { %8264 = vmatprep.subr.bf16.mxu0 %v10192_v51 }
 0x69e   : > { %v3692_v21 = vpop.f32.mrb[8].mxu0 }
 0x69f   : > { %v7083_v54 = vpop.f32.mrb[9].mxu0  ;;  %v3766_v30 = vmul.f32 %v3692_v21, %v3692_v21 }
 0x6be   : > { %v3762_v24 = vpop.f32.mrb[10].mxu0 }
 0x6bf   : > { %v3767_v42 = vsub.f32 %v3762_v24, %v3766_v30  ;;  %v7118_v18 = vpop.f32.mrb[11].mxu0 }
 0x6c1   : > { %v3768_v40 = vmax.f32 %v3767_v42, 0.0 }
 0x6c3   : > { %v3769_v39 = vadd.f32 1e-05, %v3768_v40 }
 0x6c5   : > { %8955 = vrsqrt.f32 %v3769_v39  ;;  %v4021_v39 = vld [vmem:[#allocation11 + $0x90] sm:$0xff] }
 0x6cf   : > { %v8956_v0 = vpop.eup %8955 }
 0x6d0   : > { %v3772_v26 = vmul.f32 %v8956_v0, %v3771_v2  ;;  %v4022_v2 = vld [vmem:[#allocation11 + $0x98] sm:$0xff] }
 0x6d2   : > { %v3774_v37 = vmul.f32 %v3772_v26, %v3692_v21  ;;  %v3779_v7 = vrot.slane %v3772_v26, %v9701_v50 }
 0x6d4   : > { %v3775_v12 = vsub.f32 %v3773_v6, %v3774_v37  ;;  %v3780_v16 = vmul.f32 %v3779_v7, %v10131_v48  ;;  %v3781_v23 = vmul.f32 %v3779_v7, %v10128_v47  ;;  %v3782_v20 = vmul.f32 %v3779_v7, %v10136_v33 }
 0x6d5   : > { %v3783_v60 = vmul.f32 %v3779_v7, %v10139_v56  ;;  %v3784_v41 = vmul.f32 %v3779_v7, %v10143_v44  ;;  %v3785_v62 = vmul.f32 %v3779_v7, %v10151_v27  ;;  %v3786_v35 = vmul.f32 %v3779_v7, %v10157_v13 }
 0x6d6   : > { %v3792_v28 = vrot.slane %v3775_v12, %v9701_v50  ;;  %v3787_v46 = vmul.f32 %v3779_v7, %v10161_v11  ;;  %v8267_v37 = vpack.c.bf16 %v4022_v2, %v4021_v39  ;;  %v4023_v12 = vld [vmem:[#allocation11 + $0xa0] sm:$0xff]  ;;  %v4297_v2 = vld [vmem:[#allocation11 + $0x190] sm:$0xff] }
 0x6d8   : > { %v3794_v58 = vadd.f32 %v3792_v28, %v3780_v16  ;;  %v3795_v5 = vadd.f32 %v3792_v28, %v3781_v23  ;;  %v3796_v52 = vadd.f32 %v3792_v28, %v3782_v20  ;;  %v3797_v48 = vadd.f32 %v3792_v28, %v3783_v60  ;;  %v4024_v16 = vld [vmem:[#allocation11 + $0xa8] sm:$0xff] }
 0x6d9   : > { %v3798_v38 = vadd.f32 %v3792_v28, %v3784_v41  ;;  %v3799_v47 = vadd.f32 %v3792_v28, %v3785_v62  ;;  %v3800_v25 = vadd.f32 %v3792_v28, %v3786_v35  ;;  %v10211_v33 = vadd.f32 %v3792_v28, %v3787_v46  ;;  %v4025_v28 = vld [vmem:[#allocation11 + $0xb0] sm:$0xff]  ;;  %v4026_v41 = vld [vmem:[#allocation11 + $0xb8] sm:$0xff] }
 0x6da   : > { %v5430_v56 = vmul.f32 -1.442695, %v3794_v58  ;;  %v5431_v1 = vmul.f32 -1.442695, %v3795_v5  ;;  %v5432_v50 = vmul.f32 -1.442695, %v3796_v52  ;;  %v8271_v20 = vpack.c.bf16 %v4024_v16, %v4023_v12 }
 0x6db   : > { %v5433_v53 = vmul.f32 -1.442695, %v3797_v48  ;;  %v5434_v44 = vmul.f32 -1.442695, %v3798_v38  ;;  %v5435_v27 = vmul.f32 -1.442695, %v3799_v47  ;;  %v8275_v35 = vpack.c.bf16 %v4026_v41, %v4025_v28 }
 0x6dc   : > { %8957 = vpow2.f32 %v5430_v56  ;;  %v5436_v13 = vmul.f32 -1.442695, %v3800_v25  ;;  %v5437_v11 = vmul.f32 -1.442695, %v10211_v33  ;;  %v4032_v56 = vld [vmem:[#allocation11 + $0xe8] sm:$0xff]  ;;  %v4299_v16 = vld [vmem:[#allocation11 + $0x1a0] sm:$0xff] }
 0x6dd   : > { %8959 = vpow2.f32 %v5431_v1 }
 0x6de   : > { %8961 = vpow2.f32 %v5432_v50  ;;  %v4033_v50 = vld [vmem:[#allocation11 + $0xf0] sm:$0xff] }
 0x6df   : > { %8963 = vpow2.f32 %v5433_v53  ;;  %v4034_v53 = vld [vmem:[#allocation11 + $0xf8] sm:$0xff] }
 0x6e0   : > { %8965 = vpow2.f32 %v5434_v44  ;;  %v8291_v44 = vpack.c.bf16 %v4034_v53, %v4033_v50  ;;  %v4305_v53 = vld [vmem:[#allocation11 + $0x1d0] sm:$0xff] }
 0x6e1   : > { %8967 = vpow2.f32 %v5435_v27  ;;  %v4157_v27 = vld [vmem:[#allocation11 + $0x100] sm:$0xff] }
 0x6e2   : > { %8969 = vpow2.f32 %v5436_v13  ;;  %v4158_v13 = vld [vmem:[#allocation11 + $0x108] sm:$0xff] }
 0x6e3   : > { %8971 = vpow2.f32 %v5437_v11  ;;  %v8295_v11 = vpack.c.bf16 %v4158_v13, %v4157_v27  ;;  %v4307_v13 = vld [vmem:[#allocation11 + $0x1e0] sm:$0xff] }
 0x6e6   : > { %v8958_v15 = vpop.eup %8957 }
 0x6e7   : > { %v8960_v55 = vpop.eup %8959  ;;  %v3826_v59 = vadd.f32 1.0, %v8958_v15  ;;  %v4159_v15 = vld [vmem:[#allocation11 + $0x110] sm:$0xff] }
 0x6e8   : > { %v8962_v36 = vpop.eup %8961  ;;  %v3827_v43 = vadd.f32 1.0, %v8960_v55  ;;  %v4160_v55 = vld [vmem:[#allocation11 + $0x118] sm:$0xff] }
 0x6e9   : > { %v8964_v61 = vpop.eup %8963  ;;  %v3828_v17 = vadd.f32 1.0, %v8962_v36  ;;  %8973 = vrcp.f32 %v3826_v59  ;;  %v4161_v59 = vld [vmem:[#allocation11 + $0x120] sm:$0xff]  ;;  %v4162_v36 = vld [vmem:[#allocation11 + $0x128] sm:$0xff] }
 0x6ea   : > { %v8966_v8 = vpop.eup %8965  ;;  %v3829_v34 = vadd.f32 1.0, %v8964_v61  ;;  %8975 = vrcp.f32 %v3827_v43  ;;  %v8303_v43 = vpack.c.bf16 %v4162_v36, %v4161_v59  ;;  %v4163_v61 = vld [vmem:[#allocation11 + $0x130] sm:$0xff]  ;;  %v4433_v36 = vld [vmem:[#allocation11 + $0x200] sm:$0xff] }
 0x6eb   : > { %v8968_v49 = vpop.eup %8967  ;;  %v3830_v19 = vadd.f32 1.0, %v8966_v8  ;;  %8977 = vrcp.f32 %v3828_v17  ;;  %v4164_v17 = vld [vmem:[#allocation11 + $0x138] sm:$0xff] }
 0x6ec   : > { %v8970_v63 = vpop.eup %8969  ;;  %v3831_v4 = vadd.f32 1.0, %v8968_v49  ;;  %8979 = vrcp.f32 %v3829_v34  ;;  %v8307_v8 = vpack.c.bf16 %v4164_v17, %v4163_v61  ;;  %v4165_v34 = vld [vmem:[#allocation11 + $0x140] sm:$0xff]  ;;  %v4166_v49 = vld [vmem:[#allocation11 + $0x148] sm:$0xff]  ;;  %v4435_v17 = vld [vmem:[#allocation11 + $0x210] sm:$0xff] }
 0x6ed   : > { %v8972_v3 = vpop.eup %8971  ;;  %v3832_v9 = vadd.f32 1.0, %v8970_v63  ;;  %8981 = vrcp.f32 %v3830_v19  ;;  %v8311_v19 = vpack.c.bf16 %v4166_v49, %v4165_v34  ;;  %v4148_v63 = vld [vmem:[#allocation2 + $0x9] sm:$0xff]  ;;  %v4438_v49 = vld [vmem:[#allocation11 + $0x228] sm:$0xff] }
 0x6ee   : > { %v3833_v45 = vadd.f32 1.0, %v8972_v3  ;;  %8983 = vrcp.f32 %v3831_v4  ;;  %v4167_v4 = vld [vmem:[#allocation11 + $0x150] sm:$0xff]  ;;  %v4168_v3 = vld [vmem:[#allocation11 + $0x158] sm:$0xff]  ;;  %v4437_v34 = vld [vmem:[#allocation11 + $0x220] sm:$0xff] }
 0x6ef   : > { %8985 = vrcp.f32 %v3832_v9  ;;  %v8315_v9 = vpack.c.bf16 %v4168_v3, %v4167_v4  ;;  %v4440_v4 = vld [vmem:[#allocation11 + $0x238] sm:$0xff] }
 0x6f0   : > { %8987 = vrcp.f32 %v3833_v45  ;;  %v4169_v45 = vld [vmem:[#allocation11 + $0x160] sm:$0xff] }
 0x6f3   : > { %v8974_v29 = vpop.eup %8973 }
 0x6f4   : > { %v8976_v10 = vpop.eup %8975  ;;  %v10214_v22 = vmul.f32 %v8974_v29, %v3794_v58  ;;  %v4028_v58 = vld [vmem:[#allocation11 + $0xc8] sm:$0xff] }
 0x6f5   : > { %v8978_v14 = vpop.eup %8977  ;;  %v10216_v31 = vmul.f32 %v8976_v10, %v3795_v5  ;;  %v4170_v29 = vld [vmem:[#allocation11 + $0x168] sm:$0xff] }
 0x6f6   : > { %v8980_v32 = vpop.eup %8979  ;;  %v10218_v21 = vmul.f32 %v8978_v14, %v3796_v52  ;;  %3858 = vst [vmem:[#allocation2 + $0x20] sm:$0xff] %v10214_v22  ;;  %v8319_v10 = vpack.c.bf16 %v4170_v29, %v4169_v45  ;;  %v4171_v14 = vld [vmem:[#allocation11 + $0x170] sm:$0xff]  ;;  %v4442_v45 = vld [vmem:[#allocation11 + $0x248] sm:$0xff] }
 0x6f7   : > { %v8982_v54 = vpop.eup %8981  ;;  %v10221_v30 = vmul.f32 %v8980_v32, %v3797_v48  ;;  %3859 = vst [vmem:[#allocation2 + $0x38] sm:$0xff] %v10216_v31  ;;  %v4172_v32 = vld [vmem:[#allocation11 + $0x178] sm:$0xff] }
 0x6f8   : > { %v8984_v24 = vpop.eup %8983  ;;  %v10224_v42 = vmul.f32 %v8982_v54, %v3798_v38  ;;  %3860 = vst [vmem:[#allocation2 + $0x50] sm:$0xff] %v10218_v21  ;;  %v4029_v38 = vld [vmem:[#allocation11 + $0xd0] sm:$0xff]  ;;  %v8323_v54 = vpack.c.bf16 %v4172_v32, %v4171_v14  ;;  %v4444_v32 = vld [vmem:[#allocation11 + $0x258] sm:$0xff] }
 0x6f9   : > { %v8986_v18 = vpop.eup %8985  ;;  %v10227_v40 = vmul.f32 %v8984_v24, %v3799_v47  ;;  %3861 = vst [vmem:[#allocation2 + $0x68] sm:$0xff] %v10221_v30  ;;  %v4030_v47 = vld [vmem:[#allocation11 + $0xd8] sm:$0xff]  ;;  %v4295_v24 = vld [vmem:[#allocation11 + $0x180] sm:$0xff]  ;;  %v4443_v14 = vld [vmem:[#allocation11 + $0x250] sm:$0xff] }
 0x6fa   : > { %v8988_v0 = vpop.eup %8987  ;;  %v10230_v26 = vmul.f32 %v8986_v18, %v3800_v25  ;;  %3862 = vst [vmem:[#allocation2 + $0x80] sm:$0xff] %v10224_v42  ;;  %v8283_v25 = vpack.c.bf16 %v4030_v47, %v4029_v38  ;;  %v4296_v18 = vld [vmem:[#allocation11 + $0x188] sm:$0xff] }
 0x6fb   : > { %v10234_v6 = vmul.f32 %v8988_v0, %v10211_v33  ;;  %3863 = vst [vmem:[#allocation2 + $0x98] sm:$0xff] %v10227_v40  ;;  %v4031_v33 = vld [vmem:[#allocation11 + $0xe0] sm:$0xff]  ;;  %v8327_v39 = vpack.c.bf16 %v4296_v18, %v4295_v24  ;;  %v4298_v0 = vld [vmem:[#allocation11 + $0x198] sm:$0xff]  ;;  %v4446_v18 = vld [vmem:[#allocation11 + $0x268] sm:$0xff] }
 0x6fc   : > { %3864 = vst [vmem:[#allocation2 + $0xb0] sm:$0xff] %v10230_v26  ;;  %v8287_v1 = vpack.c.bf16 %v4032_v56, %v4031_v33  ;;  %v4304_v33 = vld [vmem:[#allocation11 + $0x1c8] sm:$0xff]  ;;  %v4445_v24 = vld [vmem:[#allocation11 + $0x260] sm:$0xff] }
 0x6fd   : > { %3865 = vst [vmem:[#allocation2 + $0xc8] sm:$0xff] %v10234_v6  ;;  %v10239_v7 = vld [vmem:[#allocation2 + $0x1f] sm:$0xff] }
 0x6fe   : > { %7152 = vmatmul.mubr.f32.vlgmr.msra.gmra.mrb[12].mxu0 %v10239_v7  ;;  %v10242_v23 = vld [vmem:[#allocation2 + $0x37] sm:$0xff]  ;;  %v10269_v12 = vld [vmem:[#allocation2 + $0x21] sm:$0xff] }
 0x6ff   : > { %8266 = vmatpush3.bf16.msra.mxu0 %v10192_v51  ;;  %7154 = vmatprep.mubr.f32.mxu0 %v10242_v23  ;;  %v10246_v60 = vld [vmem:[#allocation2 + $0x4f] sm:$0xff]  ;;  %v10272_v28 = vld [vmem:[#allocation2 + $0x39] sm:$0xff] }
 0x700   : > { %8268 = vmatprep.subr.bf16.mxu0 %v8267_v37  ;;  %v10249_v62 = vld [vmem:[#allocation2 + $0x67] sm:$0xff]  ;;  %v4027_v51 = vld [vmem:[#allocation11 + $0xc0] sm:$0xff] }
 0x701   : > { %v10252_v46 = vld [vmem:[#allocation2 + $0x7f] sm:$0xff]  ;;  %v8279_v52 = vpack.c.bf16 %v4028_v58, %v4027_v51  ;;  %v4302_v58 = vld [vmem:[#allocation11 + $0x1b8] sm:$0xff] }
 0x702   : > { %7155 = vmatmul.mubr.f32.gmra.mrb[14].mxu0 %v10246_v60  ;;  %v10255_v5 = vld [vmem:[#allocation2 + $0x97] sm:$0xff]  ;;  %v4301_v51 = vld [vmem:[#allocation11 + $0x1b0] sm:$0xff] }
 0x703   : > { %8270 = vmatpush3.bf16.msra.mxu0 %v8267_v37  ;;  %7157 = vmatprep.mubr.f32.mxu0 %v10249_v62  ;;  %v10258_v48 = vld [vmem:[#allocation2 + $0xaf] sm:$0xff]  ;;  %v8331_v37 = vpack.c.bf16 %v4298_v0, %v4297_v2  ;;  %v8339_v38 = vpack.c.bf16 %v4302_v58, %v4301_v51  ;;  %v10281_v47 = vld [vmem:[#allocation2 + $0x81] sm:$0xff]  ;;  %v10284_v56 = vld [vmem:[#allocation2 + $0x99] sm:$0xff] }
 0x704   : > { %8272 = vmatprep.subr.bf16.mxu0 %v8271_v20  ;;  %v10287_v50 = vld [vmem:[#allocation2 + $0xb1] sm:$0xff]  ;;  %v4447_v2 = vld [vmem:[#allocation11 + $0x270] sm:$0xff]  ;;  %v4448_v0 = vld [vmem:[#allocation11 + $0x278] sm:$0xff] }
 0x705   : > { %v4573_v51 = vld [vmem:[#allocation11 + $0x290] sm:$0xff]  ;;  %v4574_v58 = vld [vmem:[#allocation11 + $0x298] sm:$0xff] }
 0x706   : > { %7158 = vmatmul.mubr.f32.gmra.mrb[16].mxu0 %v10252_v46 }
 0x707   : > { %8274 = vmatpush3.bf16.msra.mxu0 %v8271_v20  ;;  %7160 = vmatprep.mubr.f32.mxu0 %v10255_v5  ;;  %v4300_v20 = vld [vmem:[#allocation11 + $0x1a8] sm:$0xff] }
 0x708   : > { %8276 = vmatprep.subr.bf16.mxu0 %v8275_v35  ;;  %v8335_v41 = vpack.c.bf16 %v4300_v20, %v4299_v16  ;;  %v4571_v16 = vld [vmem:[#allocation11 + $0x280] sm:$0xff]  ;;  %v4572_v20 = vld [vmem:[#allocation11 + $0x288] sm:$0xff] }
 0x70a   : > { %7161 = vmatmul.mubr.f32.gmra.mrb[18].mxu0 %v10258_v48 }
 0x70b   : > { %8278 = vmatpush3.bf16.msra.mxu0 %v8275_v35  ;;  %7195 = vmatprep.mubr.f32.mxu0 %v10082_v57  ;;  %v8299_v57 = vpack.c.bf16 %v4160_v55, %v4159_v15  ;;  %v10275_v35 = vld [vmem:[#allocation2 + $0x51] sm:$0xff]  ;;  %v4309_v55 = vld [vmem:[#allocation11 + $0x1f0] sm:$0xff] }
 0x70c   : > { %8280 = vmatprep.subr.bf16.mxu0 %v8279_v52 }
 0x70f   : > { %8282 = vmatpush3.bf16.msra.mxu0 %v8279_v52  ;;  %v10278_v52 = vld [vmem:[#allocation2 + $0x69] sm:$0xff] }
 0x710   : > { %8284 = vmatprep.subr.bf16.mxu0 %v8283_v25 }
 0x713   : > { %8286 = vmatpush3.bf16.msra.mxu0 %v8283_v25  ;;  %v4303_v25 = vld [vmem:[#allocation11 + $0x1c0] sm:$0xff] }
 0x714   : > { %8288 = vmatprep.subr.bf16.mxu0 %v8287_v1 }
 0x717   : > { %8290 = vmatpush3.bf16.msra.mxu0 %v8287_v1  ;;  %v8343_v1 = vpack.c.bf16 %v4304_v33, %v4303_v25  ;;  %v4576_v25 = vld [vmem:[#allocation11 + $0x2a8] sm:$0xff] }
 0x718   : > { %8292 = vmatprep.subr.bf16.mxu0 %v8291_v44 }
 0x71b   : > { %8294 = vmatpush3.bf16.msra.mxu0 %v8291_v44  ;;  %v4306_v44 = vld [vmem:[#allocation11 + $0x1d8] sm:$0xff] }
 0x71c   : > { %8296 = vmatprep.subr.bf16.mxu0 %v8295_v11  ;;  %v8347_v27 = vpack.c.bf16 %v4306_v44, %v4305_v53  ;;  %v4578_v53 = vld [vmem:[#allocation11 + $0x2b8] sm:$0xff] }
 0x71e   : > { %7196 = vmatmul.mubr.f32.vlgmr.msra.gmra.mrb[12].mxu0 %v10214_v22 }
 0x71f   : > { %7198 = vmatprep.mubr.f32.mxu0 %v10216_v31  ;;  %8298 = vmatpush3.bf16.msra.mxu0 %v8295_v11  ;;  %v4308_v11 = vld [vmem:[#allocation11 + $0x1e8] sm:$0xff] }
 0x720   : > { %8300 = vmatprep.subr.bf16.mxu0 %v8299_v57  ;;  %v8351_v15 = vpack.c.bf16 %v4308_v11, %v4307_v13  ;;  %v4580_v13 = vld [vmem:[#allocation11 + $0x2c8] sm:$0xff] }
 0x722   : > { %7199 = vmatmul.mubr.f32.gmra.mrb[14].mxu0 %v10218_v21 }
 0x723   : > { %7201 = vmatprep.mubr.f32.mxu0 %v10221_v30  ;;  %8302 = vmatpush3.bf16.msra.mxu0 %v8299_v57  ;;  %v4310_v57 = vld [vmem:[#allocation11 + $0x1f8] sm:$0xff] }
 0x724   : > { %8304 = vmatprep.subr.bf16.mxu0 %v8303_v43  ;;  %v8355_v59 = vpack.c.bf16 %v4310_v57, %v4309_v55  ;;  %v4582_v55 = vld [vmem:[#allocation11 + $0x2d8] sm:$0xff] }
 0x726   : > { %7202 = vmatmul.mubr.f32.gmra.mrb[16].mxu0 %v10224_v42 }
 0x727   : > { %7204 = vmatprep.mubr.f32.mxu0 %v10227_v40  ;;  %8306 = vmatpush3.bf16.msra.mxu0 %v8303_v43  ;;  %v4434_v43 = vld [vmem:[#allocation11 + $0x208] sm:$0xff] }
 0x728   : > { %8308 = vmatprep.subr.bf16.mxu0 %v8307_v8  ;;  %v8359_v61 = vpack.c.bf16 %v4434_v43, %v4433_v36  ;;  %v4584_v36 = vld [vmem:[#allocation11 + $0x2e8] sm:$0xff] }
 0x72a   : > { %7205 = vmatmul.mubr.f32.gmra.mrb[18].mxu0 %v10230_v26 }
 0x72b   : > { %8310 = vmatpush3.bf16.msra.mxu0 %v8307_v8  ;;  %7239 = vmatprep.mubr.f32.mxu0 %v4148_v63  ;;  %v4436_v8 = vld [vmem:[#allocation11 + $0x218] sm:$0xff]  ;;  %v4439_v63 = vld [vmem:[#allocation11 + $0x230] sm:$0xff] }
 0x72c   : > { %8312 = vmatprep.subr.bf16.mxu0 %v8311_v19  ;;  %v8371_v3 = vpack.c.bf16 %v4440_v4, %v4439_v63  ;;  %v4712_v63 = vld [vmem:[#allocation11 + $0x318] sm:$0xff]  ;;  %v4713_v4 = vld [vmem:[#allocation11 + $0x320] sm:$0xff] }
 0x72f   : > { %8314 = vmatpush3.bf16.msra.mxu0 %v8311_v19  ;;  %v8367_v19 = vpack.c.bf16 %v4438_v49, %v4437_v34  ;;  %v4710_v34 = vld [vmem:[#allocation11 + $0x308] sm:$0xff] }
 0x730   : > { %8316 = vmatprep.subr.bf16.mxu0 %v8315_v9 }
 0x733   : > { %8318 = vmatpush3.bf16.msra.mxu0 %v8315_v9  ;;  %v4441_v9 = vld [vmem:[#allocation11 + $0x240] sm:$0xff] }
 0x734   : > { %8320 = vmatprep.subr.bf16.mxu0 %v8319_v10  ;;  %v8375_v29 = vpack.c.bf16 %v4442_v45, %v4441_v9  ;;  %v4715_v45 = vld [vmem:[#allocation11 + $0x330] sm:$0xff] }
 0x737   : > { %8322 = vmatpush3.bf16.msra.mxu0 %v8319_v10  ;;  %v10297_v10 = vld [vmem:[#allocation2 + $0xc7] sm:$0xff] }
 0x738   : > { %8324 = vmatprep.subr.bf16.mxu0 %v8323_v54 }
 0x73b   : > { %8326 = vmatpush3.bf16.msra.mxu0 %v8323_v54  ;;  %v8379_v54 = vpack.c.bf16 %v4444_v32, %v4443_v14  ;;  %v4717_v32 = vld [vmem:[#allocation11 + $0x340] sm:$0xff] }
 0x73c   : > { %8328 = vmatprep.subr.bf16.mxu0 %v8327_v39 }
 0x73e   : > { %7240 = vmatmul.mubr.f32.vlgmr.msra.gmra.mrb[12].mxu0 %v10269_v12 }
 0x73f   : > { %7242 = vmatprep.mubr.f32.mxu0 %v10272_v28  ;;  %8330 = vmatpush3.bf16.msra.mxu0 %v8327_v39  ;;  %v8383_v39 = vpack.c.bf16 %v4446_v18, %v4445_v24  ;;  %v10315_v18 = vld [vmem:[#allocation2 + $0xc9] sm:$0xff] }
 0x740   : > { %8332 = vmatprep.subr.bf16.mxu0 %v8331_v37 }
 0x742   : > { %7243 = vmatmul.mubr.f32.gmra.mrb[14].mxu0 %v10275_v35 }
 0x743   : > { %7245 = vmatprep.mubr.f32.mxu0 %v10278_v52  ;;  %8334 = vmatpush3.bf16.msra.mxu0 %v8331_v37  ;;  %v8387_v37 = vpack.c.bf16 %v4448_v0, %v4447_v2  ;;  %v4720_v2 = vld [vmem:[#allocation11 + $0x358] sm:$0xff] }
 0x744   : > { %8336 = vmatprep.subr.bf16.mxu0 %v8335_v41 }
 0x746   : > { %7246 = vmatmul.mubr.f32.gmra.mrb[16].mxu0 %v10281_v47 }
 0x747   : > { %7248 = vmatprep.mubr.f32.mxu0 %v10284_v56  ;;  %8338 = vmatpush3.bf16.msra.mxu0 %v8335_v41  ;;  %v8391_v41 = vpack.c.bf16 %v4572_v20, %v4571_v16  ;;  %v4722_v16 = vld [vmem:[#allocation11 + $0x368] sm:$0xff] }
 0x748   : > { %8340 = vmatprep.subr.bf16.mxu0 %v8339_v38 }
 0x74a   : > { %7249 = vmatmul.mubr.f32.gmra.mrb[18].mxu0 %v10287_v50 }
 0x74b   : > { %8342 = vmatpush3.bf16.msra.mxu0 %v8339_v38  ;;  %7283 = vmatprep.mubr.f32.mxu0 %v10239_v7  ;;  %v8363_v7 = vpack.c.bf16 %v4436_v8, %v4435_v17  ;;  %v4575_v38 = vld [vmem:[#allocation11 + $0x2a0] sm:$0xff]  ;;  %v4586_v17 = vld [vmem:[#allocation11 + $0x2f8] sm:$0xff] }
 0x74c   : > { %8344 = vmatprep.subr.bf16.mxu0 %v8343_v1  ;;  %v8399_v33 = vpack.c.bf16 %v4576_v25, %v4575_v38  ;;  %v4848_v38 = vld [vmem:[#allocation11 + $0x388] sm:$0xff] }
 0x74f   : > { %8346 = vmatpush3.bf16.msra.mxu0 %v8343_v1  ;;  %v4577_v1 = vld [vmem:[#allocation11 + $0x2b0] sm:$0xff] }
 0x750   : > { %8348 = vmatprep.subr.bf16.mxu0 %v8347_v27  ;;  %v8403_v44 = vpack.c.bf16 %v4578_v53, %v4577_v1  ;;  %v4850_v1 = vld [vmem:[#allocation11 + $0x398] sm:$0xff]  ;;  %v4851_v53 = vld [vmem:[#allocation11 + $0x3a0] sm:$0xff] }
 0x753   : > { %8350 = vmatpush3.bf16.msra.mxu0 %v8347_v27  ;;  %v4579_v27 = vld [vmem:[#allocation11 + $0x2c0] sm:$0xff] }
 0x754   : > { %8352 = vmatprep.subr.bf16.mxu0 %v8351_v15  ;;  %v8407_v11 = vpack.c.bf16 %v4580_v13, %v4579_v27  ;;  %v4853_v13 = vld [vmem:[#allocation11 + $0x3b0] sm:$0xff] }
 0x757   : > { %8354 = vmatpush3.bf16.msra.mxu0 %v8351_v15  ;;  %v4581_v15 = vld [vmem:[#allocation11 + $0x2d0] sm:$0xff] }
 0x758   : > { %8356 = vmatprep.subr.bf16.mxu0 %v8355_v59  ;;  %v8411_v57 = vpack.c.bf16 %v4582_v55, %v4581_v15  ;;  %v4855_v55 = vld [vmem:[#allocation11 + $0x3c0] sm:$0xff] }
 0x75b   : > { %8358 = vmatpush3.bf16.msra.mxu0 %v8355_v59  ;;  %v4583_v59 = vld [vmem:[#allocation11 + $0x2e0] sm:$0xff] }
 0x75c   : > { %8360 = vmatprep.subr.bf16.mxu0 %v8359_v61  ;;  %v8415_v43 = vpack.c.bf16 %v4584_v36, %v4583_v59  ;;  %v4857_v59 = vld [vmem:[#allocation11 + $0x3d0] sm:$0xff]  ;;  %v4858_v36 = vld [vmem:[#allocation11 + $0x3d8] sm:$0xff] }
 0x75e   : > { %7284 = vmatmul.mubr.f32.vlgmr.msra.gmra.mrb[12].mxu0 %v10242_v23 }
 0x75f   : > { %7286 = vmatprep.mubr.f32.mxu0 %v10246_v60  ;;  %8362 = vmatpush3.bf16.msra.mxu0 %v8359_v61  ;;  %v4585_v61 = vld [vmem:[#allocation11 + $0x2f0] sm:$0xff] }
 0x760   : > { %8364 = vmatprep.subr.bf16.mxu0 %v8363_v7  ;;  %v8419_v8 = vpack.c.bf16 %v4586_v17, %v4585_v61  ;;  %v4862_v17 = vld [vmem:[#allocation11 + $0x3f8] sm:$0xff] }
 0x762   : > { %7287 = vmatmul.mubr.f32.gmra.mrb[14].mxu0 %v10249_v62 }
 0x763   : > { %7289 = vmatprep.mubr.f32.mxu0 %v10252_v46  ;;  %8366 = vmatpush3.bf16.msra.mxu0 %v8363_v7  ;;  %v4709_v7 = vld [vmem:[#allocation11 + $0x300] sm:$0xff] }
 0x764   : > { %8368 = vmatprep.subr.bf16.mxu0 %v8367_v19  ;;  %v8423_v49 = vpack.c.bf16 %v4710_v34, %v4709_v7  ;;  %v4986_v7 = vld [vmem:[#allocation11 + $0x408] sm:$0xff] }
 0x766   : > { %7290 = vmatmul.mubr.f32.gmra.mrb[16].mxu0 %v10255_v5 }
 0x767   : > { %7292 = vmatprep.mubr.f32.mxu0 %v10258_v48  ;;  %8370 = vmatpush3.bf16.msra.mxu0 %v8367_v19  ;;  %v4711_v19 = vld [vmem:[#allocation11 + $0x310] sm:$0xff] }
 0x768   : > { %8372 = vmatprep.subr.bf16.mxu0 %v8371_v3 }
 0x76a   : > { %7293 = vmatmul.mubr.f32.gmra.mrb[18].mxu0 %v10297_v10 }
 0x76b   : > { %8374 = vmatpush3.bf16.msra.mxu0 %v8371_v3  ;;  %7327 = vmatprep.mubr.f32.mxu0 %v10214_v22  ;;  %v8395_v22 = vpack.c.bf16 %v4574_v58, %v4573_v51  ;;  %v4714_v3 = vld [vmem:[#allocation11 + $0x328] sm:$0xff]  ;;  %v4724_v51 = vld [vmem:[#allocation11 + $0x378] sm:$0xff] }
 0x76c   : > { %8376 = vmatprep.subr.bf16.mxu0 %v8375_v29  ;;  %v8431_v9 = vpack.c.bf16 %v4714_v3, %v4713_v4  ;;  %v4991_v3 = vld [vmem:[#allocation11 + $0x430] sm:$0xff] }
 0x76f   : > { %8378 = vmatpush3.bf16.msra.mxu0 %v8375_v29  ;;  %v4716_v29 = vld [vmem:[#allocation11 + $0x338] sm:$0xff] }
 0x770   : > { %8380 = vmatprep.subr.bf16.mxu0 %v8379_v54  ;;  %v8435_v14 = vpack.c.bf16 %v4716_v29, %v4715_v45  ;;  %v4993_v29 = vld [vmem:[#allocation11 + $0x440] sm:$0xff] }
 0x773   : > { %8382 = vmatpush3.bf16.msra.mxu0 %v8379_v54  ;;  %v4718_v54 = vld [vmem:[#allocation11 + $0x348] sm:$0xff] }
 0x774   : > { %8384 = vmatprep.subr.bf16.mxu0 %v8383_v39  ;;  %v8439_v24 = vpack.c.bf16 %v4718_v54, %v4717_v32  ;;  %v4996_v32 = vld [vmem:[#allocation11 + $0x458] sm:$0xff]  ;;  %v8991_v54 = vld [vmem:[#allocation2] sm:$0xff] }
 0x777   : > { %8386 = vmatpush3.bf16.msra.mxu0 %v8383_v39  ;;  %v4719_v39 = vld [vmem:[#allocation11 + $0x350] sm:$0xff] }
 0x778   : > { %8388 = vmatprep.subr.bf16.mxu0 %v8387_v37  ;;  %v8443_v0 = vpack.c.bf16 %v4720_v2, %v4719_v39  ;;  %v5000_v2 = vld [vmem:[#allocation11 + $0x478] sm:$0xff] }
 0x77b   : > { %8390 = vmatpush3.bf16.msra.mxu0 %v8387_v37  ;;  %v4721_v37 = vld [vmem:[#allocation11 + $0x360] sm:$0xff] }
 0x77c   : > { %8392 = vmatprep.subr.bf16.mxu0 %v8391_v41  ;;  %v8447_v20 = vpack.c.bf16 %v4722_v16, %v4721_v37  ;;  %v5115_v37 = vld [vmem:[#allocation12 + $0x8] sm:$0xff] }
 0x77e   : > { %7328 = vmatmul.mubr.f32.vlgmr.msra.gmra.mrb[12].mxu0 %v10216_v31 }
 0x77f   : > { %7330 = vmatprep.mubr.f32.mxu0 %v10218_v21  ;;  %8394 = vmatpush3.bf16.msra.mxu0 %v8391_v41  ;;  %v4723_v41 = vld [vmem:[#allocation11 + $0x370] sm:$0xff] }
 0x780   : > { %8396 = vmatprep.subr.bf16.mxu0 %v8395_v22  ;;  %v8451_v58 = vpack.c.bf16 %v4724_v51, %v4723_v41  ;;  %v5117_v41 = vld [vmem:[#allocation12 + $0x18] sm:$0xff]  ;;  %v5118_v51 = vld [vmem:[#allocation12 + $0x20] sm:$0xff] }
 0x782   : > { %7331 = vmatmul.mubr.f32.gmra.mrb[14].mxu0 %v10221_v30 }
 0x783   : > { %7333 = vmatprep.mubr.f32.mxu0 %v10224_v42  ;;  %8398 = vmatpush3.bf16.msra.mxu0 %v8395_v22  ;;  %v4847_v22 = vld [vmem:[#allocation11 + $0x380] sm:$0xff] }
 0x784   : > { %8400 = vmatprep.subr.bf16.mxu0 %v8399_v33  ;;  %v8455_v25 = vpack.c.bf16 %v4848_v38, %v4847_v22  ;;  %v5120_v38 = vld [vmem:[#allocation12 + $0x30] sm:$0xff] }
 0x786   : > { %7334 = vmatmul.mubr.f32.gmra.mrb[16].mxu0 %v10227_v40 }
 0x787   : > { %7336 = vmatprep.mubr.f32.mxu0 %v10230_v26  ;;  %8402 = vmatpush3.bf16.msra.mxu0 %v8399_v33  ;;  %v4849_v33 = vld [vmem:[#allocation11 + $0x390] sm:$0xff] }
 0x788   : > { %8404 = vmatprep.subr.bf16.mxu0 %v8403_v44 }
 0x78a   : > { %7337 = vmatmul.mubr.f32.gmra.mrb[18].mxu0 %v10234_v6 }
 0x78b   : > { %8406 = vmatpush3.bf16.msra.mxu0 %v8403_v44  ;;  %7371 = vmatprep.mubr.f32.mxu0 %v10269_v12  ;;  %v8427_v12 = vpack.c.bf16 %v4712_v63, %v4711_v19  ;;  %v4852_v44 = vld [vmem:[#allocation11 + $0x3a8] sm:$0xff]  ;;  %v4988_v19 = vld [vmem:[#allocation11 + $0x418] sm:$0xff]  ;;  %v4989_v63 = vld [vmem:[#allocation11 + $0x420] sm:$0xff] }
 0x78c   : > { %8408 = vmatprep.subr.bf16.mxu0 %v8407_v11  ;;  %v8463_v27 = vpack.c.bf16 %v4852_v44, %v4851_v53  ;;  %v5124_v53 = vld [vmem:[#allocation12 + $0x50] sm:$0xff]  ;;  %v5125_v44 = vld [vmem:[#allocation12 + $0x58] sm:$0xff] }
 0x78f   : > { %8410 = vmatpush3.bf16.msra.mxu0 %v8407_v11  ;;  %v4854_v11 = vld [vmem:[#allocation11 + $0x3b8] sm:$0xff] }
 0x790   : > { %8412 = vmatprep.subr.bf16.mxu0 %v8411_v57  ;;  %v8467_v15 = vpack.c.bf16 %v4854_v11, %v4853_v13  ;;  %v5127_v13 = vld [vmem:[#allocation12 + $0x68] sm:$0xff]  ;;  %v5129_v11 = vld [vmem:[#allocation12 + $0x78] sm:$0xff] }
 0x793   : > { %8414 = vmatpush3.bf16.msra.mxu0 %v8411_v57  ;;  %v4856_v57 = vld [vmem:[#allocation11 + $0x3c8] sm:$0xff] }
 0x794   : > { %8416 = vmatprep.subr.bf16.mxu0 %v8415_v43 }
 0x797   : > { %8418 = vmatpush3.bf16.msra.mxu0 %v8415_v43  ;;  %v4860_v43 = vld [vmem:[#allocation11 + $0x3e8] sm:$0xff] }
 0x798   : > { %8420 = vmatprep.subr.bf16.mxu0 %v8419_v8 }
 0x79b   : > { %8422 = vmatpush3.bf16.msra.mxu0 %v8419_v8  ;;  %v4985_v8 = vld [vmem:[#allocation11 + $0x400] sm:$0xff] }
 0x79c   : > { %8424 = vmatprep.subr.bf16.mxu0 %v8423_v49  ;;  %v8487_v34 = vpack.c.bf16 %v4986_v7, %v4985_v8 }
 0x79e   : > { %7372 = vmatmul.mubr.f32.vlgmr.msra.gmra.mrb[12].mxu0 %v10272_v28 }
 0x79f   : > { %7374 = vmatprep.mubr.f32.mxu0 %v10275_v35  ;;  %8426 = vmatpush3.bf16.msra.mxu0 %v8423_v49  ;;  %v4987_v49 = vld [vmem:[#allocation11 + $0x410] sm:$0xff] }
 0x7a0   : > { %8428 = vmatprep.subr.bf16.mxu0 %v8427_v12 }
 0x7a2   : > { %7375 = vmatmul.mubr.f32.gmra.mrb[14].mxu0 %v10278_v52 }
 0x7a3   : > { %7377 = vmatprep.mubr.f32.mxu0 %v10281_v47  ;;  %8430 = vmatpush3.bf16.msra.mxu0 %v8427_v12  ;;  %v4990_v12 = vld [vmem:[#allocation11 + $0x428] sm:$0xff] }
 0x7a4   : > { %8432 = vmatprep.subr.bf16.mxu0 %v8431_v9  ;;  %v8495_v4 = vpack.c.bf16 %v4990_v12, %v4989_v63 }
 0x7a6   : > { %7378 = vmatmul.mubr.f32.gmra.mrb[16].mxu0 %v10284_v56 }
 0x7a7   : > { %7380 = vmatprep.mubr.f32.mxu0 %v10287_v50  ;;  %8434 = vmatpush3.bf16.msra.mxu0 %v8431_v9  ;;  %v4992_v9 = vld [vmem:[#allocation11 + $0x438] sm:$0xff] }
 0x7a8   : > { %8436 = vmatprep.subr.bf16.mxu0 %v8435_v14  ;;  %v8499_v45 = vpack.c.bf16 %v4992_v9, %v4991_v3 }
 0x7aa   : > { %7381 = vmatmul.mubr.f32.gmra.mrb[18].mxu0 %v10315_v18 }
 0x7ab   : > { %8438 = vmatpush3.bf16.msra.mxu0 %v8435_v14  ;;  %7415 = vmatprep.mubr.f32.mxu0 %v10242_v23  ;;  %v8459_v23 = vpack.c.bf16 %v4850_v1, %v4849_v33  ;;  %v4994_v14 = vld [vmem:[#allocation11 + $0x448] sm:$0xff]  ;;  %v5122_v1 = vld [vmem:[#allocation12 + $0x40] sm:$0xff] }
 0x7ac   : > { %8440 = vmatprep.subr.bf16.mxu0 %v8439_v24 }
 0x7af   : > { %8442 = vmatpush3.bf16.msra.mxu0 %v8439_v24  ;;  %v4998_v24 = vld [vmem:[#allocation11 + $0x468] sm:$0xff] }
 0x7b0   : > { %8444 = vmatprep.subr.bf16.mxu0 %v8443_v0 }
 0x7b3   : > { %8446 = vmatpush3.bf16.msra.mxu0 %v8443_v0  ;;  %v5114_v0 = vld [vmem:[#allocation12] sm:$0xff] }
 0x7b4   : > { %8448 = vmatprep.subr.bf16.mxu0 %v8447_v20  ;;  %v8519_v16 = vpack.c.bf16 %v5115_v37, %v5114_v0 }
 0x7b7   : > { %8450 = vmatpush3.bf16.msra.mxu0 %v8447_v20  ;;  %v5116_v20 = vld [vmem:[#allocation12 + $0x10] sm:$0xff] }
 0x7b8   : > { %8452 = vmatprep.subr.bf16.mxu0 %v8451_v58 }
 0x7bb   : > { %8454 = vmatpush3.bf16.msra.mxu0 %v8451_v58  ;;  %v5119_v58 = vld [vmem:[#allocation12 + $0x28] sm:$0xff] }
 0x7bc   : > { %8456 = vmatprep.subr.bf16.mxu0 %v8455_v25  ;;  %v8527_v22 = vpack.c.bf16 %v5119_v58, %v5118_v51 }
 0x7be   : > { %7416 = vmatmul.mubr.f32.vlgmr.msra.gmra.mrb[12].mxu0 %v10246_v60  ;;  %v4707_v60 = vld [vmem:[#allocation2 + $0xdf] sm:$0xff] }
 0x7bf   : > { %7418 = vmatprep.mubr.f32.mxu0 %v10249_v62  ;;  %8458 = vmatpush3.bf16.msra.mxu0 %v8455_v25  ;;  %v8471_v62 = vpack.c.bf16 %v4856_v57, %v4855_v55  ;;  %v5121_v25 = vld [vmem:[#allocation12 + $0x38] sm:$0xff]  ;;  %v8993_v55 = vld [vmem:[%s9604_s0 + $0x8] sm:$0xff]  ;;  %v8994_v57 = vld [vmem:[%s9604_s0 + $0x10] sm:$0xff] }
 0x7c0   : > { %8460 = vmatprep.subr.bf16.mxu0 %v8459_v23  ;;  %v8531_v33 = vpack.c.bf16 %v5121_v25, %v5120_v38 }
 0x7c2   : > { %7419 = vmatmul.mubr.f32.gmra.mrb[14].mxu0 %v10252_v46  ;;  %v8475_v46 = vpack.c.bf16 %v4858_v36, %v4857_v59  ;;  %v8997_v59 = vld [vmem:[%s9604_s0 + $0x28] sm:$0xff]  ;;  %v8998_v36 = vld [vmem:[%s9604_s0 + $0x30] sm:$0xff] }
 0x7c3   : > { %7421 = vmatprep.mubr.f32.mxu0 %v10255_v5  ;;  %8462 = vmatpush3.bf16.msra.mxu0 %v8459_v23  ;;  %v4859_v5 = vld [vmem:[#allocation11 + $0x3e0] sm:$0xff]  ;;  %v5123_v23 = vld [vmem:[#allocation12 + $0x48] sm:$0xff] }
 0x7c4   : > { %8464 = vmatprep.subr.bf16.mxu0 %v8463_v27  ;;  %v8479_v61 = vpack.c.bf16 %v4860_v43, %v4859_v5  ;;  %v5438_v5 = vld [vmem:[%s10461_s11] ss:$0 sm:$0xff]  ;;  %s9261_s11 = smov [#allocation14]  }
 0x7c5   : > { %v5439_v43 = vld [vmem:[%s10462_s15] ss:$0 sm:$0xff]  ;;  %s9174_s18 = sshll.u32 %s9261_s11, 4  ;;  %s9175_s18 = int_to_ptr.vmem [resolvable:$false] %s9174_s18 }
 0x7c6   : > { %7422 = vmatmul.mubr.f32.gmra.mrb[16].mxu0 %v10258_v48  ;;  %v4861_v48 = vld [vmem:[#allocation11 + $0x3f0] sm:$0xff]  ;;  %s9176_s6 = scalar_lea.vmem %s9175_s18, 2048 }
 0x7c7   : > { %7424 = vmatprep.mubr.f32.mxu0 %v10297_v10  ;;  %8466 = vmatpush3.bf16.msra.mxu0 %v8463_v27  ;;  %v8483_v10 = vpack.c.bf16 %v4862_v17, %v4861_v48  ;;  %v5126_v27 = vld [vmem:[#allocation12 + $0x60] sm:$0xff]  ;;  %v8581_v17 = vadd.f32 %v5439_v43, %v5438_v5 }
 0x7c8   : > { %8468 = vmatprep.subr.bf16.mxu0 %v8467_v15 }
 0x7ca   : > { %7425 = vmatmul.mubr.f32.gmra.mrb[18].mxu0 %v4707_v60  ;;  %v8995_v60 = vld [vmem:[%s9604_s0 + $0x18] sm:$0xff] }
 0x7cb   : > { %8470 = vmatpush3.bf16.msra.mxu0 %v8467_v15  ;;  %7459 = vmatprep.mubr.f32.mxu0 %v10216_v31  ;;  %v8491_v31 = vpack.c.bf16 %v4988_v19, %v4987_v49 }
 0x7cc   : > { %8472 = vmatprep.subr.bf16.mxu0 %v8471_v62 }
 0x7cf   : > { %8474 = vmatpush3.bf16.msra.mxu0 %v8471_v62  ;;  %v8996_v62 = vld [vmem:[%s9604_s0 + $0x20] sm:$0xff] }
 0x7d0   : > { %8476 = vmatprep.subr.bf16.mxu0 %v8475_v46 }
 0x7d3   : > { %8478 = vmatpush3.bf16.msra.mxu0 %v8475_v46  ;;  %v8999_v46 = vld [vmem:[%s9604_s0 + $0x38] sm:$0xff] }
 0x7d4   : > { %8480 = vmatprep.subr.bf16.mxu0 %v8479_v61 }
 0x7d7   : > { %8482 = vmatpush3.bf16.msra.mxu0 %v8479_v61 }
 0x7d8   : > { %8484 = vmatprep.subr.bf16.mxu0 %v8483_v10 }
 0x7db   : > { %8486 = vmatpush3.bf16.msra.mxu0 %v8483_v10 }
 0x7dc   : > { %8488 = vmatprep.subr.bf16.mxu0 %v8487_v34 }
 0x7de   : > { %7460 = vmatmul.mubr.f32.vlgmr.msra.gmra.mrb[12].mxu0 %v10218_v21  ;;  %v8503_v21 = vpack.c.bf16 %v4994_v14, %v4993_v29 }
 0x7df   : > { %7462 = vmatprep.mubr.f32.mxu0 %v10221_v30  ;;  %8490 = vmatpush3.bf16.msra.mxu0 %v8487_v34  ;;  %v4995_v30 = vld [vmem:[#allocation11 + $0x450] sm:$0xff] }
 0x7e0   : > { %8492 = vmatprep.subr.bf16.mxu0 %v8491_v31 }
 0x7e2   : > { %7463 = vmatmul.mubr.f32.gmra.mrb[14].mxu0 %v10224_v42  ;;  %v8507_v42 = vpack.c.bf16 %v4996_v32, %v4995_v30 }
 0x7e3   : > { %7465 = vmatprep.mubr.f32.mxu0 %v10227_v40  ;;  %8494 = vmatpush3.bf16.msra.mxu0 %v8491_v31  ;;  %v4997_v40 = vld [vmem:[#allocation11 + $0x460] sm:$0xff] }
 0x7e4   : > { %8496 = vmatprep.subr.bf16.mxu0 %v8495_v4  ;;  %v8511_v39 = vpack.c.bf16 %v4998_v24, %v4997_v40 }
 0x7e6   : > { %7466 = vmatmul.mubr.f32.gmra.mrb[16].mxu0 %v10230_v26  ;;  %v4999_v26 = vld [vmem:[#allocation11 + $0x470] sm:$0xff] }
 0x7e7   : > { %7468 = vmatprep.mubr.f32.mxu0 %v10234_v6  ;;  %8498 = vmatpush3.bf16.msra.mxu0 %v8495_v4  ;;  %v8515_v6 = vpack.c.bf16 %v5000_v2, %v4999_v26 }
 0x7e8   : > { %8500 = vmatprep.subr.bf16.mxu0 %v8499_v45 }
 0x7ea   : > { %7469 = vmatmul.mubr.f32.gmra.mrb[18].mxu0 %v8991_v54 }
 0x7eb   : > { %8502 = vmatpush3.bf16.msra.mxu0 %v8499_v45  ;;  %7503 = vmatprep.mubr.f32.mxu0 %v10272_v28  ;;  %v8523_v28 = vpack.c.bf16 %v5117_v41, %v5116_v20 }
 0x7ec   : > { %8504 = vmatprep.subr.bf16.mxu0 %v8503_v21 }
 0x7ef   : > { %8506 = vmatpush3.bf16.msra.mxu0 %v8503_v21 }
 0x7f0   : > { %8508 = vmatprep.subr.bf16.mxu0 %v8507_v42 }
 0x7f3   : > { %8510 = vmatpush3.bf16.msra.mxu0 %v8507_v42 }
 0x7f4   : > { %8512 = vmatprep.subr.bf16.mxu0 %v8511_v39 }
 0x7f7   : > { %8514 = vmatpush3.bf16.msra.mxu0 %v8511_v39 }
 0x7f8   : > { %8516 = vmatprep.subr.bf16.mxu0 %v8515_v6 }
 0x7fb   : > { %8518 = vmatpush3.bf16.msra.mxu0 %v8515_v6 }
 0x7fc   : > { %8520 = vmatprep.subr.bf16.mxu0 %v8519_v16 }
 0x7fe   : > { %7504 = vmatmul.mubr.f32.vlgmr.msra.gmra.mrb[12].mxu0 %v10275_v35  ;;  %v4983_v35 = vld [vmem:[#allocation2 + $0xe1] sm:$0xff] }
 0x7ff   : > { %7506 = vmatprep.mubr.f32.mxu0 %v10278_v52  ;;  %8522 = vmatpush3.bf16.msra.mxu0 %v8519_v16  ;;  %v8535_v52 = vpack.c.bf16 %v5123_v23, %v5122_v1 }
 0x800   : > { %8524 = vmatprep.subr.bf16.mxu0 %v8523_v28 }
 0x802   : > { %7507 = vmatmul.mubr.f32.gmra.mrb[14].mxu0 %v10281_v47  ;;  %v8992_v47 = vld [vmem:[%s9604_s0] sm:$0xff]  ;;  %s612_s0 = scalar_lea.vmem [#allocation14], %s5405_s20 }
 0x803   : > { %7509 = vmatprep.mubr.f32.mxu0 %v10284_v56  ;;  %8526 = vmatpush3.bf16.msra.mxu0 %v8523_v28  ;;  %v8539_v56 = vpack.c.bf16 %v5125_v44, %v5124_v53  ;;  %s5272_s26 = sshll.u32 %s612_s0, 4  ;;  %s10356_s26 = int_to_ptr.vmem [resolvable:$true] %s5272_s26 }
 0x804   : > { %8528 = vmatprep.subr.bf16.mxu0 %v8527_v22  ;;  %s9170_s27 = scalar_lea.vmem %s10356_s26, 1024  ;;  %p9177_p13 = scmp.lt.s32.totalorder %s10356_s26, %s9175_s18 }
 0x805   : > { %p9171_p7 = scmp.ne.s32.totalorder %s10356_s26, %s9170_s27  ;;  %p9178_p0 = scmp.lt.s32.totalorder %s9176_s6, %s9170_s27 }
 0x806   : > { %7510 = vmatmul.mubr.f32.gmra.mrb[16].mxu0 %v10287_v50  ;;  %v8543_v50 = vpack.c.bf16 %v5127_v13, %v5126_v27 }
 0x807   : > { %7512 = vmatprep.mubr.f32.mxu0 %v10315_v18  ;;  %8530 = vmatpush3.bf16.msra.mxu0 %v8527_v22  ;;  %v5128_v18 = vld [vmem:[#allocation12 + $0x70] sm:$0xff]  ;;  %p9172_p12 = pnand %p9171_p7, %p10464_p4  ;;  %p9179_p2 = por %p9178_p0, %p9177_p13 }
 0x808   : > { %8532 = vmatprep.subr.bf16.mxu0 %v8531_v33  ;;  %v8547_v15 = vpack.c.bf16 %v5129_v11, %v5128_v18 }
 0x809   : > { %p9173_p1 = pneg %p9172_p12 }
 0x80a   : > { %7513 = vmatmul.mubr.f32.gmra.mrb[18].mxu0 %v4983_v35 }
 0x80b   : > { %8534 = vmatpush3.bf16.msra.mxu0 %v8531_v33  ;;  %7547 = vmatprep.mubr.f32.mxu0 %v8992_v47  ;;  %p9180_p8 = pnand %p9179_p2, %p9173_p1 }
 0x80c   : > { %8536 = vmatprep.subr.bf16.mxu0 %v8535_v52 }
 0x80f   : > { %8538 = vmatpush3.bf16.msra.mxu0 %v8535_v52 }
 0x810   : > { %8540 = vmatprep.subr.bf16.mxu0 %v8539_v56 }
 0x813   : > { %8542 = vmatpush3.bf16.msra.mxu0 %v8539_v56 }
 0x814   : > { %8544 = vmatprep.subr.bf16.mxu0 %v8543_v50 }
 0x817   : > { %8546 = vmatpush3.bf16.msra.mxu0 %v8543_v50 }
 0x818   : > { %8548 = vmatprep.subr.bf16.mxu0 %v8547_v15 }
 0x81b   : > { %8550 = vmatpush3.bf16.msra.mxu0 %v8547_v15 }
 0x81e   : > { %7548 = vmatmul.mubr.f32.vlgmr.msra.gmra.mrb[12].mxu0 %v8993_v55 }
 0x81f   : > { %7550 = vmatprep.mubr.f32.mxu0 %v8994_v57 }
 0x822   : > { %7551 = vmatmul.mubr.f32.gmra.mrb[14].mxu0 %v8995_v60 }
 0x823   : > { %7553 = vmatprep.mubr.f32.mxu0 %v8996_v62 }
 0x826   : > { %7554 = vmatmul.mubr.f32.gmra.mrb[16].mxu0 %v8997_v59 }
 0x827   : > { %7556 = vmatprep.mubr.f32.mxu0 %v8998_v36 }
 0x82a   : > { %7557 = vmatmul.mubr.f32.gmra.mrb[18].mxu0 %v8999_v46 }
 0x8f1   : > { %v7549_v61 = vpop.f32.mrb[12].mxu0 }
 0x8f2   : > { %v8575_v48 = vadd.f32 %v7549_v61, %v5438_v5  ;;  %v5203_v10 = vpop.f32.mrb[13].mxu0 }
 0x8f3   : > { %v8577_v8 = vadd.f32 %v5438_v5, %v5203_v10 }
 0x8f4   : > { %v8576_v7 = vadd.f32 %v8575_v48, %v5439_v43 }
 0x8f5   : > { %v8578_v34 = vadd.f32 %v8577_v8, %v5439_v43  ;;  %v7552_v49 = vpop.f32.mrb[14].mxu0 }
 0x8f6   : > { %5251 = vst [vmem:[%s612_s0 + $0x8] sm:$0xff] %v8576_v7  ;;  %v8580_v19 = vadd.f32 %v8581_v17, %v7552_v49  ;;  %v5213_v31 = vpop.f32.mrb[15].mxu0 }
 0x8f7   : > { %5250 = vst [vmem:[%s612_s0] sm:$0xff] %v8578_v34  ;;  %v8582_v63 = vadd.f32 %v8581_v17, %v5213_v31 }
 0x8f8   : > { %5253 = vst [vmem:[%s612_s0 + $0x18] sm:$0xff] %v8580_v19 }
 0x8f9   : > { %5252 = vst [vmem:[%s612_s0 + $0x10] sm:$0xff] %v8582_v63  ;;  %v7555_v12 = vpop.f32.mrb[16].mxu0 }
 0x8fa   : > { %v8584_v4 = vadd.f32 %v8581_v17, %v7555_v12  ;;  %v5223_v3 = vpop.f32.mrb[17].mxu0 }
 0x8fb   : > { %v8586_v9 = vadd.f32 %v8581_v17, %v5223_v3 }
 0x8fc   : > { %5255 = vst [vmem:[%s612_s0 + $0x28] sm:$0xff] %v8584_v4 }
 0x8fd   : > { %5254 = vst [vmem:[%s612_s0 + $0x20] sm:$0xff] %v8586_v9  ;;  %v7558_v45 = vpop.f32.mrb[18].mxu0 }
 0x8fe   : > { %v8588_v29 = vadd.f32 %v8581_v17, %v7558_v45  ;;  %v5233_v14 = vpop.f32.mrb[19].mxu0 }
 0x8ff   : > { %v8590_v21 = vadd.f32 %v8581_v17, %v5233_v14 }
 0x900   : > { %5257 = vst [vmem:[%s612_s0 + $0x38] sm:$0xff] %v8588_v29 }
 0x901   : > { %5256 = vst [vmem:[%s612_s0 + $0x30] sm:$0xff] %v8590_v21 }
 0x902   : > { %9183 = shalt.err (!%p9180_p8)
}
 0x903   : > { %s9184_s15 = scalar_lea.hbm %s10361_s28, 1024  ;;  %s9188_s20 = scalar_lea.hbm %s10463_s17, 2048 }
 0x904   : > { %p9185_p6 = scmp.ne.s32.totalorder %s10361_s28, %s9184_s15  ;;  %p9189_p3 = scmp.lt.u32.totalorder %s10361_s28, %s10463_s17 }
 0x905   : > { %p9190_p5 = scmp.lt.u32.totalorder %s9188_s20, %s9184_s15  ;;  %p9192_p7 = scmp.lt.u32.totalorder %s9184_s15, %s10361_s28 }
 0x906   : > { %p9186_p10 = pnand %p9185_p6, %p10464_p4 }
 0x907   : > { %p9191_p9 = por %p9190_p5, %p9189_p3 }
 0x908   : > { %p9187_p11 = pneg %p9186_p10 }
 0x909   : > { %p9193_p12 = por %p9192_p7, %p9191_p9 }
 0x90b   : > { %p9194_p1 = pnand %p9193_p12, %p9187_p11 }
 0x90d   : > { %9197 = shalt.err (!%p9194_p1)
}
 0x90e   : > { %s9262_s27 = smov 128   ;;  %s9263_s18 = smov 8  }
 0x90f   : > { %8805 = dma.vmem_to_hbm [thread:$0]  (%p10464_p4), %s10356_s26, 1024, %s10361_s28, %s5259_s16, %s9262_s27, %s9262_s27, %s9263_s18  }
 0x910 PF: > { %s5287_s6 = sand.u32 1, %s9236_s21   ;;  %p10465_p13 = scmp.ne.s32.totalorder %s10445_s25, 0 }
 0x911   : > { %p10466_p0 = scmp.ge.s32.totalorder %s9248_s24, 2  ;;  %s5288_s15 = scalar_lea.sflag [#allocation5], %s5287_s6 }
 0x913   : > { %p8828_p2 = pnand %p10466_p0, %p10465_p13 }
 0x915   : > { %9231 = dma.done.wait (!%p8828_p2), %s5288_s15, 1024  }
 0x916   : > { %9233 = vsyncadd (!%p8828_p2), %s5288_s15, 4294966272  ;;  %p32_p8 = scmp.ge.s32.totalorder %s9522_s29, 4   ;;  %s10467_s21 = smov %s9240_s22 }
 0x917   : > { %s10468_s22 = smov %s9244_s23  ;;  %s10469_s23 = smov %s9534_s9 }
 0x918   : > { %s10470_s24 = smov %s9522_s29  ;;  %34 = sbr.rel (!%p32_p8) target bundleno = 18 (0x12), region = 176 }
 0x91f   :  { %5293 = vsyncpa [#allocation4], 1 }
 0x920   :  { %5295 = vsyncpa [#allocation4 + $0x1], 1 }
 0x921   :  { %5296 = vsyncpa [#allocation7], 1 }
 0x922   :  { %5297 = vsyncpa [#allocation10], 1 }
 0x923   :  { %5298 = vsyncpa [#allocation13], 1 }
 0x924   :  { %5299 = vsyncpa [#allocation5], 1 }
 0x925   :  { %5301 = vsyncpa [#allocation5 + $0x1], 1 }

</bundles_post_ra>
